<compile_context>
chip_gen: v7x
topology: tpu7x:2x2x1
jax: 0.10.0
libtpu: 0.0.40
codegen_flags: <defaults>
</compile_context>

<pallas_src>
import functools

import jax
import jax.numpy as jnp
import numpy as np
from jax import lax
from jax.experimental import pallas as pl
from jax.experimental.pallas import tpu as pltpu


# --------------------------------------------------------------- shared kernel pieces ---
def _channel_gate(xb, w1t_ref, w2t_ref, wg_ref, precision):
    """Channel attention (global avg/max pool -> Cr MLP -> sigmoid) and the fusion gate."""
    avg_c = jnp.mean(xb, axis=2)                          # (bb, C)  lane reduce
    max_c = jnp.max(xb, axis=2)                           # (bb, C)
    w1t = w1t_ref[...]                                    # (C, Cr)
    w2t = w2t_ref[...]                                    # (Cr, C)
    ha = jnp.dot(avg_c, w1t, precision=precision, preferred_element_type=jnp.float32)
    hm = jnp.dot(max_c, w1t, precision=precision, preferred_element_type=jnp.float32)
    h = jnp.maximum(ha, 0.0) + jnp.maximum(hm, 0.0)       # ReLU; shared layer-2 input
    ca = jax.nn.sigmoid(
        jnp.dot(h, w2t, precision=precision, preferred_element_type=jnp.float32))  # (bb, C)
    # gate = sigmoid(<wg, channel_att>)  (AdaptiveAvgPool2d(1) of a 1x1 map is identity)
    g = jax.nn.sigmoid(jnp.sum(ca * wg_ref[...], axis=1, keepdims=True))           # (bb, 1)
    return ca, g


def _apply_fusion(xb, ca, g, sp, o_ref):
    """out = x * (g*ca + (1-g)*sp) without materializing a named full-size `fused`."""
    ca_g = (g * ca)[:, :, None]                           # (bb, C, 1)
    sp_g = ((1.0 - g) * sp)[:, None, :]                   # (bb, 1, HW)
    o_ref[...] = (xb * (ca_g + sp_g)).astype(o_ref.dtype)


# --------------------------------------------------- main kernel: conv as one MXU matmul ---
def _dja_kernel_matmul(x_ref, w1t_ref, w2t_ref, wg_ref, wconv_ref, o_ref, *, precision):
    """x_ref: (bb, C, HW) VMEM; wconv_ref: (2*HW, HW) dense conv matrix in VMEM."""
    xb = x_ref[...]                                       # (bb, C, HW)
    ca, g = _channel_gate(xb, w1t_ref, w2t_ref, wg_ref, precision)

    avg_s = jnp.mean(xb, axis=1)                          # (bb, HW) sublane reduce over C
    max_s = jnp.max(xb, axis=1)                           # (bb, HW)
    sp_in = jnp.concatenate([avg_s, max_s], axis=1)       # (bb, 2*HW) lane-dense
    acc = jnp.dot(sp_in, wconv_ref[...],
                  precision=precision, preferred_element_type=jnp.float32)  # (bb, HW)
    sp = jax.nn.sigmoid(acc)                              # spatial attention

    _apply_fusion(xb, ca, g, sp, o_ref)


# -------------------------------------------- fallback kernel: conv as XLU rolls (big HW) ---
def _dja_kernel_roll(x_ref, w1t_ref, w2t_ref, wg_ref, wsp_ref, o_ref, *, H, W, K, precision):
    """Used when the dense (2*HW, HW) conv matrix would be too big for VMEM.
    One pltpu.roll per tap on the sublane-stacked [avg; max] map (49 rolls, not 98)."""
    p = K // 2
    HW = H * W
    xb = x_ref[...]                                       # (bb, C, HW)
    bb = xb.shape[0]

    ca, g = _channel_gate(xb, w1t_ref, w2t_ref, wg_ref, precision)

    avg_s = jnp.mean(xb, axis=1)                          # (bb, HW)
    max_s = jnp.max(xb, axis=1)                           # (bb, HW)
    st = jnp.concatenate([avg_s, max_s], axis=0)          # (2*bb, HW) sublane-stacked

    idx = lax.broadcasted_iota(jnp.int32, (1, HW), 1)     # flat spatial index
    row_idx = idx // W
    col_idx = idx % W
    row_ok, col_ok = {}, {}
    for d in range(-p, p + 1):                            # zero-padding boundary masks
        row_ok[d] = None if d == 0 else ((row_idx >= -d) & (row_idx < H - d))
        col_ok[d] = None if d == 0 else ((col_idx >= -d) & (col_idx < W - d))

    acc = jnp.zeros_like(avg_s)                           # (bb, HW)
    for ki in range(K):
        di = ki - p
        for kj in range(K):
            dj = kj - p
            shift = (-(di * W + dj)) % HW
            r = st if shift == 0 else pltpu.roll(st, shift=shift, axis=1)  # one XLU roll/tap
            mr, mc = row_ok[di], col_ok[dj]
            mask = mr if mc is None else (mc if mr is None else (mr & mc))
            if mask is not None:
                r = jnp.where(mask, r, 0.0)
            wa = wsp_ref[0, ki * K + kj]                  # SMEM scalar weights
            wm = wsp_ref[1, ki * K + kj]
            acc = acc + (wa * r[:bb] + wm * r[bb:])
    sp = jax.nn.sigmoid(acc)                              # spatial attention

    _apply_fusion(xb, ca, g, sp, o_ref)


# ---------------------------------------------------------------- host-side weight glue ---
def _build_conv_matrix(wsp, H, W):
    """Fold Conv2d(2, 1, K, padding=K//2, bias=False) into a dense (2*HW, HW) matrix so the
    kernel can do acc = [avg_s | max_s] @ Wconv on the MXU.  Indices are static numpy."""
    K = wsp.shape[-1]
    pad = K // 2
    HW = H * W
    q = np.arange(HW)
    r, c = q // W, q % W
    rows, cols, taps = [], [], []
    for ch in range(2):
        for ki in range(K):
            for kj in range(K):
                sr = r + ki - pad
                sc = c + kj - pad
                valid = (sr >= 0) & (sr < H) & (sc >= 0) & (sc < W)
                rows.append(ch * HW + sr[valid] * W + sc[valid])
                cols.append(q[valid])
                taps.append(np.full(int(valid.sum()), ch * K * K + ki * K + kj))
    rows = np.concatenate(rows)
    cols = np.concatenate(cols)
    taps = np.concatenate(taps)
    return (jnp.zeros((2 * HW, HW), wsp.dtype)
            .at[rows, cols].add(wsp.reshape(-1)[taps]))


def _vmem_limit_bytes():
    """Generation-aware scoped-VMEM request (v5e/v6e: 128 MiB physical, v7x: 64 MiB)."""
    cap = 64 << 20                                        # conservative default (v7x)
    try:
        cap = int(getattr(pltpu.get_tpu_info(), "vmem_capacity_bytes", cap))
    except Exception:
        pass
    return max(32 << 20, min(cap - (16 << 20), 100 << 20))


def _choose_batch_block(B, bytes_per_batch, max_block_bytes):
    """Largest divisor of B whose x-block fits the budget, preferring (a) multiples of 8
    (full f32 sublane packing of the (bb, C)/(bb, HW) intermediates) and (b) when B >= 16,
    >= 2 grid steps so the 'parallel' batch axis can still shard across v7x's two
    TensorCores without dropping below a sublane-full block.  Single-TC v5e/v6e are never
    forced into a multi-step grid for small B."""
    fits = [d for d in range(1, B + 1)
            if B % d == 0 and d * bytes_per_batch <= max_block_bytes]
    if not fits:
        fits = [1]

    def score(d):
        sublane_full = (d % 8 == 0) or (d == B and B < 8)
        megacore_ok = (B < 16) or (B // d >= 2)
        return (sublane_full, megacore_ok, d)

    return max(fits, key=score)


# --------------------------------------------------------------------------- wrapper ---
def dynamic_joint_attention(x, w1, w2, wg, wsp, *,
                            precision=jax.lax.Precision.HIGHEST, use_matmul_conv=None):
    """x: (B, C, H, W).  w1: (Cr, C) = Conv2d(C, Cr, 1); w2: (C, Cr) = Conv2d(Cr, C, 1);
    wg: (C,) = Conv2d(C, 1, 1); wsp: (2, K, K) = Conv2d(2, 1, K, padding=K//2)."""
    B, C, H, W = x.shape
    Cr = w1.shape[0]
    K = wsp.shape[-1]
    HW = H * W
    itemsize = x.dtype.itemsize

    # Conv path selection: dense matrix on the MXU while (2*HW, HW) stays small.
    wconv_bytes = 2 * HW * HW * 4
    if use_matmul_conv is None:
        use_matmul_conv = wconv_bytes <= (4 << 20)

    vmem_limit = _vmem_limit_bytes()
    fixed = (2 * wconv_bytes if use_matmul_conv else 0) + (2 << 20)   # weights + margin
    # 2 pipeline buffers x (input block + output block) must fit the remaining budget.
    max_block = max(C * HW * itemsize, min(16 << 20, (vmem_limit - fixed) // 4))
    bb = _choose_batch_block(B, C * HW * itemsize, max_block)
    grid = (B // bb,)

    # Layout glue only (flat lane-dense spatial view / tiny weight transposes).
    x_flat = x.reshape(B, C, HW)
    w1t = jnp.transpose(w1)                               # (C, Cr)
    w2t = jnp.transpose(w2)                               # (Cr, C)
    wg_row = wg.reshape(1, C)

    in_specs = [
        pl.BlockSpec((bb, C, HW), lambda b: (b, 0, 0)),
        pl.BlockSpec((C, Cr), lambda b: (0, 0)),
        pl.BlockSpec((Cr, C), lambda b: (0, 0)),
        pl.BlockSpec((1, C), lambda b: (0, 0)),
    ]
    if use_matmul_conv:
        kernel = functools.partial(_dja_kernel_matmul, precision=precision)
        in_specs.append(pl.BlockSpec((2 * HW, HW), lambda b: (0, 0)))
        extra = (_build_conv_matrix(wsp, H, W),)
    else:
        kernel = functools.partial(_dja_kernel_roll, H=H, W=W, K=K, precision=precision)
        in_specs.append(pl.BlockSpec(memory_space=pltpu.MemorySpace.SMEM))
        extra = (wsp.reshape(2, K * K),)

    out_flat = pl.pallas_call(
        kernel,
        out_shape=jax.ShapeDtypeStruct((B, C, HW), x.dtype),
        grid=grid,
        in_specs=in_specs,
        out_specs=pl.BlockSpec((bb, C, HW), lambda b: (b, 0, 0)),
        compiler_params=pltpu.CompilerParams(
            dimension_semantics=("parallel",),
            vmem_limit_bytes=vmem_limit),
    )(x_flat, w1t, w2t, wg_row, *extra)

    return out_flat.reshape(B, C, H, W)


# ------------------------------------------------------------------ pure-JAX reference ---
def reference(x, w1, w2, wg, wsp):
    B, C, H, W = x.shape
    K = wsp.shape[-1]
    p = K // 2
    hp = jax.lax.Precision.HIGHEST

    avg = jnp.mean(x, axis=(2, 3))                        # (B, C)
    mx = jnp.max(x, axis=(2, 3))                          # (B, C)

    def fc(v):
        h = jnp.maximum(jnp.dot(v, w1.T, precision=hp), 0.0)
        return jnp.dot(h, w2.T, precision=hp)

    ca = jax.nn.sigmoid(fc(avg) + fc(mx))                 # (B, C)
    ca4 = ca[:, :, None, None]

    avg_s = jnp.mean(x, axis=1, keepdims=True)            # (B, 1, H, W)
    max_s = jnp.max(x, axis=1, keepdims=True)
    sp_in = jnp.concatenate([avg_s, max_s], axis=1)       # (B, 2, H, W)
    conv = lax.conv_general_dilated(
        sp_in, wsp[None], (1, 1), [(p, p), (p, p)],
        dimension_numbers=("NCHW", "OIHW", "NCHW"), precision=hp)
    sp = jax.nn.sigmoid(conv)                             # (B, 1, H, W)

    gate = jax.nn.sigmoid(jnp.sum(wg[None, :] * ca, axis=1))   # (B,)
    gate4 = gate[:, None, None, None]
    fused = gate4 * ca4 + (1.0 - gate4) * sp
    return x * fused


if __name__ == "__main__":
    # Shapes consistent with DynamicJointAttention(in_channels=32, kernel_size=7, reduction=16)
    B, C, H, W = 2, 32, 16, 16
    reduction, K = 16, 7
    Cr = max(1, C // reduction)

    key = jax.random.PRNGKey(0)
    k0, k1, k2, k3, k4 = jax.random.split(key, 5)
    x = jax.random.normal(k0, (B, C, H, W), jnp.float32)
    w1 = jax.random.normal(k1, (Cr, C), jnp.float32) * 0.2     # Conv2d(C, Cr, 1, bias=False)
    w2 = jax.random.normal(k2, (C, Cr), jnp.float32) * 0.2     # Conv2d(Cr, C, 1, bias=False)
    wg = jax.random.normal(k3, (C,), jnp.float32) * 0.2        # Conv2d(C, 1, 1, bias=False)
    wsp = jax.random.normal(k4, (2, K, K), jnp.float32) * 0.2  # Conv2d(2, 1, 7, bias=False)

    ref = reference(x, w1, w2, wg, wsp)

    def run(use_matmul_conv):
        try:
            out = dynamic_joint_attention(x, w1, w2, wg, wsp, use_matmul_conv=use_matmul_conv)
            return jax.block_until_ready(out), 2e-4
        except Exception:
            # TODO(synk): drop this fallback once fp32 contract precision for in-kernel MXU
            # dots (precision=HIGHEST) is guaranteed on all deployed jax versions.
            out = dynamic_joint_attention(x, w1, w2, wg, wsp, use_matmul_conv=use_matmul_conv,
                                          precision=None)
            return jax.block_until_ready(out), 5e-2

    # Exercise both spatial-conv paths (MXU matmul + large-HW roll fallback) at this shape.
    for use_matmul_conv, name in ((True, "mxu-conv"), (False, "roll-conv")):
        out, tol = run(use_matmul_conv)
        assert out.shape == (B, C, H, W)
        err = float(jnp.max(jnp.abs(out - ref)))
        if err > tol:
            raise AssertionError(f"{name} path: mismatch vs reference, max abs err = {err:.3e}")

    print("KERNEL_OK")
</pallas_src>

<mosaic_0001>
module attributes {stable_mosaic.version = 11 : i64} {
  func.func @_dja_kernel_matmul(%arg0: i32, %arg1: memref<2x32x256xf32, #tpu.memory_space<vmem>>, %arg2: memref<32x2xf32, #tpu.memory_space<vmem>>, %arg3: memref<2x32xf32, #tpu.memory_space<vmem>>, %arg4: memref<1x32xf32, #tpu.memory_space<vmem>>, %arg5: memref<512x256xf32, #tpu.memory_space<vmem>>, %arg6: memref<2x32x256xf32, #tpu.memory_space<vmem>>) attributes {dimension_semantics = [#tpu.dimension_semantics<parallel>], iteration_bounds = array<i64: 1>, scalar_prefetch = 0 : i64, scratch_operands = 0 : i64, tpu.core_type = #tpu.core_type<tc>, window_params = [{transform_indices = @transform_0, window_bounds = array<i64: 2, 32, 256>}, {pipeline_mode = #tpu.pipeline_mode<synchronous>, transform_indices = @transform_1, window_bounds = array<i64: 32, 2>}, {pipeline_mode = #tpu.pipeline_mode<synchronous>, transform_indices = @transform_2, window_bounds = array<i64: 2, 32>}, {pipeline_mode = #tpu.pipeline_mode<synchronous>, transform_indices = @transform_3, window_bounds = array<i64: 1, 32>}, {pipeline_mode = #tpu.pipeline_mode<synchronous>, transform_indices = @transform_4, window_bounds = array<i64: 512, 256>}, {transform_indices = @transform_5, window_bounds = array<i64: 2, 32, 256>}]} {
    %c0 = arith.constant 0 : index
    %c0_0 = arith.constant 0 : index
    %c0_1 = arith.constant 0 : index
    %0 = vector.load %arg1[%c0, %c0_0, %c0_1] : memref<2x32x256xf32, #tpu.memory_space<vmem>>, vector<2x32x256xf32>
    %cst = arith.constant dense<0.000000e+00> : vector<2x32xf32>
    %1 = vector.multi_reduction <add>, %0, %cst [2] : vector<2x32x256xf32> to vector<2x32xf32>
    %cst_2 = arith.constant 2.560000e+02 : f32
    %2 = vector.broadcast %cst_2 : f32 to vector<2x32xf32>
    %3 = arith.divf %1, %2 : vector<2x32xf32>
    %cst_3 = arith.constant dense<0xFF800000> : vector<2x32xf32>
    %4 = vector.multi_reduction <maximumf>, %0, %cst_3 [2] : vector<2x32x256xf32> to vector<2x32xf32>
    %c0_4 = arith.constant 0 : index
    %c0_5 = arith.constant 0 : index
    %5 = vector.load %arg2[%c0_4, %c0_5] : memref<32x2xf32, #tpu.memory_space<vmem>>, vector<32x2xf32>
    %c0_6 = arith.constant 0 : index
    %c0_7 = arith.constant 0 : index
    %6 = vector.load %arg3[%c0_6, %c0_7] : memref<2x32xf32, #tpu.memory_space<vmem>>, vector<2x32xf32>
    %cst_8 = arith.constant dense<0.000000e+00> : vector<2x2xf32>
    %7 = tpu.matmul %3, %5, %cst_8 {dimension_numbers = #tpu.dot_dimension_numbers<[1], [0], [0], [1], [0, 0, 1, 1], [], []>, precision = #tpu.contract_precision<fp32>} : vector<2x32xf32>, vector<32x2xf32>, vector<2x2xf32> -> vector<2x2xf32>
    %cst_9 = arith.constant dense<0.000000e+00> : vector<2x2xf32>
    %8 = tpu.matmul %4, %5, %cst_9 {dimension_numbers = #tpu.dot_dimension_numbers<[1], [0], [0], [1], [0, 0, 1, 1], [], []>, precision = #tpu.contract_precision<fp32>} : vector<2x32xf32>, vector<32x2xf32>, vector<2x2xf32> -> vector<2x2xf32>
    %cst_10 = arith.constant 0.000000e+00 : f32
    %9 = vector.broadcast %cst_10 : f32 to vector<2x2xf32>
    %10 = arith.maximumf %7, %9 : vector<2x2xf32>
    %cst_11 = arith.constant 0.000000e+00 : f32
    %11 = vector.broadcast %cst_11 : f32 to vector<2x2xf32>
    %12 = arith.maximumf %8, %11 : vector<2x2xf32>
    %13 = arith.addf %10, %12 : vector<2x2xf32>
    %cst_12 = arith.constant dense<0.000000e+00> : vector<2x32xf32>
    %14 = tpu.matmul %13, %6, %cst_12 {dimension_numbers = #tpu.dot_dimension_numbers<[1], [0], [0], [1], [0, 0, 1, 1], [], []>, precision = #tpu.contract_precision<fp32>} : vector<2x2xf32>, vector<2x32xf32>, vector<2x32xf32> -> vector<2x32xf32>
    %15 = arith.negf %14 : vector<2x32xf32>
    %16 = math.exp %15 : vector<2x32xf32>
    %cst_13 = arith.constant 1.000000e+00 : f32
    %17 = vector.broadcast %cst_13 : f32 to vector<2x32xf32>
    %18 = arith.addf %17, %16 : vector<2x32xf32>
    %19 = arith.divf %17, %18 : vector<2x32xf32>
    %c0_14 = arith.constant 0 : index
    %c0_15 = arith.constant 0 : index
    %20 = vector.load %arg4[%c0_14, %c0_15] : memref<1x32xf32, #tpu.memory_space<vmem>>, vector<1x32xf32>
    %21 = vector.broadcast %20 : vector<1x32xf32> to vector<2x32xf32>
    %22 = arith.mulf %19, %21 : vector<2x32xf32>
    %cst_16 = arith.constant dense<0.000000e+00> : vector<2xf32>
    %23 = vector.multi_reduction <add>, %22, %cst_16 [1] : vector<2x32xf32> to vector<2xf32>
    %24 = vector.shape_cast %23 : vector<2xf32> to vector<2x1xf32>
    %25 = arith.negf %24 : vector<2x1xf32>
    %26 = math.exp %25 : vector<2x1xf32>
    %cst_17 = arith.constant 1.000000e+00 : f32
    %27 = vector.broadcast %cst_17 : f32 to vector<2x1xf32>
    %28 = arith.addf %27, %26 : vector<2x1xf32>
    %29 = arith.divf %27, %28 : vector<2x1xf32>
    %cst_18 = arith.constant dense<0.000000e+00> : vector<2x256xf32>
    %30 = vector.multi_reduction <add>, %0, %cst_18 [1] : vector<2x32x256xf32> to vector<2x256xf32>
    %cst_19 = arith.constant 3.200000e+01 : f32
    %31 = vector.broadcast %cst_19 : f32 to vector<2x256xf32>
    %32 = arith.divf %30, %31 : vector<2x256xf32>
    %cst_20 = arith.constant dense<0xFF800000> : vector<2x256xf32>
    %33 = vector.multi_reduction <maximumf>, %0, %cst_20 [1] : vector<2x32x256xf32> to vector<2x256xf32>
    %34 = tpu.concatenate %32, %33 in 1 : vector<2x256xf32>, vector<2x256xf32> -> vector<2x512xf32>
    %c0_21 = arith.constant 0 : index
    %c0_22 = arith.constant 0 : index
    %35 = vector.load %arg5[%c0_21, %c0_22] : memref<512x256xf32, #tpu.memory_space<vmem>>, vector<512x256xf32>
    %cst_23 = arith.constant dense<0.000000e+00> : vector<2x256xf32>
    %36 = tpu.matmul %34, %35, %cst_23 {dimension_numbers = #tpu.dot_dimension_numbers<[1], [0], [0], [1], [0, 0, 1, 1], [], []>, precision = #tpu.contract_precision<fp32>} : vector<2x512xf32>, vector<512x256xf32>, vector<2x256xf32> -> vector<2x256xf32>
    %37 = arith.negf %36 : vector<2x256xf32>
    %38 = math.exp %37 : vector<2x256xf32>
    %cst_24 = arith.constant 1.000000e+00 : f32
    %39 = vector.broadcast %cst_24 : f32 to vector<2x256xf32>
    %40 = arith.addf %39, %38 : vector<2x256xf32>
    %41 = arith.divf %39, %40 : vector<2x256xf32>
    %42 = vector.broadcast %29 : vector<2x1xf32> to vector<2x32xf32>
    %43 = arith.mulf %42, %19 : vector<2x32xf32>
    %44 = vector.shape_cast %43 : vector<2x32xf32> to vector<2x32x1xf32>
    %cst_25 = arith.constant 1.000000e+00 : f32
    %45 = vector.broadcast %cst_25 : f32 to vector<2x1xf32>
    %46 = arith.subf %45, %29 : vector<2x1xf32>
    %47 = vector.broadcast %46 : vector<2x1xf32> to vector<2x256xf32>
    %48 = arith.mulf %47, %41 : vector<2x256xf32>
    %49 = vector.shape_cast %48 : vector<2x256xf32> to vector<2x1x256xf32>
    %50 = vector.broadcast %44 : vector<2x32x1xf32> to vector<2x32x256xf32>
    %51 = vector.broadcast %49 : vector<2x1x256xf32> to vector<2x32x256xf32>
    %52 = arith.addf %50, %51 : vector<2x32x256xf32>
    %53 = arith.mulf %0, %52 : vector<2x32x256xf32>
    %c0_26 = arith.constant 0 : index
    %c0_27 = arith.constant 0 : index
    %c0_28 = arith.constant 0 : index
    %54 = vector.load %arg6[%c0_26, %c0_27, %c0_28] : memref<2x32x256xf32, #tpu.memory_space<vmem>>, vector<2x32x256xf32>
    tpu.vector_store %arg6[%c0_26, %c0_27, %c0_28], %53 {strides = array<i32>} : memref<2x32x256xf32, #tpu.memory_space<vmem>>, vector<2x32x256xf32>,
    return
  }
  func.func @transform_0(%arg0: i32) -> (i32, i32, i32) {
    %c0_i32 = arith.constant 0 : i32
    %c0_i32_0 = arith.constant 0 : i32
    %c0_i32_1 = arith.constant 0 : i32
    return %arg0, %c0_i32, %c0_i32_0 : i32, i32, i32
  }
  func.func @transform_1(%arg0: i32) -> (i32, i32) {
    %c0_i32 = arith.constant 0 : i32
    %c0_i32_0 = arith.constant 0 : i32
    %c0_i32_1 = arith.constant 0 : i32
    return %c0_i32, %c0_i32_0 : i32, i32
  }
  func.func @transform_2(%arg0: i32) -> (i32, i32) {
    %c0_i32 = arith.constant 0 : i32
    %c0_i32_0 = arith.constant 0 : i32
    %c0_i32_1 = arith.constant 0 : i32
    return %c0_i32, %c0_i32_0 : i32, i32
  }
  func.func @transform_3(%arg0: i32) -> (i32, i32) {
    %c0_i32 = arith.constant 0 : i32
    %c0_i32_0 = arith.constant 0 : i32
    %c0_i32_1 = arith.constant 0 : i32
    return %c0_i32, %c0_i32_0 : i32, i32
  }
  func.func @transform_4(%arg0: i32) -> (i32, i32) {
    %c0_i32 = arith.constant 0 : i32
    %c0_i32_0 = arith.constant 0 : i32
    %c0_i32_1 = arith.constant 0 : i32
    return %c0_i32, %c0_i32_0 : i32, i32
  }
  func.func @transform_5(%arg0: i32) -> (i32, i32, i32) {
    %c0_i32 = arith.constant 0 : i32
    %c0_i32_0 = arith.constant 0 : i32
    %c0_i32_1 = arith.constant 0 : i32
    return %arg0, %c0_i32, %c0_i32_0 : i32, i32, i32
  }
}

module attributes {stable_mosaic.version = 11 : i64} {
  func.func @_dja_kernel_matmul(%arg0: i32, %arg1: memref<2x32x256xf32, #tpu.memory_space<vmem>>, %arg2: memref<32x2xf32, #tpu.memory_space<vmem>>, %arg3: memref<2x32xf32, #tpu.memory_space<vmem>>, %arg4: memref<1x32xf32, #tpu.memory_space<vmem>>, %arg5: memref<512x256xf32, #tpu.memory_space<vmem>>, %arg6: memref<2x32x256xf32, #tpu.memory_space<vmem>>) attributes {dimension_semantics = [#tpu.dimension_semantics<parallel>], iteration_bounds = array<i64: 1>, scalar_prefetch = 0 : i64, scratch_operands = 0 : i64, tpu.core_type = #tpu.core_type<tc>, window_params = [{transform_indices = @transform_0, window_bounds = array<i64: 2, 32, 256>}, {pipeline_mode = #tpu.pipeline_mode<synchronous>, transform_indices = @transform_1, window_bounds = array<i64: 32, 2>}, {pipeline_mode = #tpu.pipeline_mode<synchronous>, transform_indices = @transform_2, window_bounds = array<i64: 2, 32>}, {pipeline_mode = #tpu.pipeline_mode<synchronous>, transform_indices = @transform_3, window_bounds = array<i64: 1, 32>}, {pipeline_mode = #tpu.pipeline_mode<synchronous>, transform_indices = @transform_4, window_bounds = array<i64: 512, 256>}, {transform_indices = @transform_5, window_bounds = array<i64: 2, 32, 256>}]} {
    %c0 = arith.constant 0 : index
    %c0_0 = arith.constant 0 : index
    %c0_1 = arith.constant 0 : index
    %0 = vector.load %arg1[%c0, %c0_0, %c0_1] : memref<2x32x256xf32, #tpu.memory_space<vmem>>, vector<2x32x256xf32>
    %cst = arith.constant dense<0.000000e+00> : vector<2x32xf32>
    %1 = vector.multi_reduction <add>, %0, %cst [2] : vector<2x32x256xf32> to vector<2x32xf32>
    %cst_2 = arith.constant 2.560000e+02 : f32
    %2 = vector.broadcast %cst_2 : f32 to vector<2x32xf32>
    %3 = arith.divf %1, %2 : vector<2x32xf32>
    %cst_3 = arith.constant dense<0xFF800000> : vector<2x32xf32>
    %4 = vector.multi_reduction <maximumf>, %0, %cst_3 [2] : vector<2x32x256xf32> to vector<2x32xf32>
    %c0_4 = arith.constant 0 : index
    %c0_5 = arith.constant 0 : index
    %5 = vector.load %arg2[%c0_4, %c0_5] : memref<32x2xf32, #tpu.memory_space<vmem>>, vector<32x2xf32>
    %c0_6 = arith.constant 0 : index
    %c0_7 = arith.constant 0 : index
    %6 = vector.load %arg3[%c0_6, %c0_7] : memref<2x32xf32, #tpu.memory_space<vmem>>, vector<2x32xf32>
    %cst_8 = arith.constant dense<0.000000e+00> : vector<2x2xf32>
    %7 = tpu.matmul %3, %5, %cst_8 {dimension_numbers = #tpu.dot_dimension_numbers<[1], [0], [0], [1], [0, 0, 1, 1], [], []>} : vector<2x32xf32>, vector<32x2xf32>, vector<2x2xf32> -> vector<2x2xf32>
    %cst_9 = arith.constant dense<0.000000e+00> : vector<2x2xf32>
    %8 = tpu.matmul %4, %5, %cst_9 {dimension_numbers = #tpu.dot_dimension_numbers<[1], [0], [0], [1], [0, 0, 1, 1], [], []>} : vector<2x32xf32>, vector<32x2xf32>, vector<2x2xf32> -> vector<2x2xf32>
    %cst_10 = arith.constant 0.000000e+00 : f32
    %9 = vector.broadcast %cst_10 : f32 to vector<2x2xf32>
    %10 = arith.maximumf %7, %9 : vector<2x2xf32>
    %cst_11 = arith.constant 0.000000e+00 : f32
    %11 = vector.broadcast %cst_11 : f32 to vector<2x2xf32>
    %12 = arith.maximumf %8, %11 : vector<2x2xf32>
    %13 = arith.addf %10, %12 : vector<2x2xf32>
    %cst_12 = arith.constant dense<0.000000e+00> : vector<2x32xf32>
    %14 = tpu.matmul %13, %6, %cst_12 {dimension_numbers = #tpu.dot_dimension_numbers<[1], [0], [0], [1], [0, 0, 1, 1], [], []>} : vector<2x2xf32>, vector<2x32xf32>, vector<2x32xf32> -> vector<2x32xf32>
    %15 = arith.negf %14 : vector<2x32xf32>
    %16 = math.exp %15 : vector<2x32xf32>
    %cst_13 = arith.constant 1.000000e+00 : f32
    %17 = vector.broadcast %cst_13 : f32 to vector<2x32xf32>
    %18 = arith.addf %17, %16 : vector<2x32xf32>
    %19 = arith.divf %17, %18 : vector<2x32xf32>
    %c0_14 = arith.constant 0 : index
    %c0_15 = arith.constant 0 : index
    %20 = vector.load %arg4[%c0_14, %c0_15] : memref<1x32xf32, #tpu.memory_space<vmem>>, vector<1x32xf32>
    %21 = vector.broadcast %20 : vector<1x32xf32> to vector<2x32xf32>
    %22 = arith.mulf %19, %21 : vector<2x32xf32>
    %cst_16 = arith.constant dense<0.000000e+00> : vector<2xf32>
    %23 = vector.multi_reduction <add>, %22, %cst_16 [1] : vector<2x32xf32> to vector<2xf32>
    %24 = vector.shape_cast %23 : vector<2xf32> to vector<2x1xf32>
    %25 = arith.negf %24 : vector<2x1xf32>
    %26 = math.exp %25 : vector<2x1xf32>
    %cst_17 = arith.constant 1.000000e+00 : f32
    %27 = vector.broadcast %cst_17 : f32 to vector<2x1xf32>
    %28 = arith.addf %27, %26 : vector<2x1xf32>
    %29 = arith.divf %27, %28 : vector<2x1xf32>
    %cst_18 = arith.constant dense<0.000000e+00> : vector<2x256xf32>
    %30 = vector.multi_reduction <add>, %0, %cst_18 [1] : vector<2x32x256xf32> to vector<2x256xf32>
    %cst_19 = arith.constant 3.200000e+01 : f32
    %31 = vector.broadcast %cst_19 : f32 to vector<2x256xf32>
    %32 = arith.divf %30, %31 : vector<2x256xf32>
    %cst_20 = arith.constant dense<0xFF800000> : vector<2x256xf32>
    %33 = vector.multi_reduction <maximumf>, %0, %cst_20 [1] : vector<2x32x256xf32> to vector<2x256xf32>
    %34 = tpu.concatenate %32, %33 in 1 : vector<2x256xf32>, vector<2x256xf32> -> vector<2x512xf32>
    %c0_21 = arith.constant 0 : index
    %c0_22 = arith.constant 0 : index
    %35 = vector.load %arg5[%c0_21, %c0_22] : memref<512x256xf32, #tpu.memory_space<vmem>>, vector<512x256xf32>
    %cst_23 = arith.constant dense<0.000000e+00> : vector<2x256xf32>
    %36 = tpu.matmul %34, %35, %cst_23 {dimension_numbers = #tpu.dot_dimension_numbers<[1], [0], [0], [1], [0, 0, 1, 1], [], []>} : vector<2x512xf32>, vector<512x256xf32>, vector<2x256xf32> -> vector<2x256xf32>
    %37 = arith.negf %36 : vector<2x256xf32>
    %38 = math.exp %37 : vector<2x256xf32>
    %cst_24 = arith.constant 1.000000e+00 : f32
    %39 = vector.broadcast %cst_24 : f32 to vector<2x256xf32>
    %40 = arith.addf %39, %38 : vector<2x256xf32>
    %41 = arith.divf %39, %40 : vector<2x256xf32>
    %42 = vector.broadcast %29 : vector<2x1xf32> to vector<2x32xf32>
    %43 = arith.mulf %42, %19 : vector<2x32xf32>
    %44 = vector.shape_cast %43 : vector<2x32xf32> to vector<2x32x1xf32>
    %cst_25 = arith.constant 1.000000e+00 : f32
    %45 = vector.broadcast %cst_25 : f32 to vector<2x1xf32>
    %46 = arith.subf %45, %29 : vector<2x1xf32>
    %47 = vector.broadcast %46 : vector<2x1xf32> to vector<2x256xf32>
    %48 = arith.mulf %47, %41 : vector<2x256xf32>
    %49 = vector.shape_cast %48 : vector<2x256xf32> to vector<2x1x256xf32>
    %50 = vector.broadcast %44 : vector<2x32x1xf32> to vector<2x32x256xf32>
    %51 = vector.broadcast %49 : vector<2x1x256xf32> to vector<2x32x256xf32>
    %52 = arith.addf %50, %51 : vector<2x32x256xf32>
    %53 = arith.mulf %0, %52 : vector<2x32x256xf32>
    %c0_26 = arith.constant 0 : index
    %c0_27 = arith.constant 0 : index
    %c0_28 = arith.constant 0 : index
    %54 = vector.load %arg6[%c0_26, %c0_27, %c0_28] : memref<2x32x256xf32, #tpu.memory_space<vmem>>, vector<2x32x256xf32>
    tpu.vector_store %arg6[%c0_26, %c0_27, %c0_28], %53 {strides = array<i32>} : memref<2x32x256xf32, #tpu.memory_space<vmem>>, vector<2x32x256xf32>,
    return
  }
  func.func @transform_0(%arg0: i32) -> (i32, i32, i32) {
    %c0_i32 = arith.constant 0 : i32
    %c0_i32_0 = arith.constant 0 : i32
    %c0_i32_1 = arith.constant 0 : i32
    return %arg0, %c0_i32, %c0_i32_0 : i32, i32, i32
  }
  func.func @transform_1(%arg0: i32) -> (i32, i32) {
    %c0_i32 = arith.constant 0 : i32
    %c0_i32_0 = arith.constant 0 : i32
    %c0_i32_1 = arith.constant 0 : i32
    return %c0_i32, %c0_i32_0 : i32, i32
  }
  func.func @transform_2(%arg0: i32) -> (i32, i32) {
    %c0_i32 = arith.constant 0 : i32
    %c0_i32_0 = arith.constant 0 : i32
    %c0_i32_1 = arith.constant 0 : i32
    return %c0_i32, %c0_i32_0 : i32, i32
  }
  func.func @transform_3(%arg0: i32) -> (i32, i32) {
    %c0_i32 = arith.constant 0 : i32
    %c0_i32_0 = arith.constant 0 : i32
    %c0_i32_1 = arith.constant 0 : i32
    return %c0_i32, %c0_i32_0 : i32, i32
  }
  func.func @transform_4(%arg0: i32) -> (i32, i32) {
    %c0_i32 = arith.constant 0 : i32
    %c0_i32_0 = arith.constant 0 : i32
    %c0_i32_1 = arith.constant 0 : i32
    return %c0_i32, %c0_i32_0 : i32, i32
  }
  func.func @transform_5(%arg0: i32) -> (i32, i32, i32) {
    %c0_i32 = arith.constant 0 : i32
    %c0_i32_0 = arith.constant 0 : i32
    %c0_i32_1 = arith.constant 0 : i32
    return %arg0, %c0_i32, %c0_i32_0 : i32, i32, i32
  }
}

</mosaic_0001>

<bundles_post_ra>
// kernel: tpu_custom_call.1
= control target key start
LH: loop header
LB: loop body
LE: loop exit
PB: predicated region body
PF: predicated region fallthrough
CT: control target
= control target key end

     0   :  { %10 = vsyncpa [#allocation3], 0  ;;  %s8147_s0 = inlined_call_operand.hbm [shape: f32[2,32,256], index: 0, kind: input, shape index: {}]   ;;  %s8148_s1 = inlined_call_operand.vmem [shape: f32[32,2], index: 1, kind: input, shape index: {}]   ;;  %s8149_s2 = inlined_call_operand.vmem [shape: f32[2,32], index: 2, kind: input, shape index: {}]   ;;  %s8150_s3 = inlined_call_operand.vmem [shape: f32[1,32], index: 3, kind: input, shape index: {}]   ;;  %s8151_s4 = inlined_call_operand.hbm [shape: f32[512,256], index: 4, kind: input, shape index: {}]   ;;  %s8152_s5 = inlined_call_operand.hbm [shape: f32[2,32,256], index: 5, kind: output, shape index: {}]  }
   0x1   :  { %11 = vsyncpa [#allocation6], 0 }
   0x2   :  { %12 = vsyncpa [#allocation4], 0  ;;  %s5882_s18 = smov [#allocation2]   ;;  %s5810_s22 = scalar_lea.hbm %s8147_s0, 2048 }
   0x3   :  { %s18_s19 = sshll.u32 %s5882_s18, 4  ;;  %p5811_p0 = scmp.ne.s32.totalorder %s8147_s0, %s5810_s22  ;;  %s19_s19 = int_to_ptr.vmem [resolvable:$true] %s18_s19 }
   0x4   :  { %p5814_p1 = scmp.lt.u32.totalorder %s5810_s22, %s8147_s0 }
   0x6   :  { %p5816_p2 = pnand %p5814_p1, %p5811_p0 }
   0x8   :  { %5819 = shalt.err (!%p5816_p2)
}
   0x9   :  { %s5820_s27 = scalar_lea.vmem %s19_s19, 2048  ;;  %p5825_p4 = scmp.lt.s32.totalorder %s19_s19, %s19_s19 }
   0xa   :  { %p5821_p3 = scmp.ne.s32.totalorder %s19_s19, %s5820_s27  ;;  %p5826_p5 = scmp.lt.s32.totalorder %s5820_s27, %s5820_s27 }
   0xc   :  { %p5827_p6 = por %p5826_p5, %p5825_p4 }
   0xe   :  { %p5828_p7 = pnand %p5827_p6, %p5821_p3 }
  0x10   :  { %5831 = shalt.err (!%p5828_p7)
}
  0x11   :  { %s5883_s28 = smov 256   ;;  %s5884_s29 = smov 16  }
  0x12   :  { %24 = dma.hbm_to_vmem [thread:$0]  %s8147_s0, 2048, %s19_s19, [#allocation3], %s5883_s28, %s5883_s28, %s5884_s29  }
  0x13   :  { %s5885_s7 = smov [#allocation5]   ;;  %s5832_s11 = scalar_lea.hbm %s8151_s4, 16384 }
  0x14   :  { %s36_s8 = sshll.u32 %s5885_s7, 4  ;;  %p5833_p8 = scmp.ne.s32.totalorder %s8151_s4, %s5832_s11  ;;  %s37_s8 = int_to_ptr.vmem [resolvable:$true] %s36_s8 }
  0x15   :  { %p5836_p9 = scmp.lt.u32.totalorder %s5832_s11, %s8151_s4 }
  0x17   :  { %p5838_p10 = pnand %p5836_p9, %p5833_p8 }
  0x19   :  { %5841 = shalt.err (!%p5838_p10)
}
  0x1a   :  { %s5842_s16 = scalar_lea.vmem %s37_s8, 16384  ;;  %p5847_p12 = scmp.lt.s32.totalorder %s37_s8, %s37_s8 }
  0x1b   :  { %p5843_p11 = scmp.ne.s32.totalorder %s37_s8, %s5842_s16  ;;  %p5848_p13 = scmp.lt.s32.totalorder %s5842_s16, %s5842_s16 }
  0x1d   :  { %p5849_p0 = por %p5848_p13, %p5847_p12 }
  0x1f   :  { %p5850_p1 = pnand %p5849_p0, %p5843_p11 }
  0x21   :  { %5853 = shalt.err (!%p5850_p1)
}
  0x22   :  { %42 = dma.hbm_to_vmem [thread:$0]  %s8151_s4, 16384, %s37_s8, [#allocation6], %s5883_s28, %s5883_s28, %s5884_s29  }
  0x23   :  { %5876 = dma.done.wait [#allocation3], 2048  }
  0x24   :  { %5877 = vsyncadd [#allocation3], 4294965248 }
  0x25   :  { %5878 = dma.done.wait [#allocation6], 16384  }
  0x26   :  { %5879 = vsyncadd [#allocation6], 4294950912  ;;  %v5951_v0 = vld [vmem:[#allocation2 + $0x40] sm:$0xff]  ;;  %v5953_v1 = vld [vmem:[#allocation2 + $0x48] sm:$0xff]  ;;  %v5886_v53 = vmov 0.0|0.0   ;;  %vm5887_vm0 = vmmov 0  }
  0x27   :  { %v5955_v2 = vld [vmem:[#allocation2] sm:$0xff]  ;;  %v77_v3 = vadd.f32 %v5953_v1, %v5951_v0  ;;  %v5959_v4 = vld [vmem:[#allocation2 + $0x8] sm:$0xff]  ;;  %v5961_v5 = vld [vmem:[#allocation2 + $0x50] sm:$0xff]  ;;  %v110_v29 = vmax.f32 %v5951_v0, %v5953_v1  ;;  %4885 = vmatprep.subr.bf16.mxu0 %v5886_v53  ;;  %4879 = vmatprep.subr.bf16.mxu1 %v5886_v53  ;;  %v8154_v61 = vmov 0.0   ;;  %vm146_vm1 = vcmask 130112  }
  0x28   :  { %v5963_v6 = vld [vmem:[#allocation2 + $0x58] sm:$0xff]  ;;  %v65_v7 = vadd.f32 %v5959_v4, %v5955_v2  ;;  %v5967_v8 = vld [vmem:[#allocation2 + $0x10] sm:$0xff]  ;;  %v5975_v12 = vld [vmem:[#allocation2 + $0x60] sm:$0xff]  ;;  %v98_v25 = vmax.f32 %v5955_v2, %v5959_v4  ;;  %4736 = vmatprep.mubr.msk.f32.mxu0 %vm5887_vm0, %v8154_v61  ;;  %4725 = vmatprep.mubr.msk.f32.mxu1 %vm5887_vm0, %v8154_v61  ;;  %vm153_vm2 = vcmask 195712   ;;  %vm160_vm3 = vcmask 261312  }
  0x29   :  { %v5969_v9 = vld [vmem:[#allocation2 + $0x18] sm:$0xff]  ;;  %78 = vadd.xlane.f32.xlu1 %v77_v3  ;;  %v80_v10 = vadd.f32 %v5963_v6, %v5961_v5  ;;  %v5977_v13 = vld [vmem:[#allocation2 + $0x68] sm:$0xff]  ;;  %v5979_v14 = vld [vmem:[#allocation2 + $0x20] sm:$0xff]  ;;  %v113_v26 = vmax.f32 %v5961_v5, %v5963_v6  ;;  %vm181_vm4 = vcmask 1041409   ;;  %vm183_vm5 = vcmask 261120  }
  0x2a   :  { %66 = vadd.xlane.f32.xlu0 %v65_v7  ;;  %v68_v11 = vadd.f32 %v5969_v9, %v5967_v8  ;;  %v5981_v15 = vld [vmem:[#allocation2 + $0x28] sm:$0xff]  ;;  %v83_v16 = vadd.f32 %v5977_v13, %v5975_v12  ;;  %v5987_v18 = vld [vmem:[#allocation2 + $0x70] sm:$0xff]  ;;  %v5989_v19 = vld [vmem:[#allocation2 + $0x78] sm:$0xff]  ;;  %v101_v24 = vmax.f32 %v5967_v8, %v5969_v9  ;;  %v116_v34 = vmax.f32 %v5975_v12, %v5977_v13 }
  0x2b   :  { %v71_v17 = vadd.f32 %v5981_v15, %v5979_v14  ;;  %v5991_v20 = vld [vmem:[#allocation2 + $0x30] sm:$0xff]  ;;  %v5993_v21 = vld [vmem:[#allocation2 + $0x38] sm:$0xff]  ;;  %v86_v22 = vadd.f32 %v5989_v19, %v5987_v18  ;;  %v122_v27 = vld [vmem:[%s8148_s1] sm:$0xff]  ;;  %v104_v37 = vmax.f32 %v5979_v14, %v5981_v15  ;;  %v119_v44 = vmax.f32 %v5987_v18, %v5989_v19 }
  0x2c   :  { %v74_v23 = vadd.f32 %v5993_v21, %v5991_v20  ;;  %v123_v28 = vld [vmem:[%s8148_s1 + $0x8] sm:$0xff]  ;;  %v187_v30 = vand.u32 4294901760, %v122_v27  ;;  %v124_v35 = vld [vmem:[%s8148_s1 + $0x10] sm:$0xff]  ;;  %v125_v36 = vld [vmem:[%s8148_s1 + $0x18] sm:$0xff]  ;;  %v107_v47 = vmax.f32 %v5991_v20, %v5993_v21  ;;  %vm1212_vm6 = vcmask 1041408  }
  0x2d   :  { %81 = vadd.xlane.f32.xlu1 %v80_v10  ;;  %v190_v31 = vand.u32 4294901760, %v123_v28  ;;  %v193_v40 = vand.u32 4294901760, %v124_v35  ;;  %v196_v41 = vand.u32 4294901760, %v125_v36  ;;  %v135_v10 = vlaneseq }
  0x2e   :  { %69 = vadd.xlane.f32.xlu0 %v68_v11  ;;  %v267_v32 = vsub.f32 %v122_v27, %v187_v30  ;;  %vm1208_vm7 = vcmask 15360   ;;  %vm1676_vm8 = vcmask 254976  }
  0x2f   :  { %v274_v33 = vsub.f32 %v123_v28, %v190_v31  ;;  %v281_v45 = vsub.f32 %v124_v35, %v193_v40  ;;  %v288_v46 = vsub.f32 %v125_v36, %v196_v41  ;;  %v6033_v58 = vpack.c.bf16 %v190_v31, %v187_v30 }
  0x30   :  { %v268_v38 = vand.u32 4294901760, %v267_v32  ;;  %v6037_v60 = vpack.c.bf16 %v196_v41, %v193_v40 }
  0x31   :  { %84 = vadd.xlane.f32.xlu1 %v83_v16  ;;  %v275_v39 = vand.u32 4294901760, %v274_v33  ;;  %v282_v50 = vand.u32 4294901760, %v281_v45  ;;  %v289_v51 = vand.u32 4294901760, %v288_v46  ;;  %4881 = vmatpush3.bf16.msra.mxu1 %v6033_v58  ;;  %v6044_v62 = vpack.c.bf16 %v274_v33, %v267_v32 }
  0x32   :  { %72 = vadd.xlane.f32.xlu0 %v71_v17  ;;  %v269_v42 = vsub.f32 %v267_v32, %v268_v38  ;;  %4882 = vmatprep.subr.bf16.mxu1 %v5886_v53  ;;  %v6050_v63 = vpack.c.bf16 %v288_v46, %v281_v45  ;;  %v136_v16 = vand.u32 127, %v135_v10 }
  0x33   :  { %v276_v43 = vsub.f32 %v274_v33, %v275_v39  ;;  %v283_v54 = vsub.f32 %v281_v45, %v282_v50  ;;  %v290_v55 = vsub.f32 %v288_v46, %v289_v51  ;;  %v6053_v3 = vpack.c.bf16 %v275_v39, %v268_v38 }
  0x34   :  { %v270_v48 = vand.u32 4294901760, %v269_v42  ;;  %v6055_v7 = vpack.c.bf16 %v289_v51, %v282_v50 }
  0x35   :  { %87 = vadd.xlane.f32.xlu1 %v86_v22  ;;  %v277_v49 = vand.u32 4294901760, %v276_v43  ;;  %v284_v56 = vand.u32 4294901760, %v283_v54  ;;  %v291_v57 = vand.u32 4294901760, %v290_v55  ;;  %4884 = vmatpush3.bf16.msra.mxu1 %v6037_v60  ;;  %v141_v22 = vadd.s32 4294967288, %v136_v16 }
  0x36   :  { %75 = vadd.xlane.f32.xlu0 %v74_v23  ;;  %4915 = vmatprep.subr.bf16.mxu1 %v5886_v53 }
  0x37   :  { %v6027_v52 = vpack.c.bf16 %v277_v49, %v270_v48  ;;  %v6035_v59 = vpack.c.bf16 %v291_v57, %v284_v56 }
  0x39   :  { %102 = vmax.xlane.f32.xlu1 %v101_v24  ;;  %4887 = vmatpush3.bf16.msra.mxu0 %v6027_v52  ;;  %v148_v24 = vadd.s32 4294967280, %v136_v16 }
  0x3a   :  { %99 = vmax.xlane.f32.xlu0 %v98_v25  ;;  %4888 = vmatprep.subr.bf16.mxu0 %v5886_v53  ;;  %v6057_v25 = vshrl.u32 %v135_v10, 7 }
  0x3c   :  { %8528 = vst [vmem:[#allocation11_spill] sm:$0xff] %v6057_v25  ;;  %v6060_v27 = vsub.s32 %v141_v22, %v6057_v25  ;;  %v6063_v31 = vsub.s32 %v148_v24, %v6057_v25  ;;  %v139_v33 = vsub.s32 %v136_v16, %v6057_v25 }
  0x3d   :  { %114 = vmax.xlane.f32.xlu1 %v113_v26  ;;  %4890 = vmatpush3.bf16.msra.mxu0 %v6035_v59 }
  0x3e   :  { %111 = vmax.xlane.f32.xlu0 %v110_v29  ;;  %4891 = vmatprep.subr.bf16.mxu0 %v5886_v53  ;;  %v155_v29 = vadd.s32 4294967272, %v136_v16 }
  0x40   :  { %v158_v40 = vsub.s32 %v155_v29, %v6057_v25  ;;  %v1781_v25 = vld [vmem:[#allocation5 + $0x10] sm:$0xff] }
  0x41   :  { %117 = vmax.xlane.f32.xlu1 %v116_v34 }
  0x42   :  { %105 = vmax.xlane.f32.xlu0 %v104_v37 }
  0x45   :  { %120 = vmax.xlane.f32.xlu1 %v119_v44 }
  0x46   :  { %108 = vmax.xlane.f32.xlu0 %v107_v47 }
  0xb6   :  { %v79_v11 = vpop.xlane.xlu1 %78 }
  0xb7   :  { %v67_v17 = vpop.xlane.xlu0 %66  ;;  %v94_v34 = vmul.f32 0.00390625, %v79_v11 }
  0xb8   :  { %v90_v37 = vmul.f32 0.00390625, %v67_v17 }
  0xb9   :  { %v165_v44 = vrot.slane %v94_v34, %v139_v33 }
  0xba   :  { %v82_v23 = vpop.xlane.xlu1 %81  ;;  %v140_v48 = vrot.slane %v90_v37, %v139_v33 }
  0xbb   :  { %v70_v26 = vpop.xlane.xlu0 %69  ;;  %v95_v28 = vmul.f32 0.00390625, %v82_v23 }
  0xbc   :  { %v91_v30 = vmul.f32 0.00390625, %v70_v26 }
  0xbd   :  { %v169_v39 = vrot.slane %v95_v28, %v6060_v27 }
  0xbe   :  { %v85_v32 = vpop.xlane.xlu1 %84  ;;  %v145_v41 = vrot.slane %v91_v30, %v6060_v27 }
  0xbf   :  { %v96_v35 = vmul.f32 0.00390625, %v85_v32  ;;  %v73_v36 = vpop.xlane.xlu0 %72  ;;  %v170_v50 = vsel %vm146_vm1, %v169_v39, %v165_v44 }
  0xc0   :  { %v92_v38 = vmul.f32 0.00390625, %v73_v36  ;;  %v147_v54 = vsel %vm146_vm1, %v145_v41, %v140_v48 }
  0xc1   :  { %v174_v42 = vrot.slane %v96_v35, %v6063_v31 }
  0xc2   :  { %v88_v43 = vpop.xlane.xlu1 %87  ;;  %v152_v45 = vrot.slane %v92_v38, %v6063_v31 }
  0xc3   :  { %v97_v46 = vmul.f32 0.00390625, %v88_v43  ;;  %v76_v47 = vpop.xlane.xlu0 %75  ;;  %v175_v55 = vsel %vm153_vm2, %v174_v42, %v170_v50 }
  0xc4   :  { %v93_v49 = vmul.f32 0.00390625, %v76_v47  ;;  %v154_v10 = vsel %vm153_vm2, %v152_v45, %v147_v54 }
  0xc5   :  { %v179_v51 = vrot.slane %v97_v46, %v158_v40 }
  0xc6   :  { %v159_v56 = vrot.slane %v93_v49, %v158_v40  ;;  %v103_v57 = vpop.xlane.xlu1 %102 }
  0xc7   :  { %v180_v11 = vsel %vm160_vm3, %v179_v51, %v175_v55  ;;  %v100_v16 = vpop.xlane.xlu0 %99  ;;  %v686_v37 = vrot.slane %v103_v57, %v6060_v27 }
  0xc8   :  { %v161_v17 = vsel %vm160_vm3, %v159_v56, %v154_v10  ;;  %v682_v38 = vrot.slane %v100_v16, %v139_v33 }
  0xc9   :  { %v182_v22 = vsel %vm181_vm4, %v180_v11, %v161_v17 }
  0xca   :  { %v115_v23 = vpop.xlane.xlu1 %114  ;;  %v184_v24 = vsel %vm183_vm5, %v182_v22, 0  ;;  %v687_v48 = vsel %vm146_vm1, %v686_v37, %v682_v38  ;;  %v1736_v37 = vmax.f32 %v5959_v4, %v5969_v9 }
  0xcb   :  { %v112_v26 = vpop.xlane.xlu0 %111  ;;  %v6079_v28 = vand.u32 4294901760, %v184_v24  ;;  %v705_v32 = vrot.slane %v115_v23, %v6060_v27 }
  0xcc   :  { %v701_v34 = vrot.slane %v112_v26, %v139_v33  ;;  %v1686_v26 = vadd.f32 %v5967_v8, %v5955_v2 }
  0xcd   :  { %4737 = vmatmul.mubr.f32.vlgmr.msra.gmra.mrb[0].mxu0 %v6079_v28  ;;  %v256_v29 = vsub.f32 %v184_v24, %v6079_v28  ;;  %v1704_v24 = vadd.f32 %v5961_v5, %v5951_v0 }
  0xce   :  { %4893 = vmatpush3.bf16.msra.mxu0 %v6044_v62  ;;  %v118_v30 = vpop.xlane.xlu1 %117  ;;  %4747 = vmatprep.mubr.msk.f32.mxu0 %vm5887_vm0, %v8154_v61  ;;  %v706_v44 = vsel %vm146_vm1, %v705_v32, %v701_v34  ;;  %v1687_v32 = vadd.f32 %v1686_v26, %v5979_v14  ;;  %v1713_v34 = vadd.f32 %v5963_v6, %v5953_v1 }
  0xcf   :  { %v106_v35 = vpop.xlane.xlu0 %105  ;;  %4894 = vmatprep.subr.bf16.mxu0 %v5886_v53  ;;  %v257_v36 = vand.u32 4294901760, %v256_v29  ;;  %v710_v39 = vrot.slane %v118_v30, %v6063_v31  ;;  %v1727_v30 = vmax.f32 %v5955_v2, %v5967_v8 }
  0xd0   :  { %v691_v41 = vrot.slane %v106_v35, %v6063_v31  ;;  %v1754_v35 = vmax.f32 %v5953_v1, %v5963_v6  ;;  %v1688_v8 = vadd.f32 %v1687_v32, %v5991_v20  ;;  %v1714_v38 = vadd.f32 %v1713_v34, %v5977_v13 }
  0xd1   :  { %v258_v42 = vsub.f32 %v256_v29, %v257_v36  ;;  %v711_v27 = vsel %vm153_vm2, %v710_v39, %v706_v44  ;;  %v1728_v2 = vmax.f32 %v1727_v30, %v5979_v14  ;;  %v1737_v6 = vmax.f32 %v1736_v37, %v5981_v15  ;;  %v1853_v37 = vld [vmem:[#allocation5 + $0x250] sm:$0xff] }
  0xd2   :  { %4896 = vmatpush3.bf16.msra.mxu0 %v6050_v63  ;;  %v121_v43 = vpop.xlane.xlu1 %120  ;;  %v692_v49 = vsel %vm153_vm2, %v691_v41, %v687_v48  ;;  %v1755_v39 = vmax.f32 %v1754_v35, %v5977_v13 }
  0xd3   :  { %v715_v45 = vrot.slane %v121_v43, %v158_v40  ;;  %v109_v46 = vpop.xlane.xlu0 %108  ;;  %v259_v47 = vand.u32 4294901760, %v258_v42  ;;  %4897 = vmatprep.subr.bf16.mxu0 %v5886_v53  ;;  %v1738_v13 = vmax.f32 %v1737_v6, %v5993_v21 }
  0xd4   :  { %v696_v33 = vrot.slane %v109_v46, %v158_v40  ;;  %v1756_v14 = vmax.f32 %v1755_v39, %v5989_v19  ;;  %v1858_v39 = vld [vmem:[#allocation5 + $0x278] sm:$0xff] }
  0xd5   :  { %v716_v31 = vsel %vm160_vm3, %v715_v45, %v711_v27  ;;  %4726 = vmatmul.mubr.f32.vlgmr.msra.gmra.mrb[0].mxu1 %v259_v47  ;;  %4748 = vmatmul.mubr.f32.vlgmr.msra.gmra.mrb[0].mxu0 %v256_v29  ;;  %v1705_v29 = vadd.f32 %v1704_v24, %v5975_v12 }
  0xd6   :  { %v697_v50 = vsel %vm160_vm3, %v696_v33, %v692_v49  ;;  %4899 = vmatpush3.bf16.msra.mxu0 %v6033_v58  ;;  %4917 = vmatpush3.bf16.msra.mxu1 %v6033_v58  ;;  %v1739_v49 = vrot.slane %v1738_v13, 4 }
  0xd7   :  { %v717_v51 = vsel %vm181_vm4, %v716_v31, %v697_v50  ;;  %4900 = vmatprep.subr.bf16.mxu0 %v5886_v53  ;;  %4758 = vmatprep.mubr.msk.f32.mxu0 %vm5887_vm0, %v8154_v61 }
  0xd8   :  { %v718_v40 = vsel %vm183_vm5, %v717_v51, 0  ;;  %4918 = vmatprep.subr.bf16.mxu1 %v5886_v53  ;;  %4791 = vmatprep.mubr.msk.f32.mxu1 %vm5887_vm0, %v8154_v61 }
  0xd9   :  { %v789_v54 = vand.u32 4294901760, %v718_v40 }
  0xda   :  { %4902 = vmatpush3.bf16.msra.mxu0 %v6037_v60  ;;  %4920 = vmatpush3.bf16.msra.mxu1 %v6037_v60 }
  0xdb   :  { %v790_v55 = vsub.f32 %v718_v40, %v789_v54  ;;  %4903 = vmatprep.subr.bf16.mxu0 %v5886_v53  ;;  %4921 = vmatprep.subr.bf16.mxu1 %v5886_v53  ;;  %v1845_v40 = vld [vmem:[#allocation5 + $0x210] sm:$0xff] }
  0xdd   :  { %4759 = vmatmul.mubr.f32.vlgmr.msra.gmra.mrb[0].mxu0 %v257_v36  ;;  %v791_v56 = vand.u32 4294901760, %v790_v55  ;;  %v1695_v36 = vadd.f32 %v5969_v9, %v5959_v4  ;;  %v1689_v4 = vrot.slane %v1688_v8, 4  ;;  %v1729_v9 = vmax.f32 %v1728_v2, %v5991_v20 }
  0xde   :  { %4905 = vmatpush3.bf16.msra.mxu0 %v6053_v3  ;;  %4769 = vmatprep.mubr.msk.f32.mxu0 %vm5887_vm0, %v8154_v61 }
  0xdf   :  { %4906 = vmatprep.subr.bf16.mxu0 %v5886_v53  ;;  %v792_v57 = vsub.f32 %v790_v55, %v791_v56  ;;  %v1696_v1 = vadd.f32 %v1695_v36, %v5981_v15  ;;  %v1690_v46 = vadd.f32 %v1689_v4, %v1688_v8  ;;  %v1730_v47 = vrot.slane %v1729_v9, 4  ;;  %v1851_v36 = vld [vmem:[#allocation5 + $0x240] sm:$0xff] }
  0xe0   :  { %v1757_v15 = vrot.slane %v1756_v14, 4  ;;  %v1855_v4 = vld [vmem:[#allocation5 + $0x260] sm:$0xff] }
  0xe1   :  { %v793_v10 = vand.u32 4294901760, %v792_v57  ;;  %v1697_v45 = vadd.f32 %v1696_v1, %v5993_v21  ;;  %v1691_v31 = vrot.slane %v1690_v46, 2  ;;  %v1731_v20 = vmax.f32 %v1729_v9, %v1730_v47  ;;  %v1848_v57 = vld [vmem:[#allocation5 + $0x228] sm:$0xff] }
  0xe2   :  { %4908 = vmatpush3.bf16.msra.mxu0 %v6055_v7  ;;  %v6216_v51 = vmax.f32 %v1756_v14, %v1757_v15  ;;  %v3209_v14 = vand.u32 4294901760, %v1851_v36  ;;  %v3219_v15 = vand.u32 4294901760, %v1858_v39 }
  0xe3   :  { %4792 = vmatmul.mubr.f32.vlgmr.msra.gmra.mrb[2].mxu1 %v793_v10  ;;  %4909 = vmatprep.subr.bf16.mxu0 %v5886_v53  ;;  %v1850_v10 = vld [vmem:[#allocation5 + $0x238] sm:$0xff] }
  0xe4   :  { %4923 = vmatpush3.bf16.msra.mxu1 %v6027_v52  ;;  %4802 = vmatprep.mubr.msk.f32.mxu1 %vm5887_vm0, %v8154_v61  ;;  %v126_v52 = vld [vmem:[%s8149_s2] sm:$0x3]  ;;  %v6272_v34 = vsub.f32 %v1858_v39, %v3219_v15 }
  0xe5   :  { %4770 = vmatmul.mubr.f32.vlgmr.msra.gmra.mrb[0].mxu0 %v6079_v28  ;;  %4924 = vmatprep.subr.bf16.mxu1 %v5886_v53 }
  0xe6   :  { %4911 = vmatpush3.bf16.msra.mxu0 %v6033_v58  ;;  %4780 = vmatprep.mubr.msk.f32.mxu0 %vm5887_vm0, %v8154_v61  ;;  %8551 = vst [vmem:[#allocation34_spill] sm:$0xff] %v6272_v34 }
  0xe7   :  { %4912 = vmatprep.subr.bf16.mxu0 %v5886_v53 }
  0xe8   :  { %4926 = vmatpush3.bf16.msra.mxu1 %v6035_v59  ;;  %v1214_v59 = vsel %vm1212_vm6, %v126_v52, 0  ;;  %v1847_v52 = vld [vmem:[#allocation5 + $0x220] sm:$0xff] }
  0xe9   :  { %4927 = vmatprep.subr.bf16.mxu1 %v5886_v53 }
  0xea   :  { %4914 = vmatpush3.bf16.msra.mxu0 %v6037_v60 }
  0xeb   :  { %4803 = vmatmul.mubr.f32.vlgmr.msra.gmra.mrb[2].mxu1 %v789_v54  ;;  %4854 = vmatprep.subr.mxu0 %v8154_v61 }
  0xec   :  { %4929 = vmatpush3.bf16.msra.mxu1 %v6044_v62  ;;  %4813 = vmatprep.mubr.msk.f32.mxu1 %vm5887_vm0, %v8154_v61 }
  0xed   :  { %4781 = vmatmul.mubr.f32.vlgmr.msra.gmra.mrb[0].mxu0 %v6079_v28  ;;  %4930 = vmatprep.subr.bf16.mxu1 %v5886_v53  ;;  %v1745_v28 = vmax.f32 %v5951_v0, %v5961_v5  ;;  %v1706_v5 = vadd.f32 %v1705_v29, %v5987_v18  ;;  %v3203_v29 = vand.u32 4294901760, %v1850_v10 }
  0xee   :  { %4856 = vmatprep.mubr.msk.f32.mxu0 %vm5887_vm0, %v8154_v61 }
  0xef   :  { %v1746_v0 = vmax.f32 %v1745_v28, %v5975_v12  ;;  %v1707_v41 = vrot.slane %v1706_v5, 4  ;;  %v1715_v12 = vadd.f32 %v1714_v38, %v5989_v19  ;;  %v1843_v19 = vld [vmem:[#allocation5 + $0x200] sm:$0xff]  ;;  %v3199_v28 = vand.u32 4294901760, %v1848_v57  ;;  %v1856_v38 = vld [vmem:[#allocation5 + $0x268] sm:$0xff] }
  0xf0   :  { %4932 = vmatpush3.bf16.msra.mxu1 %v6050_v63  ;;  %v6246_v47 = vsub.f32 %v1850_v10, %v3203_v29 }
  0xf1   :  { %4933 = vmatprep.subr.bf16.mxu1 %v5886_v53  ;;  %v1747_v42 = vmax.f32 %v1746_v0, %v5987_v18  ;;  %v1708_v43 = vadd.f32 %v1707_v41, %v1706_v5  ;;  %v1716_v48 = vrot.slane %v1715_v12, 4  ;;  %v1698_v18 = vrot.slane %v1697_v45, 4 }
  0xf2   :  { %v3201_v0 = vand.u32 4294901760, %v1847_v52  ;;  %8539 = vst [vmem:[#allocation22_spill] sm:$0xff] %v6246_v47 }
  0xf3   :  { %4814 = vmatmul.mubr.f32.vlgmr.msra.gmra.mrb[2].mxu1 %v790_v55  ;;  %v1748_v44 = vrot.slane %v1747_v42, 4  ;;  %v1709_v27 = vrot.slane %v1708_v43, 2  ;;  %v6214_v50 = vadd.f32 %v1716_v48, %v1715_v12  ;;  %v6220_v21 = vadd.f32 %v1698_v18, %v1697_v45  ;;  %v1860_v45 = vld [vmem:[#allocation5 + $0x288] sm:$0xff] }
  0xf4   :  { %4935 = vmatpush3.bf16.msra.mxu1 %v6033_v58  ;;  %4824 = vmatprep.mubr.msk.f32.mxu1 %vm5887_vm0, %v8154_v61  ;;  %v6242_v12 = vpack.c.bf16 %v3203_v29, %v3199_v28  ;;  %v3215_v48 = vand.u32 4294901760, %v1856_v38 }
  0xf5   :  { %4936 = vmatprep.subr.bf16.mxu1 %v5886_v53  ;;  %v1749_v33 = vmax.f32 %v1747_v42, %v1748_v44  ;;  %v1857_v44 = vld [vmem:[#allocation5 + $0x270] sm:$0xff] }
  0xf6   :  { %8537 = vst [vmem:[#allocation20_spill] sm:$0xff] %v6242_v12  ;;  %v6270_v24 = vsub.f32 %v1856_v38, %v3215_v48 }
  0xf7   :  { %v1750_v55 = vrot.slane %v1749_v33, 2 }
  0xf8   :  { %4938 = vmatpush3.bf16.msra.mxu1 %v6037_v60  ;;  %8550 = vst [vmem:[#allocation33_spill] sm:$0xff] %v6270_v24 }
  0xf9   :  { %4939 = vmatprep.subr.bf16.mxu1 %v5886_v53  ;;  %v6229_v32 = vmax.f32 %v1749_v33, %v1750_v55  ;;  %v6250_v33 = vsub.f32 %v1847_v52, %v3201_v0  ;;  %v3223_v55 = vand.u32 4294901760, %v1860_v45 }
  0xfb   :  { %4825 = vmatmul.mubr.f32.vlgmr.msra.gmra.mrb[2].mxu1 %v791_v56  ;;  %v6222_v56 = vmax.f32 %v1738_v13, %v1739_v49  ;;  %v1862_v13 = vld [vmem:[#allocation5 + $0x298] sm:$0xff]  ;;  %8541 = vst [vmem:[#allocation24_spill] sm:$0xff] %v6250_v33  ;;  %v6282_v35 = vsub.f32 %v1860_v45, %v3223_v55 }
  0xfc   :  { %4941 = vmatpush3.bf16.msra.mxu1 %v6053_v3  ;;  %4835 = vmatprep.mubr.msk.f32.mxu1 %vm5887_vm0, %v8154_v61  ;;  %v1844_v3 = vld [vmem:[#allocation5 + $0x208] sm:$0xff] }
  0xfd   :  { %4942 = vmatprep.subr.bf16.mxu1 %v5886_v53  ;;  %v3191_v11 = vand.u32 4294901760, %v1844_v3  ;;  %8556 = vst [vmem:[#allocation39_spill] sm:$0xff] %v6282_v35 }
  0xff   :  { %v6177_v22 = vsub.f32 %v1844_v3, %v3191_v11  ;;  %v3197_v3 = vand.u32 4294901760, %v1845_v40 }
 0x100   :  { %4944 = vmatpush3.bf16.msra.mxu1 %v6055_v7  ;;  %v1846_v7 = vld [vmem:[#allocation5 + $0x218] sm:$0xff] }
 0x101   :  { %4945 = vmatprep.subr.bf16.mxu1 %v5886_v53  ;;  %v3195_v16 = vand.u32 4294901760, %v1846_v7  ;;  %8530 = vst [vmem:[#allocation13_spill] sm:$0xff] %v6177_v22  ;;  %v6240_v9 = vsub.f32 %v1845_v40, %v3197_v3  ;;  %v3221_v40 = vand.u32 4294901760, %v1857_v44 }
 0x103   :  { %4836 = vmatmul.mubr.f32.vlgmr.msra.gmra.mrb[2].mxu1 %v789_v54  ;;  %v6175_v17 = vpack.c.bf16 %v3195_v16, %v3191_v11  ;;  %v6179_v23 = vsub.f32 %v1846_v7, %v3195_v16  ;;  %v1849_v7 = vld [vmem:[#allocation5 + $0x230] sm:$0xff]  ;;  %v1852_v11 = vld [vmem:[#allocation5 + $0x248] sm:$0xff]  ;;  %v1854_v16 = vld [vmem:[#allocation5 + $0x258] sm:$0xff]  ;;  %8536 = vst [vmem:[#allocation19_spill] sm:$0xff] %v6240_v9 }
 0x104   :  { %4947 = vmatpush3.bf16.msra.mxu1 %v6033_v58  ;;  %4846 = vmatprep.mubr.msk.f32.mxu1 %vm5887_vm0, %v8154_v61  ;;  %v6164_v58 = vand.u32 4294901760, %v1214_v59  ;;  %v3205_v5 = vand.u32 4294901760, %v1849_v7  ;;  %v3207_v2 = vand.u32 4294901760, %v1852_v11  ;;  %v3211_v8 = vand.u32 4294901760, %v1854_v16 }
 0x105   :  { %4948 = vmatprep.subr.bf16.mxu1 %v5886_v53  ;;  %8529 = vst [vmem:[#allocation12_spill] sm:$0xff] %v6175_v17  ;;  %8531 = vst [vmem:[#allocation14_spill] sm:$0xff] %v6179_v23 }
 0x106   :  { %v6167_v62 = vsub.f32 %v1214_v59, %v6164_v58  ;;  %v6224_v59 = vadd.f32 %v1691_v31, %v1690_v46  ;;  %v6244_v46 = vsub.f32 %v1848_v57, %v3199_v28  ;;  %v6252_v18 = vsub.f32 %v1849_v7, %v3205_v5  ;;  %v1859_v31 = vld [vmem:[#allocation5 + $0x280] sm:$0xff]  ;;  %v1864_v57 = vld [vmem:[#allocation5 + $0x2a8] sm:$0xff] }
 0x107   :  { %v6254_v49 = vpack.c.bf16 %v3211_v8, %v3207_v2  ;;  %v6260_v28 = vsub.f32 %v1854_v16, %v3211_v8  ;;  %v6264_v7 = vsub.f32 %v1851_v36, %v3209_v14  ;;  %v3225_v30 = vand.u32 4294901760, %v1859_v31  ;;  %v1782_v8 = vld [vmem:[#allocation5 + $0x18] sm:$0xff] }
 0x108   :  { %4950 = vmatpush3.bf16.msra.mxu1 %v6037_v60  ;;  %v8153_v53 = vand.u32 4294901760, %v6167_v62  ;;  %8533 = vst [vmem:[#allocation16_spill] sm:$0xff] %v6224_v59  ;;  %8538 = vst [vmem:[#allocation21_spill] sm:$0xff] %v6244_v46 }
 0x109   :  { %4849 = vmatprep.subr.mxu1 %v8154_v61  ;;  %8542 = vst [vmem:[#allocation25_spill] sm:$0xff] %v6252_v18  ;;  %8543 = vst [vmem:[#allocation26_spill] sm:$0xff] %v6254_v49 }
 0x10a   :  { %v1296_v60 = vsub.f32 %v6167_v62, %v8153_v53  ;;  %8545 = vst [vmem:[#allocation28_spill] sm:$0xff] %v6260_v28  ;;  %8547 = vst [vmem:[#allocation30_spill] sm:$0xff] %v6264_v7  ;;  %v1863_v53 = vld [vmem:[#allocation5 + $0x2a0] sm:$0xff] }
 0x10b   :  { %4847 = vmatmul.mubr.f32.vlgmr.msra.gmra.mrb[2].mxu1 %v789_v54  ;;  %v6218_v54 = vadd.f32 %v1709_v27, %v1708_v43  ;;  %v3213_v43 = vand.u32 4294901760, %v1853_v37  ;;  %v6248_v27 = vpack.c.bf16 %v3205_v5, %v3201_v0  ;;  %v6268_v5 = vpack.c.bf16 %v3219_v15, %v3215_v48  ;;  %v1779_v15 = vld [vmem:[#allocation5] sm:$0xff] }
 0x10c   :  { %4851 = vmatprep.mubr.msk.f32.mxu1 %vm5887_vm0, %v8154_v61  ;;  %4850 = vmatpush3.msra.mxu1 %v6164_v58  ;;  %v1297_v63 = vand.u32 4294901760, %v1296_v60  ;;  %v1732_v60 = vrot.slane %v1731_v20, 2  ;;  %v3233_v39 = vand.u32 4294901760, %v1863_v53 }
 0x10d   :  { %5336 = vmatprep.subr.bf16.mxu1 %v6175_v17  ;;  %8532 = vst [vmem:[#allocation15_spill] sm:$0xff] %v6218_v54  ;;  %8540 = vst [vmem:[#allocation23_spill] sm:$0xff] %v6248_v27  ;;  %v6262_v52 = vpack.c.bf16 %v3213_v43, %v3209_v14  ;;  %v6266_v0 = vsub.f32 %v1853_v37, %v3213_v43  ;;  %v6278_v37 = vsub.f32 %v1857_v44, %v3221_v40  ;;  %v1868_v43 = vld [vmem:[#allocation5 + $0x2c8] sm:$0xff]  ;;  %v1867_v44 = vld [vmem:[#allocation5 + $0x2c0] sm:$0xff] }
 0x10e   :  { %4855 = vmatpush3.msra.mxu0 %v1297_v63  ;;  %v3193_v63 = vand.u32 4294901760, %v1843_v19  ;;  %v6234_v6 = vmax.f32 %v1731_v20, %v1732_v60  ;;  %v1861_v20 = vld [vmem:[#allocation5 + $0x290] sm:$0xff]  ;;  %v3227_v60 = vand.u32 4294901760, %v1862_v13  ;;  %8549 = vst [vmem:[#allocation32_spill] sm:$0xff] %v6268_v5  ;;  %v6288_v54 = vsub.f32 %v1859_v31, %v3225_v30 }
 0x10f   :  { %4859 = vmatprep.subr.mxu0 %v8154_v61  ;;  %8546 = vst [vmem:[#allocation29_spill] sm:$0xff] %v6262_v52  ;;  %8548 = vst [vmem:[#allocation31_spill] sm:$0xff] %v6266_v0  ;;  %v3229_v1 = vand.u32 4294901760, %v1861_v20  ;;  %v1865_v61 = vld [vmem:[#allocation5 + $0x2b0] sm:$0xff]  ;;  %v3239_v45 = vand.u32 4294901760, %v1868_v43  ;;  %v6300_v31 = vsub.f32 %v1863_v53, %v3233_v39  ;;  %v1783_v53 = vld [vmem:[#allocation5 + $0x20] sm:$0xff] }
 0x110   :  { %v6236_v41 = vpack.c.bf16 %v3197_v3, %v3193_v63  ;;  %v6238_v42 = vsub.f32 %v1843_v19, %v3193_v63  ;;  %v3217_v19 = vand.u32 4294901760, %v1855_v4  ;;  %v1866_v63 = vld [vmem:[#allocation5 + $0x2b8] sm:$0xff]  ;;  %v6258_v3 = vsub.f32 %v1852_v11, %v3207_v2  ;;  %v1780_v2 = vld [vmem:[#allocation5 + $0x8] sm:$0xff]  ;;  %8554 = vst [vmem:[#allocation37_spill] sm:$0xff] %v6278_v37  ;;  %8559 = vst [vmem:[#allocation42_spill] sm:$0xff] %v6288_v54 }
 0x111   :  { %v3231_v11 = vand.u32 4294901760, %v1864_v57  ;;  %v3235_v16 = vand.u32 4294901760, %v1866_v63  ;;  %v6280_v14 = vpack.c.bf16 %v3227_v60, %v3223_v55  ;;  %v6284_v38 = vsub.f32 %v1862_v13, %v3227_v60  ;;  %v1784_v13 = vld [vmem:[#allocation5 + $0x28] sm:$0xff]  ;;  %v1786_v60 = vld [vmem:[#allocation5 + $0x38] sm:$0xff]  ;;  %8565 = vst [vmem:[#allocation48_spill] sm:$0xff] %v6300_v31 }
 0x112   :  { %8534 = vst [vmem:[#allocation17_spill] sm:$0xff] %v6236_v41  ;;  %8535 = vst [vmem:[#allocation18_spill] sm:$0xff] %v6238_v42  ;;  %v6274_v26 = vpack.c.bf16 %v3221_v40, %v3217_v19  ;;  %v6276_v36 = vsub.f32 %v1855_v4, %v3217_v19  ;;  %v3237_v48 = vand.u32 4294901760, %v1865_v61  ;;  %v6286_v17 = vpack.c.bf16 %v3229_v1, %v3225_v30  ;;  %v1869_v40 = vld [vmem:[#allocation5 + $0x2d0] sm:$0xff] }
 0x113   :  { %8544 = vst [vmem:[#allocation27_spill] sm:$0xff] %v6258_v3  ;;  %8555 = vst [vmem:[#allocation38_spill] sm:$0xff] %v6280_v14  ;;  %v1907_v4 = vand.u32 4294901760, %v1780_v2  ;;  %v1911_v19 = vand.u32 4294901760, %v1782_v8  ;;  %v6290_v59 = vsub.f32 %v1861_v20, %v3229_v1  ;;  %v6292_v14 = vpack.c.bf16 %v3235_v16, %v3231_v11  ;;  %v1872_v1 = vld [vmem:[#allocation5 + $0x2e8] sm:$0xff]  ;;  %v1874_v20 = vld [vmem:[#allocation5 + $0x2f8] sm:$0xff] }
 0x114   :  { %8552 = vst [vmem:[#allocation35_spill] sm:$0xff] %v6274_v26  ;;  %8553 = vst [vmem:[#allocation36_spill] sm:$0xff] %v6276_v36  ;;  %v6296_v35 = vsub.f32 %v1866_v63, %v3235_v16  ;;  %v1909_v37 = vand.u32 4294901760, %v1779_v15  ;;  %v6298_v30 = vpack.c.bf16 %v3237_v48, %v3233_v39  ;;  %v3241_v54 = vand.u32 4294901760, %v1867_v44  ;;  %v1785_v39 = vld [vmem:[#allocation5 + $0x30] sm:$0xff] }
 0x115   :  { %8557 = vst [vmem:[#allocation40_spill] sm:$0xff] %v6284_v38  ;;  %8558 = vst [vmem:[#allocation41_spill] sm:$0xff] %v6286_v17  ;;  %v6294_v38 = vsub.f32 %v1864_v57, %v3231_v11  ;;  %v1913_v17 = vand.u32 4294901760, %v1781_v25  ;;  %v3245_v36 = vand.u32 4294901760, %v1869_v40  ;;  %v1915_v26 = vand.u32 4294901760, %v1784_v13 }
 0x116   :  { %8560 = vst [vmem:[#allocation43_spill] sm:$0xff] %v6290_v59  ;;  %8561 = vst [vmem:[#allocation44_spill] sm:$0xff] %v6292_v14  ;;  %v6302_v59 = vsub.f32 %v1865_v61, %v3237_v48  ;;  %v6304_v14 = vpack.c.bf16 %v1911_v19, %v1907_v4  ;;  %v1919_v34 = vand.u32 4294901760, %v1786_v60  ;;  %v6306_v57 = vsub.f32 %v1780_v2, %v1907_v4 }
 0x117   :  { %8562 = vst [vmem:[#allocation45_spill] sm:$0xff] %v6294_v38  ;;  %8563 = vst [vmem:[#allocation46_spill] sm:$0xff] %v6296_v35  ;;  %v6308_v63 = vsub.f32 %v1782_v8, %v1911_v19  ;;  %v6312_v16 = vsub.f32 %v1868_v43, %v3239_v45  ;;  %v6316_v35 = vpack.c.bf16 %v1913_v17, %v1909_v37  ;;  %v3247_v61 = vand.u32 4294901760, %v1872_v1  ;;  %v1873_v38 = vld [vmem:[#allocation5 + $0x2f0] sm:$0xff]  ;;  %v1788_v43 = vld [vmem:[#allocation5 + $0x48] sm:$0xff] }
 0x118   :  { %8564 = vst [vmem:[#allocation47_spill] sm:$0xff] %v6298_v30  ;;  %8566 = vst [vmem:[#allocation49_spill] sm:$0xff] %v6302_v59  ;;  %v3251_v48 = vand.u32 4294901760, %v1874_v20  ;;  %v1871_v59 = vld [vmem:[#allocation5 + $0x2e0] sm:$0xff]  ;;  %v6318_v30 = vsub.f32 %v1779_v15, %v1909_v37  ;;  %v6320_v2 = vsub.f32 %v1781_v25, %v1913_v17  ;;  %v6322_v8 = vpack.c.bf16 %v3245_v36, %v3241_v54  ;;  %v1790_v19 = vld [vmem:[#allocation5 + $0x58] sm:$0xff] }
 0x119   :  { %8567 = vst [vmem:[#allocation50_spill] sm:$0xff] %v6304_v14  ;;  %8568 = vst [vmem:[#allocation51_spill] sm:$0xff] %v6306_v57  ;;  %v6324_v4 = vsub.f32 %v1867_v44, %v3241_v54  ;;  %v6330_v57 = vsub.f32 %v1784_v13, %v1915_v26  ;;  %v6332_v37 = vsub.f32 %v1786_v60, %v1919_v34  ;;  %v3249_v25 = vand.u32 4294901760, %v1871_v59  ;;  %v1787_v15 = vld [vmem:[#allocation5 + $0x40] sm:$0xff] }
 0x11a   :  { %8569 = vst [vmem:[#allocation52_spill] sm:$0xff] %v6308_v63  ;;  %8571 = vst [vmem:[#allocation54_spill] sm:$0xff] %v6312_v16  ;;  %v1876_v16 = vld [vmem:[#allocation5 + $0x308] sm:$0xff]  ;;  %v1878_v63 = vld [vmem:[#allocation5 + $0x318] sm:$0xff]  ;;  %v3253_v17 = vand.u32 4294901760, %v1873_v38  ;;  %v6334_v54 = vpack.c.bf16 %v3251_v48, %v3247_v61  ;;  %v6336_v44 = vsub.f32 %v1872_v1, %v3247_v61 }
 0x11b   :  { %8573 = vst [vmem:[#allocation56_spill] sm:$0xff] %v6316_v35  ;;  %8574 = vst [vmem:[#allocation57_spill] sm:$0xff] %v6318_v30  ;;  %v6338_v30 = vsub.f32 %v1874_v20, %v3251_v48  ;;  %v3259_v13 = vand.u32 4294901760, %v1878_v63  ;;  %v6348_v61 = vsub.f32 %v1871_v59, %v3249_v25  ;;  %v1880_v20 = vld [vmem:[#allocation5 + $0x328] sm:$0xff]  ;;  %v1882_v48 = vld [vmem:[#allocation5 + $0x338] sm:$0xff] }
 0x11c   :  { %8575 = vst [vmem:[#allocation58_spill] sm:$0xff] %v6320_v2  ;;  %8576 = vst [vmem:[#allocation59_spill] sm:$0xff] %v6322_v8  ;;  %v1789_v2 = vld [vmem:[#allocation5 + $0x50] sm:$0xff]  ;;  %v1792_v8 = vld [vmem:[#allocation5 + $0x68] sm:$0xff]  ;;  %v6346_v1 = vpack.c.bf16 %v3253_v17, %v3249_v25 }
 0x11d   :  { %8577 = vst [vmem:[#allocation60_spill] sm:$0xff] %v6324_v4  ;;  %8580 = vst [vmem:[#allocation63_spill] sm:$0xff] %v6330_v57  ;;  %v1877_v4 = vld [vmem:[#allocation5 + $0x310] sm:$0xff]  ;;  %v1929_v57 = vand.u32 4294901760, %v1789_v2 }
 0x11e   :  { %8581 = vst [vmem:[#allocation64_spill] sm:$0xff] %v6332_v37  ;;  %8582 = vst [vmem:[#allocation65_spill] sm:$0xff] %v6334_v54  ;;  %v1925_v37 = vand.u32 4294901760, %v1787_v15  ;;  %v1794_v54 = vld [vmem:[#allocation5 + $0x78] sm:$0xff]  ;;  %v3261_v35 = vand.u32 4294901760, %v1877_v4  ;;  %v1793_v25 = vld [vmem:[#allocation5 + $0x70] sm:$0xff] }
 0x11f   :  { %8583 = vst [vmem:[#allocation66_spill] sm:$0xff] %v6336_v44  ;;  %8584 = vst [vmem:[#allocation67_spill] sm:$0xff] %v6338_v30  ;;  %v1935_v59 = vand.u32 4294901760, %v1794_v54 }
 0x120   :  { %8588 = vst [vmem:[#allocation71_spill] sm:$0xff] %v6346_v1  ;;  %8589 = vst [vmem:[#allocation72_spill] sm:$0xff] %v6348_v61  ;;  %v1931_v1 = vand.u32 4294901760, %v1792_v8  ;;  %v1879_v61 = vld [vmem:[#allocation5 + $0x320] sm:$0xff] }
 0x1a8   :  { %v6256_v10 = vpop.f32.mrb[0].mxu1 }
 0x1a9   :  { %v4727_v29 = vpop.f32.mrb[1].mxu1 }
 0x1aa   :  { %v1870_v29 = vld [vmem:[#allocation5 + $0x2d8] sm:$0xff] }
 0x1ab   :  { %v3243_v55 = vand.u32 4294901760, %v1870_v29 }
 0x1ad   :  { %v6310_v11 = vpack.c.bf16 %v3243_v55, %v3239_v45  ;;  %v6314_v31 = vsub.f32 %v1870_v29, %v3243_v55  ;;  %v6326_v45 = vsub.f32 %v1869_v40, %v3245_v36  ;;  %v6328_v29 = vpack.c.bf16 %v1919_v34, %v1915_v26 }
 0x1ae   :  { %v1917_v55 = vand.u32 4294901760, %v1783_v53  ;;  %v1923_v36 = vand.u32 4294901760, %v1788_v43  ;;  %v1927_v40 = vand.u32 4294901760, %v1790_v19  ;;  %v3255_v26 = vand.u32 4294901760, %v1876_v16 }
 0x1af   :  { %8570 = vst [vmem:[#allocation53_spill] sm:$0xff] %v6310_v11  ;;  %8572 = vst [vmem:[#allocation55_spill] sm:$0xff] %v6314_v31  ;;  %v1921_v31 = vand.u32 4294901760, %v1785_v39  ;;  %v6362_v11 = vsub.f32 %v1878_v63, %v3259_v13  ;;  %v1884_v63 = vld [vmem:[#allocation5 + $0x348] sm:$0xff] }
 0x1b0   :  { %8578 = vst [vmem:[#allocation61_spill] sm:$0xff] %v6326_v45  ;;  %8579 = vst [vmem:[#allocation62_spill] sm:$0xff] %v6328_v29  ;;  %v1875_v45 = vld [vmem:[#allocation5 + $0x300] sm:$0xff]  ;;  %v6340_v29 = vsub.f32 %v1783_v53, %v1917_v55  ;;  %v6350_v53 = vsub.f32 %v1873_v38, %v3253_v17  ;;  %v6360_v30 = vsub.f32 %v1876_v16, %v3255_v26  ;;  %v3263_v17 = vand.u32 4294901760, %v1880_v20  ;;  %v1796_v16 = vld [vmem:[#allocation5 + $0x88] sm:$0xff] }
 0x1b1   :  { %v6342_v34 = vpack.c.bf16 %v1921_v31, %v1917_v55  ;;  %v6344_v60 = vsub.f32 %v1785_v39, %v1921_v31  ;;  %v3257_v44 = vand.u32 4294901760, %v1875_v45  ;;  %v6354_v55 = vsub.f32 %v1788_v43, %v1923_v36  ;;  %v1791_v39 = vld [vmem:[#allocation5 + $0x60] sm:$0xff]  ;;  %8596 = vst [vmem:[#allocation79_spill] sm:$0xff] %v6362_v11 }
 0x1b2   :  { %8585 = vst [vmem:[#allocation68_spill] sm:$0xff] %v6340_v29  ;;  %8590 = vst [vmem:[#allocation73_spill] sm:$0xff] %v6350_v53  ;;  %v6352_v29 = vpack.c.bf16 %v1927_v40, %v1923_v36  ;;  %v6356_v31 = vsub.f32 %v1790_v19, %v1927_v40  ;;  %v6364_v38 = vpack.c.bf16 %v1929_v57, %v1925_v37  ;;  %v3267_v53 = vand.u32 4294901760, %v1882_v48 }
 0x1b3   :  { %8586 = vst [vmem:[#allocation69_spill] sm:$0xff] %v6342_v34  ;;  %8587 = vst [vmem:[#allocation70_spill] sm:$0xff] %v6344_v60  ;;  %v6358_v60 = vpack.c.bf16 %v3259_v13, %v3255_v26  ;;  %v1881_v34 = vld [vmem:[#allocation5 + $0x330] sm:$0xff]  ;;  %v6366_v43 = vsub.f32 %v1787_v15, %v1925_v37  ;;  %v6368_v19 = vsub.f32 %v1789_v2, %v1929_v57  ;;  %v1798_v26 = vld [vmem:[#allocation5 + $0x98] sm:$0xff] }
 0x1b4   :  { %8591 = vst [vmem:[#allocation74_spill] sm:$0xff] %v6352_v29  ;;  %8592 = vst [vmem:[#allocation75_spill] sm:$0xff] %v6354_v55  ;;  %v6370_v36 = vpack.c.bf16 %v3261_v35, %v3257_v44  ;;  %v6372_v40 = vsub.f32 %v1875_v45, %v3257_v44  ;;  %v3265_v55 = vand.u32 4294901760, %v1879_v61  ;;  %v1886_v13 = vld [vmem:[#allocation5 + $0x358] sm:$0xff]  ;;  %v6376_v29 = vpack.c.bf16 %v1935_v59, %v1931_v1 }
 0x1b5   :  { %8593 = vst [vmem:[#allocation76_spill] sm:$0xff] %v6356_v31  ;;  %8594 = vst [vmem:[#allocation77_spill] sm:$0xff] %v6358_v60  ;;  %v1937_v31 = vand.u32 4294901760, %v1793_v25  ;;  %v3269_v60 = vand.u32 4294901760, %v1881_v34  ;;  %v6378_v37 = vsub.f32 %v1792_v8, %v1931_v1  ;;  %v6380_v57 = vsub.f32 %v1794_v54, %v1935_v59  ;;  %v1883_v8 = vld [vmem:[#allocation5 + $0x340] sm:$0xff]  ;;  %v1885_v1 = vld [vmem:[#allocation5 + $0x350] sm:$0xff] }
 0x1b6   :  { %8595 = vst [vmem:[#allocation78_spill] sm:$0xff] %v6360_v30  ;;  %8597 = vst [vmem:[#allocation80_spill] sm:$0xff] %v6364_v38  ;;  %v1933_v30 = vand.u32 4294901760, %v1791_v39  ;;  %v6374_v38 = vsub.f32 %v1877_v4, %v3261_v35  ;;  %v6385_v15 = vpack.c.bf16 %v3267_v53, %v3263_v17  ;;  %v1939_v44 = vand.u32 4294901760, %v1796_v16 }
 0x1b7   :  { %8598 = vst [vmem:[#allocation81_spill] sm:$0xff] %v6366_v43  ;;  %8599 = vst [vmem:[#allocation82_spill] sm:$0xff] %v6368_v19  ;;  %v1795_v19 = vld [vmem:[#allocation5 + $0x80] sm:$0xff]  ;;  %v1797_v43 = vld [vmem:[#allocation5 + $0x90] sm:$0xff]  ;;  %v6389_v35 = vsub.f32 %v1882_v48, %v3267_v53  ;;  %v3271_v4 = vand.u32 4294901760, %v1884_v63 }
 0x1b8   :  { %8600 = vst [vmem:[#allocation83_spill] sm:$0xff] %v6370_v36  ;;  %8601 = vst [vmem:[#allocation84_spill] sm:$0xff] %v6372_v40  ;;  %v1943_v40 = vand.u32 4294901760, %v1798_v26  ;;  %v6387_v36 = vsub.f32 %v1880_v20, %v3263_v17  ;;  %v6391_v54 = vpack.c.bf16 %v1937_v31, %v1933_v30  ;;  %v6393_v59 = vsub.f32 %v1791_v39, %v1933_v30  ;;  %v1888_v17 = vld [vmem:[#allocation5 + $0x368] sm:$0xff] }
 0x1b9   :  { %8602 = vst [vmem:[#allocation85_spill] sm:$0xff] %v6374_v38  ;;  %8603 = vst [vmem:[#allocation86_spill] sm:$0xff] %v6376_v29  ;;  %v3275_v38 = vand.u32 4294901760, %v1886_v13  ;;  %v6401_v20 = vsub.f32 %v1881_v34, %v3269_v60  ;;  %v1941_v48 = vand.u32 4294901760, %v1795_v19  ;;  %v1945_v53 = vand.u32 4294901760, %v1797_v43  ;;  %v1887_v34 = vld [vmem:[#allocation5 + $0x360] sm:$0xff] }
 0x1ba   :  { %8604 = vst [vmem:[#allocation87_spill] sm:$0xff] %v6378_v37  ;;  %8605 = vst [vmem:[#allocation88_spill] sm:$0xff] %v6380_v57  ;;  %v1802_v57 = vld [vmem:[#allocation5 + $0xb8] sm:$0xff]  ;;  %v6399_v37 = vsub.f32 %v1879_v61, %v3265_v55  ;;  %v3273_v30 = vand.u32 4294901760, %v1883_v8  ;;  %v3277_v39 = vand.u32 4294901760, %v1885_v1  ;;  %v3281_v29 = vand.u32 4294901760, %v1887_v34 }
 0x1bb   :  { %8606 = vst [vmem:[#allocation89_spill] sm:$0xff] %v6385_v15  ;;  %8607 = vst [vmem:[#allocation90_spill] sm:$0xff] %v6387_v36  ;;  %v6403_v36 = vpack.c.bf16 %v1943_v40, %v1939_v44  ;;  %v6405_v15 = vsub.f32 %v1796_v16, %v1939_v44  ;;  %v6415_v16 = vpack.c.bf16 %v1945_v53, %v1941_v48 }
 0x1bc   :  { %8608 = vst [vmem:[#allocation91_spill] sm:$0xff] %v6389_v35  ;;  %8609 = vst [vmem:[#allocation92_spill] sm:$0xff] %v6391_v54  ;;  %v1890_v35 = vld [vmem:[#allocation5 + $0x378] sm:$0xff]  ;;  %v6417_v44 = vsub.f32 %v1795_v19, %v1941_v48  ;;  %v1892_v19 = vld [vmem:[#allocation5 + $0x388] sm:$0xff] }
 0x1bd   :  { %8610 = vst [vmem:[#allocation93_spill] sm:$0xff] %v6393_v59  ;;  %8613 = vst [vmem:[#allocation96_spill] sm:$0xff] %v6399_v37  ;;  %v6409_v59 = vpack.c.bf16 %v3275_v38, %v3271_v4  ;;  %v6413_v37 = vsub.f32 %v1886_v13, %v3275_v38  ;;  %v6425_v38 = vsub.f32 %v1885_v1, %v3277_v39  ;;  %v1894_v48 = vld [vmem:[#allocation5 + $0x398] sm:$0xff] }
 0x1be   :  { %8614 = vst [vmem:[#allocation97_spill] sm:$0xff] %v6401_v20  ;;  %8615 = vst [vmem:[#allocation98_spill] sm:$0xff] %v6403_v36  ;;  %v6411_v20 = vsub.f32 %v1884_v63, %v3271_v4  ;;  %v3283_v36 = vand.u32 4294901760, %v1890_v35  ;;  %v6423_v63 = vsub.f32 %v1883_v8, %v3273_v30 }
 0x1bf   :  { %8616 = vst [vmem:[#allocation99_spill] sm:$0xff] %v6405_v15  ;;  %8618 = vst [vmem:[#allocation101_spill] sm:$0xff] %v6409_v59  ;;  %v6421_v59 = vpack.c.bf16 %v3277_v39, %v3273_v30  ;;  %v1893_v39 = vld [vmem:[#allocation5 + $0x390] sm:$0xff] }
 0x1c0   :  { %v667_v11 = vpop.f32.mrb[0].mxu0  ;;  %8619 = vst [vmem:[#allocation102_spill] sm:$0xff] %v6411_v20  ;;  %8620 = vst [vmem:[#allocation103_spill] sm:$0xff] %v6413_v37  ;;  %v1805_v20 = vld [vmem:[#allocation5 + $0xd0] sm:$0xff]  ;;  %v6437_v8 = vsub.f32 %v1890_v35, %v3283_v36  ;;  %v8638_v35 = vrot.slane %v6216_v51, 2 }
 0x1c1   :  { %v6383_v2 = vadd.f32 %v667_v11, %v6256_v10  ;;  %v4782_v45 = vpop.f32.mrb[1].mxu0  ;;  %v6395_v10 = vsub.f32 %v1793_v25, %v1937_v31  ;;  %v6397_v11 = vpack.c.bf16 %v3269_v60, %v3265_v55  ;;  %v1799_v31 = vld [vmem:[#allocation5 + $0xa0] sm:$0xff]  ;;  %v1801_v25 = vld [vmem:[#allocation5 + $0xb0] sm:$0xff]  ;;  %v1951_v55 = vand.u32 4294901760, %v1802_v57  ;;  %8621 = vst [vmem:[#allocation104_spill] sm:$0xff] %v6415_v16  ;;  %8622 = vst [vmem:[#allocation105_spill] sm:$0xff] %v6417_v44 }
 0x1c2   :  { %v1800_v45 = vld [vmem:[#allocation5 + $0xa8] sm:$0xff]  ;;  %v1889_v60 = vld [vmem:[#allocation5 + $0x370] sm:$0xff]  ;;  %v1949_v15 = vand.u32 4294901760, %v1799_v31  ;;  %v1953_v54 = vand.u32 4294901760, %v1801_v25  ;;  %8624 = vst [vmem:[#allocation107_spill] sm:$0xff] %v6421_v59  ;;  %8625 = vst [vmem:[#allocation108_spill] sm:$0xff] %v6423_v63 }
 0x1c3   :  { %8611 = vst [vmem:[#allocation94_spill] sm:$0xff] %v6395_v10  ;;  %8612 = vst [vmem:[#allocation95_spill] sm:$0xff] %v6397_v11  ;;  %v6407_v10 = vsub.f32 %v1798_v26, %v1943_v40  ;;  %v1947_v61 = vand.u32 4294901760, %v1800_v45  ;;  %v3279_v11 = vand.u32 4294901760, %v1888_v17  ;;  %v1804_v40 = vld [vmem:[#allocation5 + $0xc8] sm:$0xff]  ;;  %v1806_v26 = vld [vmem:[#allocation5 + $0xd8] sm:$0xff]  ;;  %v6431_v44 = vsub.f32 %v1802_v57, %v1951_v55 }
 0x1c4   :  { %v3285_v14 = vand.u32 4294901760, %v1889_v60  ;;  %8626 = vst [vmem:[#allocation109_spill] sm:$0xff] %v6425_v38  ;;  %8632 = vst [vmem:[#allocation115_spill] sm:$0xff] %v6437_v8  ;;  %v6439_v1 = vpack.c.bf16 %v1953_v54, %v1949_v15  ;;  %v6441_v30 = vsub.f32 %v1799_v31, %v1949_v15  ;;  %v1961_v63 = vand.u32 4294901760, %v1805_v20 }
 0x1c5   :  { %8617 = vst [vmem:[#allocation100_spill] sm:$0xff] %v6407_v10  ;;  %v6419_v10 = vsub.f32 %v1797_v43, %v1945_v53  ;;  %v6427_v13 = vpack.c.bf16 %v1951_v55, %v1947_v61  ;;  %v6429_v4 = vsub.f32 %v1800_v45, %v1947_v61  ;;  %8629 = vst [vmem:[#allocation112_spill] sm:$0xff] %v6431_v44  ;;  %v1955_v43 = vand.u32 4294901760, %v1804_v40  ;;  %v1891_v45 = vld [vmem:[#allocation5 + $0x380] sm:$0xff] }
 0x1c6   :  { %v6433_v37 = vpack.c.bf16 %v3283_v36, %v3279_v11  ;;  %v1959_v53 = vand.u32 4294901760, %v1806_v26  ;;  %v6435_v59 = vsub.f32 %v1888_v17, %v3279_v11  ;;  %8633 = vst [vmem:[#allocation116_spill] sm:$0xff] %v6439_v1  ;;  %8634 = vst [vmem:[#allocation117_spill] sm:$0xff] %v6441_v30  ;;  %v6443_v61 = vsub.f32 %v1801_v25, %v1953_v54  ;;  %v1898_v1 = vld [vmem:[#allocation5 + $0x3b8] sm:$0xff] }
 0x1c7   :  { %8623 = vst [vmem:[#allocation106_spill] sm:$0xff] %v6419_v10  ;;  %8627 = vst [vmem:[#allocation110_spill] sm:$0xff] %v6427_v13  ;;  %v1803_v10 = vld [vmem:[#allocation5 + $0xc0] sm:$0xff]  ;;  %v6445_v57 = vpack.c.bf16 %v3285_v14, %v3281_v29  ;;  %v3287_v55 = vand.u32 4294901760, %v1892_v19  ;;  %v3291_v44 = vand.u32 4294901760, %v1894_v48  ;;  %v8637_v11 = vrot.slane %v6222_v56, 2 }
 0x1c8   :  { %8628 = vst [vmem:[#allocation111_spill] sm:$0xff] %v6429_v4  ;;  %8630 = vst [vmem:[#allocation113_spill] sm:$0xff] %v6433_v37  ;;  %v1808_v4 = vld [vmem:[#allocation5 + $0xe8] sm:$0xff]  ;;  %v1957_v38 = vand.u32 4294901760, %v1803_v10  ;;  %v1810_v37 = vld [vmem:[#allocation5 + $0xf8] sm:$0xff]  ;;  %v1760_v15 = vmax.f32 %v6216_v51, %v8638_v35  ;;  %v6453_v17 = vsub.f32 %v1887_v34, %v3281_v29  ;;  %v6455_v54 = vsub.f32 %v1889_v60, %v3285_v14 }
 0x1c9   :  { %8631 = vst [vmem:[#allocation114_spill] sm:$0xff] %v6435_v59  ;;  %8635 = vst [vmem:[#allocation118_spill] sm:$0xff] %v6443_v61  ;;  %v1742_v36 = vmax.f32 %v6222_v56, %v8637_v11  ;;  %v3289_v31 = vand.u32 4294901760, %v1891_v45  ;;  %v3293_v25 = vand.u32 4294901760, %v1893_v39  ;;  %v6457_v61 = vpack.c.bf16 %v1959_v53, %v1955_v43  ;;  %v1807_v56 = vld [vmem:[#allocation5 + $0xe0] sm:$0xff]  ;;  %v1809_v29 = vld [vmem:[#allocation5 + $0xf0] sm:$0xff] }
 0x1ca   :  { %8636 = vst [vmem:[#allocation119_spill] sm:$0xff] %v6445_v57  ;;  %8639 = vst [vmem:[#allocation120_spill] sm:$0xff] %v6453_v17  ;;  %v6459_v30 = vsub.f32 %v1804_v40, %v1955_v43  ;;  %v6461_v8 = vsub.f32 %v1806_v26, %v1959_v53  ;;  %v1963_v59 = vand.u32 4294901760, %v1808_v4  ;;  %v1896_v57 = vld [vmem:[#allocation5 + $0x3a8] sm:$0xff]  ;;  %v6463_v11 = vpack.c.bf16 %v3291_v44, %v3287_v55  ;;  %v1895_v34 = vld [vmem:[#allocation5 + $0x3a0] sm:$0xff] }
 0x1cb   :  { %8640 = vst [vmem:[#allocation121_spill] sm:$0xff] %v6455_v54  ;;  %8641 = vst [vmem:[#allocation122_spill] sm:$0xff] %v6457_v61  ;;  %v6465_v13 = vsub.f32 %v1892_v19, %v3287_v55  ;;  %v6467_v51 = vsub.f32 %v1894_v48, %v3291_v44  ;;  %v1967_v14 = vand.u32 4294901760, %v1810_v37  ;;  %v1897_v60 = vld [vmem:[#allocation5 + $0x3b0] sm:$0xff]  ;;  %v6469_v35 = vpack.c.bf16 %v1961_v63, %v1957_v38  ;;  %v1812_v19 = vld [vmem:[#allocation5 + $0x108] sm:$0xff] }
 0x1cc   :  { %8642 = vst [vmem:[#allocation123_spill] sm:$0xff] %v6459_v30  ;;  %8643 = vst [vmem:[#allocation124_spill] sm:$0xff] %v6461_v8  ;;  %v6471_v40 = vsub.f32 %v1803_v10, %v1957_v38  ;;  %v1743_v26 = vrot.slane %v1742_v36, 1  ;;  %v1761_v43 = vrot.slane %v1760_v15, 1  ;;  %v6473_v53 = vsub.f32 %v1805_v20, %v1961_v63 }
 0x1cd   :  { %8644 = vst [vmem:[#allocation125_spill] sm:$0xff] %v6463_v11  ;;  %8645 = vst [vmem:[#allocation126_spill] sm:$0xff] %v6465_v13  ;;  %v6475_v8 = vpack.c.bf16 %v3293_v25, %v3289_v31  ;;  %v3295_v30 = vand.u32 4294901760, %v1896_v57  ;;  %v3299_v54 = vand.u32 4294901760, %v1898_v1  ;;  %v1965_v55 = vand.u32 4294901760, %v1807_v56  ;;  %v1814_v13 = vld [vmem:[#allocation5 + $0x118] sm:$0xff] }
 0x1ce   :  { %8646 = vst [vmem:[#allocation127_spill] sm:$0xff] %v6467_v51  ;;  %8647 = vst [vmem:[#allocation128_spill] sm:$0xff] %v6469_v35  ;;  %v1969_v44 = vand.u32 4294901760, %v1809_v29  ;;  %v3297_v48 = vand.u32 4294901760, %v1895_v34  ;;  %v3301_v51 = vand.u32 4294901760, %v1897_v60  ;;  %v6477_v17 = vsub.f32 %v1891_v45, %v3289_v31  ;;  %v1813_v31 = vld [vmem:[#allocation5 + $0x110] sm:$0xff] }
 0x1cf   :  { %8648 = vst [vmem:[#allocation129_spill] sm:$0xff] %v6471_v40  ;;  %8649 = vst [vmem:[#allocation130_spill] sm:$0xff] %v6473_v53  ;;  %v6479_v11 = vsub.f32 %v1893_v39, %v3293_v25  ;;  %v6481_v10 = vpack.c.bf16 %v1967_v14, %v1963_v59  ;;  %v6483_v38 = vsub.f32 %v1808_v4, %v1963_v59  ;;  %v1971_v63 = vand.u32 4294901760, %v1812_v19  ;;  %v1900_v53 = vld [vmem:[#allocation5 + $0x3c8] sm:$0xff]  ;;  %v1902_v40 = vld [vmem:[#allocation5 + $0x3d8] sm:$0xff] }
 0x1d0   :  { %8650 = vst [vmem:[#allocation131_spill] sm:$0xff] %v6475_v8  ;;  %8651 = vst [vmem:[#allocation132_spill] sm:$0xff] %v6477_v17  ;;  %v6485_v20 = vsub.f32 %v1810_v37, %v1967_v14  ;;  %v1811_v8 = vld [vmem:[#allocation5 + $0x100] sm:$0xff]  ;;  %v1744_v35 = vmax.f32 %v1742_v36, %v1743_v26  ;;  %v1762_v61 = vmax.f32 %v1760_v15, %v1761_v43  ;;  %v1975_v39 = vand.u32 4294901760, %v1814_v13 }
 0x1d1   :  { %8652 = vst [vmem:[#allocation133_spill] sm:$0xff] %v6479_v11  ;;  %8653 = vst [vmem:[#allocation134_spill] sm:$0xff] %v6481_v10  ;;  %v6487_v16 = vpack.c.bf16 %v3299_v54, %v3295_v30  ;;  %v6489_v24 = vsub.f32 %v1896_v57, %v3295_v30  ;;  %v6491_v45 = vsub.f32 %v1898_v1, %v3299_v54  ;;  %v1899_v25 = vld [vmem:[#allocation5 + $0x3c0] sm:$0xff]  ;;  %v1901_v11 = vld [vmem:[#allocation5 + $0x3d0] sm:$0xff]  ;;  %v3303_v15 = vand.u32 4294901760, %v1900_v53 }
 0x1d2   :  { %8654 = vst [vmem:[#allocation135_spill] sm:$0xff] %v6483_v38  ;;  %8655 = vst [vmem:[#allocation136_spill] sm:$0xff] %v6485_v20  ;;  %v6493_v59 = vpack.c.bf16 %v1969_v44, %v1965_v55  ;;  %v6495_v37 = vsub.f32 %v1807_v56, %v1965_v55  ;;  %v6497_v4 = vsub.f32 %v1809_v29, %v1969_v44  ;;  %v3307_v30 = vand.u32 4294901760, %v1902_v40  ;;  %v1816_v1 = vld [vmem:[#allocation5 + $0x128] sm:$0xff]  ;;  %v1818_v54 = vld [vmem:[#allocation5 + $0x138] sm:$0xff] }
 0x1d3   :  { %8656 = vst [vmem:[#allocation137_spill] sm:$0xff] %v6487_v16  ;;  %8657 = vst [vmem:[#allocation138_spill] sm:$0xff] %v6489_v24  ;;  %v6499_v14 = vpack.c.bf16 %v3301_v51, %v3297_v48  ;;  %v6501_v36 = vsub.f32 %v1895_v34, %v3297_v48  ;;  %v1973_v57 = vand.u32 4294901760, %v1811_v8  ;;  %v1977_v26 = vand.u32 4294901760, %v1813_v31 }
 0x1d4   :  { %8658 = vst [vmem:[#allocation139_spill] sm:$0xff] %v6491_v45  ;;  %8659 = vst [vmem:[#allocation140_spill] sm:$0xff] %v6493_v59  ;;  %v3305_v43 = vand.u32 4294901760, %v1899_v25  ;;  %v3309_v45 = vand.u32 4294901760, %v1901_v11  ;;  %v1776_v24 = vsel %vm181_vm4, %v1762_v61, %v1744_v35  ;;  %v6504_v20 = vsub.f32 %v1897_v60, %v3301_v51 }
 0x1d5   :  { %8660 = vst [vmem:[#allocation141_spill] sm:$0xff] %v6495_v37  ;;  %8661 = vst [vmem:[#allocation142_spill] sm:$0xff] %v6497_v4  ;;  %v6506_v56 = vpack.c.bf16 %v1975_v39, %v1971_v63  ;;  %v6508_v29 = vsub.f32 %v1812_v19, %v1971_v63  ;;  %v6510_v55 = vsub.f32 %v1814_v13, %v1975_v39  ;;  %v1979_v34 = vand.u32 4294901760, %v1816_v1  ;;  %v1904_v63 = vld [vmem:[#allocation5 + $0x3e8] sm:$0xff]  ;;  %v1906_v39 = vld [vmem:[#allocation5 + $0x3f8] sm:$0xff] }
 0x1d6   :  { %8662 = vst [vmem:[#allocation143_spill] sm:$0xff] %v6499_v14  ;;  %8663 = vst [vmem:[#allocation144_spill] sm:$0xff] %v6501_v36  ;;  %v1983_v44 = vand.u32 4294901760, %v1818_v54  ;;  %v1734_v48 = vrot.slane %v6234_v6, 1  ;;  %v1752_v36 = vrot.slane %v6229_v32, 1  ;;  %v6514_v4 = vpack.c.bf16 %v3307_v30, %v3303_v15 }
 0x1d7   :  { %8664 = vst [vmem:[#allocation145_spill] sm:$0xff] %v6504_v20  ;;  %8665 = vst [vmem:[#allocation146_spill] sm:$0xff] %v6506_v56  ;;  %v6516_v37 = vsub.f32 %v1900_v53, %v3303_v15  ;;  %v6518_v38 = vsub.f32 %v1902_v40, %v3307_v30  ;;  %v6520_v61 = vand.u32 4294901760, %v1776_v24  ;;  %v6522_v60 = vpack.c.bf16 %v1977_v26, %v1973_v57  ;;  %v1815_v30 = vld [vmem:[#allocation5 + $0x120] sm:$0xff] }
 0x1d8   :  { %8666 = vst [vmem:[#allocation147_spill] sm:$0xff] %v6508_v29  ;;  %8667 = vst [vmem:[#allocation148_spill] sm:$0xff] %v6510_v55  ;;  %v6524_v35 = vsub.f32 %v1811_v8, %v1973_v57  ;;  %v6526_v13 = vsub.f32 %v1813_v31, %v1977_v26  ;;  %v6528_v19 = vpack.c.bf16 %v3309_v45, %v3305_v43  ;;  %v1205_v55 = vmax.f32 %v6383_v2, 0.0  ;;  %v1817_v8 = vld [vmem:[#allocation5 + $0x130] sm:$0xff]  ;;  %v1903_v31 = vld [vmem:[#allocation5 + $0x3e0] sm:$0xff] }
 0x1d9   :  { %8668 = vst [vmem:[#allocation149_spill] sm:$0xff] %v6514_v4  ;;  %8669 = vst [vmem:[#allocation150_spill] sm:$0xff] %v6516_v37  ;;  %v6531_v15 = vsub.f32 %v1899_v25, %v3305_v43  ;;  %v6533_v40 = vsub.f32 %v1901_v11, %v3309_v45  ;;  %v6537_v37 = vsub.f32 %v1816_v1, %v1979_v34  ;;  %v1905_v57 = vld [vmem:[#allocation5 + $0x3f0] sm:$0xff]  ;;  %v3311_v2 = vand.u32 4294901760, %v1904_v63  ;;  %v1822_v25 = vld [vmem:[#allocation5 + $0x158] sm:$0xff] }
 0x1da   :  { %8670 = vst [vmem:[#allocation151_spill] sm:$0xff] %v6518_v38  ;;  %8671 = vst [vmem:[#allocation152_spill] sm:$0xff] %v6520_v61  ;;  %v6535_v38 = vpack.c.bf16 %v1983_v44, %v1979_v34  ;;  %v1735_v26 = vmax.f32 %v6234_v6, %v1734_v48  ;;  %v6542_v11 = vsub.f32 %v1776_v24, %v6520_v61  ;;  %v1981_v43 = vand.u32 4294901760, %v1815_v30 }
 0x1db   :  { %8672 = vst [vmem:[#allocation153_spill] sm:$0xff] %v6522_v60  ;;  %8673 = vst [vmem:[#allocation154_spill] sm:$0xff] %v6524_v35  ;;  %v6544_v45 = vsub.f32 %v1818_v54, %v1983_v44  ;;  %v8682_v1 = vrot.slane %v6220_v21, 2  ;;  %v8683_v6 = vrot.slane %v6214_v50, 2 }
 0x1dc   :  { %8674 = vst [vmem:[#allocation155_spill] sm:$0xff] %v6526_v13  ;;  %8675 = vst [vmem:[#allocation156_spill] sm:$0xff] %v6528_v19  ;;  %v1753_v13 = vmax.f32 %v6229_v32, %v1752_v36  ;;  %v1985_v36 = vand.u32 4294901760, %v1817_v8 }
 0x1dd   :  { %8676 = vst [vmem:[#allocation157_spill] sm:$0xff] %v6531_v15  ;;  %8677 = vst [vmem:[#allocation158_spill] sm:$0xff] %v6533_v40  ;;  %v1701_v34 = vadd.f32 %v8682_v1, %v6220_v21  ;;  %v1719_v48 = vadd.f32 %v8683_v6, %v6214_v50  ;;  %v1991_v40 = vand.u32 4294901760, %v1822_v25 }
 0x1de   :  { %v1201_v51 = vpop.f32.mrb[2].mxu1  ;;  %8678 = vst [vmem:[#allocation159_spill] sm:$0xff] %v6535_v38  ;;  %8679 = vst [vmem:[#allocation160_spill] sm:$0xff] %v6537_v37  ;;  %v1775_v54 = vsel %vm181_vm4, %v1753_v13, %v1735_v26  ;;  %v8687_v13 = vmov 0.0   ;;  %v1821_v26 = vld [vmem:[#allocation5 + $0x150] sm:$0xff] }
 0x1df   :  { %v1206_v29 = vmax.f32 %v1201_v51, 0.0  ;;  %v4848_v53 = vpop.f32.mrb[3].mxu1  ;;  %v3315_v51 = vand.u32 4294901760, %v1906_v39  ;;  %8680 = vst [vmem:[#allocation161_spill] sm:$0xff] %v6542_v11  ;;  %8681 = vst [vmem:[#allocation162_spill] sm:$0xff] %v6544_v45  ;;  %v6558_v45 = vsub.f32 %v1904_v63, %v3311_v2  ;;  %v1702_v6 = vrot.slane %v1701_v34, 1 }
 0x1e0   :  { %v1820_v53 = vld [vmem:[#allocation5 + $0x148] sm:$0xff]  ;;  %v1720_v15 = vrot.slane %v1719_v48, 1  ;;  %v6571_v63 = vpack.c.bf16 %v1985_v36, %v1981_v43 }
 0x1e1   :  { %v1207_v35 = vadd.f32 %v1206_v29, %v1205_v55  ;;  %v3313_v29 = vand.u32 4294901760, %v1903_v31  ;;  %v3317_v55 = vand.u32 4294901760, %v1905_v57  ;;  %v1987_v24 = vand.u32 4294901760, %v1820_v53  ;;  %8685 = vst [vmem:[#allocation164_spill] sm:$0xff] %v6558_v45 }
 0x1e2   :  { %v6556_v44 = vpack.c.bf16 %v3315_v51, %v3311_v2  ;;  %v6560_v21 = vsub.f32 %v1906_v39, %v3315_v51  ;;  %8688 = vst [vmem:[#allocation166_spill] sm:$0xff] %v6571_v63  ;;  %v6573_v39 = vsub.f32 %v1815_v30, %v1981_v43  ;;  %v6576_v2 = vand.u32 4294901760, %v1775_v54  ;;  %v1819_v43 = vld [vmem:[#allocation5 + $0x140] sm:$0xff] }
 0x1e3   :  { %v1210_v32 = vsel %vm1208_vm7, %v1207_v35, 0  ;;  %v6582_v35 = vpack.c.bf16 %v3317_v55, %v3313_v29  ;;  %v6584_v1 = vsub.f32 %v1903_v31, %v3313_v29  ;;  %v8695_v45 = vand.u32 4294901760, %v6542_v11 }
 0x1e4   :  { %v6553_v37 = vand.u32 4294901760, %v1210_v32  ;;  %8684 = vst [vmem:[#allocation163_spill] sm:$0xff] %v6556_v44  ;;  %8686 = vst [vmem:[#allocation165_spill] sm:$0xff] %v6560_v21  ;;  %v6586_v21 = vsub.f32 %v1905_v57, %v3317_v55  ;;  %v1703_v57 = vadd.f32 %v1702_v6, %v1701_v34  ;;  %v1721_v29 = vadd.f32 %v1720_v15, %v1719_v48 }
 0x1e5   :  { %8689 = vst [vmem:[#allocation167_spill] sm:$0xff] %v6573_v39  ;;  %8690 = vst [vmem:[#allocation168_spill] sm:$0xff] %v6576_v2  ;;  %v3322_v30 = vsub.f32 %v6542_v11, %v8695_v45  ;;  %v8697_v55 = vand.u32 4294901760, %v6179_v23  ;;  %v6603_v11 = vsub.f32 %v1775_v54, %v6576_v2  ;;  %v6609_v17 = vsub.f32 %v1820_v53, %v1987_v24 }
 0x1e6   :  { %v6564_v50 = vsub.f32 %v1210_v32, %v6553_v37  ;;  %4857 = vmatmul.mubr.f32.vlgmr.msra.gmra.mrb[2].mxu0 %v6553_v37  ;;  %v6580_v32 = vsub.f32 %v1817_v8, %v1985_v36  ;;  %8692 = vst [vmem:[#allocation170_spill] sm:$0xff] %v6582_v35  ;;  %8693 = vst [vmem:[#allocation171_spill] sm:$0xff] %v6584_v1  ;;  %v8696_v36 = vand.u32 4294901760, %v6177_v22  ;;  %v8701_v15 = vand.u32 4294901760, %v6238_v42 }
 0x1e7   :  { %4860 = vmatpush3.msra.mxu0 %v6167_v62  ;;  %4861 = vmatprep.mubr.msk.f32.mxu0 %vm5887_vm0, %v8687_v13  ;;  %8694 = vst [vmem:[#allocation172_spill] sm:$0xff] %v6586_v21  ;;  %v3351_v45 = vsub.f32 %v6179_v23, %v8697_v55  ;;  %8698 = vst [vmem:[#allocation173_spill] sm:$0xff] %v6603_v11  ;;  %v6607_v1 = vpack.c.bf16 %v1991_v40, %v1987_v24  ;;  %v3323_v34 = vand.u32 4294901760, %v3322_v30  ;;  %v1826_v55 = vld [vmem:[#allocation5 + $0x178] sm:$0xff] }
 0x1e8   :  { %4864 = vmatprep.subr.mxu0 %v8687_v13  ;;  %v8289_v51 = vand.u32 4294901760, %v6564_v50  ;;  %8691 = vst [vmem:[#allocation169_spill] sm:$0xff] %v6580_v32  ;;  %v3339_v31 = vsub.f32 %v6177_v22, %v8696_v36  ;;  %v1993_v32 = vand.u32 4294901760, %v1821_v26  ;;  %8700 = vst [vmem:[#allocation175_spill] sm:$0xff] %v6609_v17  ;;  %v3345_v48 = vsub.f32 %v6238_v42, %v8701_v15  ;;  %v1824_v36 = vld [vmem:[#allocation5 + $0x168] sm:$0xff] }
 0x1e9   :  { %8699 = vst [vmem:[#allocation174_spill] sm:$0xff] %v6607_v1  ;;  %v8702_v6 = vand.u32 4294901760, %v6240_v9  ;;  %v1724_v39 = vmul.f32 0.03125, %v1703_v57  ;;  %v1726_v53 = vmul.f32 0.03125, %v1721_v29  ;;  %v3352_v24 = vand.u32 4294901760, %v3351_v45 }
 0x1ea   :  { %v1285_v8 = vsub.f32 %v6564_v50, %v8289_v51  ;;  %v1989_v51 = vand.u32 4294901760, %v1819_v43  ;;  %v3340_v20 = vand.u32 4294901760, %v3339_v31  ;;  %v8704_v15 = vand.u32 4294901760, %v6244_v46 }
 0x1eb   :  { %v3357_v54 = vsub.f32 %v6240_v9, %v8702_v6  ;;  %v1995_v57 = vand.u32 4294901760, %v1824_v36  ;;  %v1999_v29 = vand.u32 4294901760, %v1826_v55  ;;  %v3346_v30 = vand.u32 4294901760, %v3345_v48  ;;  %v1828_v48 = vld [vmem:[#allocation5 + $0x188] sm:$0xff] }
 0x1ec   :  { %v1286_v21 = vand.u32 4294901760, %v1285_v8  ;;  %v6618_v8 = vsub.f32 %v1822_v25, %v1991_v40  ;;  %v3363_v6 = vsub.f32 %v6244_v46, %v8704_v15  ;;  %v1823_v40 = vld [vmem:[#allocation5 + $0x160] sm:$0xff]  ;;  %v1825_v25 = vld [vmem:[#allocation5 + $0x170] sm:$0xff]  ;;  %v6632_v31 = vpack.c.bf16 %v1993_v32, %v1989_v51 }
 0x1ed   :  { %v6636_v15 = vsub.f32 %v1819_v43, %v1989_v51  ;;  %v2001_v46 = vand.u32 4294901760, %v1825_v25  ;;  %v1768_v9 = vsel %vm181_vm4, %v1726_v53, %v1724_v39  ;;  %v6643_v42 = vpack.c.bf16 %v3352_v24, %v3340_v20  ;;  %v1827_v53 = vld [vmem:[#allocation5 + $0x180] sm:$0xff] }
 0x1ee   :  { %4852 = vmatmul.mubr.f32.vlgmr.msra.gmra.mrb[4].mxu1 %v1286_v21  ;;  %4862 = vmatmul.mubr.f32.vlgmr.msra.gmra.mrb[2].mxu0 %v6564_v50  ;;  %8703 = vst [vmem:[#allocation176_spill] sm:$0xff] %v6618_v8  ;;  %v8705_v21 = vand.u32 4294901760, %v6246_v47  ;;  %8706 = vst [vmem:[#allocation177_spill] sm:$0xff] %v6632_v31  ;;  %v8709_v45 = vand.u32 4294901760, %v6603_v11  ;;  %v3364_v51 = vand.u32 4294901760, %v3363_v6  ;;  %v8712_v39 = vand.u32 4294901760, %v6250_v33 }
 0x1ef   :  { %4865 = vmatpush3.msra.mxu0 %v6164_v58  ;;  %5338 = vmatpush1.bf16.msra.mxu1 %v6236_v41  ;;  %8707 = vst [vmem:[#allocation178_spill] sm:$0xff] %v6636_v15  ;;  %v8310_v41 = vand.u32 4294901760, %v6252_v18  ;;  %v6666_v6 = vand.u32 4294901760, %v1768_v9 }
 0x1f0   :  { %v3375_v2 = vsub.f32 %v6246_v47, %v8705_v21  ;;  %5340 = vmatprep.subr.bf16.mxu1 %v6242_v12  ;;  %4866 = vmatprep.mubr.msk.f32.mxu0 %vm5887_vm0, %v8687_v13  ;;  %v3358_v21 = vand.u32 4294901760, %v3357_v54  ;;  %v6639_v47 = vsub.f32 %v1821_v26, %v1993_v32  ;;  %v1997_v12 = vand.u32 4294901760, %v1823_v40  ;;  %v1830_v54 = vld [vmem:[#allocation5 + $0x198] sm:$0xff] }
 0x1f1   :  { %4869 = vmatprep.subr.mxu0 %v8687_v13  ;;  %3324 = vmatprep.mubr.f32.mxu1 %v3323_v34  ;;  %v6648_v34 = vsub.f32 %v6603_v11, %v8709_v45  ;;  %v6651_v26 = vpack.c.bf16 %v1999_v29, %v1995_v57  ;;  %v6653_v32 = vsub.f32 %v1824_v36, %v1995_v57  ;;  %v8725_v11 = vld [vmem:[#allocation34_spill] sm:$0xff] }
 0x1f2   :  { %8708 = vst [vmem:[#allocation179_spill] sm:$0xff] %v6639_v47  ;;  %v3376_v43 = vand.u32 4294901760, %v3375_v2  ;;  %v3369_v20 = vsub.f32 %v6250_v33, %v8712_v39  ;;  %v6659_v24 = vpack.c.bf16 %v3358_v21, %v3346_v30  ;;  %v6661_v45 = vsub.f32 %v1826_v55, %v1999_v29  ;;  %8714 = vst [vmem:[#allocation183_spill] sm:$0xff] %v6666_v6  ;;  %v1829_v30 = vld [vmem:[#allocation5 + $0x190] sm:$0xff]  ;;  %v1834_v29 = vld [vmem:[#allocation5 + $0x1b8] sm:$0xff] }
 0x1f3   :  { %5342 = vmatpush1.bf16.msra.mxu1 %v6248_v27  ;;  %8710 = vst [vmem:[#allocation180_spill] sm:$0xff] %v6651_v26  ;;  %8711 = vst [vmem:[#allocation181_spill] sm:$0xff] %v6653_v32  ;;  %v3381_v2 = vsub.f32 %v6252_v18, %v8310_v41  ;;  %v6670_v36 = vpack.c.bf16 %v2001_v46, %v1997_v12  ;;  %v6672_v57 = vsub.f32 %v1823_v40, %v1997_v12  ;;  %v8729_v33 = vld [vmem:[#allocation36_spill] sm:$0xff]  ;;  %v8751_v47 = vld [vmem:[#allocation53_spill] sm:$0xff] }
 0x1f4   :  { %5344 = vmatprep.subr.bf16.mxu1 %v6254_v49  ;;  %8713 = vst [vmem:[#allocation182_spill] sm:$0xff] %v6661_v45  ;;  %v8715_v49 = vand.u32 4294901760, %v6564_v50  ;;  %v2003_v39 = vand.u32 4294901760, %v1828_v48  ;;  %v2007_v27 = vand.u32 4294901760, %v1830_v54  ;;  %v8718_v55 = vand.u32 4294901760, %v6167_v62 }
 0x1f5   :  { %8716 = vst [vmem:[#allocation184_spill] sm:$0xff] %v6670_v36  ;;  %8717 = vst [vmem:[#allocation185_spill] sm:$0xff] %v6672_v57  ;;  %v6678_v21 = vpack.c.bf16 %v3376_v43, %v3364_v51  ;;  %v6680_v41 = vsub.f32 %v1825_v25, %v2001_v46  ;;  %v3370_v12 = vand.u32 4294901760, %v3369_v20  ;;  %v8720_v50 = vand.u32 4294901760, %v6258_v3  ;;  %v1832_v43 = vld [vmem:[#allocation5 + $0x1a8] sm:$0xff] }
 0x1f6   :  { %4867 = vmatmul.mubr.f32.vlgmr.msra.gmra.mrb[2].mxu0 %v8715_v49  ;;  %v3382_v46 = vand.u32 4294901760, %v3381_v2  ;;  %v2005_v25 = vand.u32 4294901760, %v1827_v53  ;;  %v2009_v51 = vand.u32 4294901760, %v1829_v30  ;;  %v6693_v49 = vsub.f32 %v1768_v9, %v6666_v6  ;;  %v8730_v9 = vld [vmem:[#allocation37_spill] sm:$0xff] }
 0x1f7   :  { %4870 = vmatpush3.msra.mxu0 %v8718_v55  ;;  %5346 = vmatpush1.bf16.msra.mxu1 %v6262_v52  ;;  %8719 = vst [vmem:[#allocation186_spill] sm:$0xff] %v6680_v41  ;;  %v3387_v62 = vsub.f32 %v6258_v3, %v8720_v50  ;;  %v6697_v20 = vsub.f32 %v1828_v48, %v2003_v39  ;;  %v8724_v52 = vld [vmem:[#allocation33_spill] sm:$0xff]  ;;  %v8726_v3 = vld [vmem:[#allocation35_spill] sm:$0xff]  ;;  %v8728_v2 = vand.u32 4294901760, %v6260_v28  ;;  %v8731_v41 = vld [vmem:[#allocation38_spill] sm:$0xff]  ;;  %v8732_v48 = vand.u32 4294901760, %v6264_v7 }
 0x1f8   :  { %5348 = vmatprep.subr.bf16.mxu1 %v6268_v5  ;;  %4871 = vmatprep.mubr.msk.f32.mxu0 %vm5887_vm0, %v8687_v13  ;;  %8721 = vst [vmem:[#allocation187_spill] sm:$0xff] %v6693_v49  ;;  %v6695_v5 = vpack.c.bf16 %v2007_v27, %v2003_v39  ;;  %v6702_v55 = vsub.f32 %v1830_v54, %v2007_v27  ;;  %v8733_v40 = vand.u32 4294901760, %v6266_v0  ;;  %v2011_v27 = vand.u32 4294901760, %v1832_v43 }
 0x1f9   :  { %4874 = vmatprep.subr.mxu0 %v8687_v13  ;;  %8723 = vst [vmem:[#allocation189_spill] sm:$0xff] %v6697_v20  ;;  %v3399_v18 = vsub.f32 %v6260_v28, %v8728_v2  ;;  %v3393_v39 = vsub.f32 %v6264_v7, %v8732_v48  ;;  %v2015_v54 = vand.u32 4294901760, %v1834_v29  ;;  %v6718_v2 = vpack.c.bf16 %v2009_v51, %v2005_v25 }
 0x1fa   :  { %8722 = vst [vmem:[#allocation188_spill] sm:$0xff] %v6695_v5  ;;  %8727 = vst [vmem:[#allocation190_spill] sm:$0xff] %v6702_v55  ;;  %v3405_v50 = vsub.f32 %v6266_v0, %v8733_v40  ;;  %v3388_v55 = vand.u32 4294901760, %v3387_v62  ;;  %v6722_v22 = vsub.f32 %v1827_v53, %v2005_v25  ;;  %v8737_v48 = vand.u32 4294901760, %v8724_v52  ;;  %v1833_v62 = vld [vmem:[#allocation5 + $0x1b0] sm:$0xff] }
 0x1fb   :  { %5350 = vmatpush1.bf16.msra.mxu1 %v8726_v3  ;;  %v6716_v3 = vpack.c.bf16 %v3382_v46, %v3370_v12  ;;  %8734 = vst [vmem:[#allocation191_spill] sm:$0xff] %v6718_v2  ;;  %v8738_v40 = vand.u32 4294901760, %v8725_v11  ;;  %v1831_v46 = vld [vmem:[#allocation5 + $0x1a0] sm:$0xff]  ;;  %v8739_v0 = vld [vmem:[#allocation41_spill] sm:$0xff]  ;;  %v3400_v23 = vand.u32 4294901760, %v3399_v18  ;;  %v6734_v28 = vsub.f32 %v1832_v43, %v2011_v27 }
 0x1fc   :  { %5352 = vmatprep.subr.bf16.mxu1 %v8731_v41  ;;  %8735 = vst [vmem:[#allocation192_spill] sm:$0xff] %v6722_v22  ;;  %v6724_v41 = vsub.f32 %v1829_v30, %v2009_v51  ;;  %v3411_v7 = vsub.f32 %v8724_v52, %v8737_v48  ;;  %v8741_v53 = vand.u32 4294901760, %v8729_v33  ;;  %v8742_v25 = vand.u32 4294901760, %v8730_v9  ;;  %v1836_v48 = vld [vmem:[#allocation5 + $0x1c8] sm:$0xff]  ;;  %v1838_v52 = vld [vmem:[#allocation5 + $0x1d8] sm:$0xff]  ;;  %v8745_v43 = vld [vmem:[#allocation39_spill] sm:$0xff] }
 0x1fd   :  { %v3423_v12 = vsub.f32 %v8725_v11, %v8738_v40  ;;  %8740 = vst [vmem:[#allocation194_spill] sm:$0xff] %v6734_v28  ;;  %v8743_v40 = vld [vmem:[#allocation44_spill] sm:$0xff]  ;;  %v6745_v18 = vpack.c.bf16 %v2015_v54, %v2011_v27  ;;  %v8746_v28 = vld [vmem:[#allocation50_spill] sm:$0xff]  ;;  %v8748_v20 = vand.u32 4294901760, %v6693_v49  ;;  %v8749_v27 = vld [vmem:[#allocation47_spill] sm:$0xff]  ;;  %v6754_v45 = vpack.c.bf16 %v3400_v23, %v3388_v55 }
 0x1fe   :  { %4872 = vmatmul.mubr.f32.vlgmr.msra.gmra.mrb[2].mxu0 %v6553_v37  ;;  %8736 = vst [vmem:[#allocation193_spill] sm:$0xff] %v6724_v41  ;;  %v3417_v30 = vsub.f32 %v8729_v33, %v8741_v53  ;;  %v3429_v51 = vsub.f32 %v8730_v9, %v8742_v25  ;;  %v2013_v53 = vand.u32 4294901760, %v1831_v46  ;;  %v2017_v33 = vand.u32 4294901760, %v1833_v62  ;;  %v8747_v41 = vld [vmem:[#allocation40_spill] sm:$0xff]  ;;  %v1835_v25 = vld [vmem:[#allocation5 + $0x1c0] sm:$0xff]  ;;  %v1837_v9 = vld [vmem:[#allocation5 + $0x1d0] sm:$0xff] }
 0x1ff   :  { %4875 = vmatpush3.msra.mxu0 %v6164_v58  ;;  %5354 = vmatpush1.bf16.msra.mxu1 %v8739_v0  ;;  %v3394_v58 = vand.u32 4294901760, %v3393_v39  ;;  %v3406_v0 = vand.u32 4294901760, %v3405_v50  ;;  %8744 = vst [vmem:[#allocation195_spill] sm:$0xff] %v6745_v18  ;;  %v3412_v57 = vand.u32 4294901760, %v3411_v7  ;;  %v2019_v39 = vand.u32 4294901760, %v1836_v48 }
 0x200   :  { %5356 = vmatprep.subr.bf16.mxu1 %v8743_v40  ;;  %4876 = vmatprep.mubr.msk.f32.mxu0 %vm5887_vm0, %v8687_v13  ;;  %v2038_v40 = vsub.f32 %v6693_v49, %v8748_v20  ;;  %v3424_v13 = vand.u32 4294901760, %v3423_v12  ;;  %v2023_v50 = vand.u32 4294901760, %v1838_v52  ;;  %v6756_v11 = vsub.f32 %v1834_v29, %v2015_v54 }
 0x201   :  { %4952 = vmatprep.subr.bf16.mxu0 %v8746_v28  ;;  %v3418_v28 = vand.u32 4294901760, %v3417_v30  ;;  %v3430_v32 = vand.u32 4294901760, %v3429_v51  ;;  %v6759_v22 = vpack.c.bf16 %v3406_v0, %v3394_v58  ;;  %v8752_v15 = vand.u32 4294901760, %v8745_v43  ;;  %v8760_v51 = vld [vmem:[#allocation56_spill] sm:$0xff]  ;;  %v8761_v58 = vld [vmem:[#allocation59_spill] sm:$0xff] }
 0x202   :  { %8750 = vst [vmem:[#allocation196_spill] sm:$0xff] %v6756_v11  ;;  %v2021_v7 = vand.u32 4294901760, %v1835_v25  ;;  %v2025_v12 = vand.u32 4294901760, %v1837_v9  ;;  %v6764_v49 = vpack.c.bf16 %v2017_v33, %v2013_v53  ;;  %v6766_v8 = vsub.f32 %v1831_v46, %v2013_v53  ;;  %v1841_v11 = vld [vmem:[#allocation5 + $0x1f0] sm:$0xff] }
 0x203   :  { %5358 = vmatpush1.bf16.msra.mxu1 %v8749_v27  ;;  %v3435_v20 = vsub.f32 %v8745_v43, %v8752_v15  ;;  %v8755_v23 = vand.u32 4294901760, %v8747_v41  ;;  %v2039_v55 = vand.u32 4294901760, %v2038_v40  ;;  %v6772_v54 = vpack.c.bf16 %v3424_v13, %v3412_v57  ;;  %v8765_v40 = vld [vmem:[#allocation42_spill] sm:$0xff]  ;;  %v8778_v27 = vld [vmem:[#allocation49_spill] sm:$0xff]  ;;  %v8779_v43 = vld [vmem:[#allocation51_spill] sm:$0xff] }
 0x204   :  { %5360 = vmatprep.subr.bf16.mxu1 %v8751_v47  ;;  %8753 = vst [vmem:[#allocation197_spill] sm:$0xff] %v6764_v49  ;;  %8754 = vst [vmem:[#allocation198_spill] sm:$0xff] %v6766_v8  ;;  %v6774_v0 = vsub.f32 %v1833_v62, %v2017_v33  ;;  %v6776_v30 = vpack.c.bf16 %v2023_v50, %v2019_v39  ;;  %v6778_v15 = vsub.f32 %v1836_v48, %v2019_v39  ;;  %v8766_v57 = vld [vmem:[#allocation62_spill] sm:$0xff]  ;;  %v8767_v33 = vld [vmem:[#allocation65_spill] sm:$0xff] }
 0x205   :  { %v3447_v29 = vsub.f32 %v8747_v41, %v8755_v23  ;;  %8756 = vst [vmem:[#allocation199_spill] sm:$0xff] %v6772_v54  ;;  %v6782_v46 = vpack.c.bf16 %v3430_v32, %v3418_v28  ;;  %v6784_v53 = vsub.f32 %v1838_v52, %v2023_v50  ;;  %v6786_v23 = vsub.f32 %v1835_v25, %v2021_v7  ;;  %v8770_v39 = vld [vmem:[#allocation43_spill] sm:$0xff]  ;;  %v1840_v28 = vld [vmem:[#allocation5 + $0x1e8] sm:$0xff]  ;;  %v6796_v32 = vld [vmem:[#allocation5 + $0x1f8] sm:$0xff] }
 0x206   :  { %4877 = vmatmul.mubr.f32.vlgmr.msra.gmra.mrb[2].mxu0 %v6553_v37  ;;  %8757 = vst [vmem:[#allocation200_spill] sm:$0xff] %v6774_v0  ;;  %8758 = vst [vmem:[#allocation201_spill] sm:$0xff] %v6776_v30  ;;  %v3436_v62 = vand.u32 4294901760, %v3435_v20  ;;  %v6791_v13 = vpack.c.bf16 %v2025_v12, %v2021_v7  ;;  %v6793_v48 = vsub.f32 %v1837_v9, %v2025_v12  ;;  %v8771_v52 = vld [vmem:[#allocation45_spill] sm:$0xff]  ;;  %v6799_v50 = vld [vmem:[#allocation5 + $0x1e0] sm:$0xff]  ;;  %v8793_v17 = vand.u32 4294901760, %v8778_v27 }
 0x207   :  { %8759 = vst [vmem:[#allocation202_spill] sm:$0xff] %v6778_v15  ;;  %4954 = vmatpush1.bf16.msra.mxu0 %v8760_v51  ;;  %5362 = vmatpush1.bf16.msra.mxu1 %v8761_v58  ;;  %8762 = vst [vmem:[#allocation203_spill] sm:$0xff] %v6782_v46  ;;  %v3448_v58 = vand.u32 4294901760, %v3447_v29  ;;  %v8772_v37 = vld [vmem:[#allocation16_spill] sm:$0xff]  ;;  %v8774_v20 = vld [vmem:[#allocation15_spill] sm:$0xff]  ;;  %v2029_v8 = vand.u32 4294901760, %v6799_v50 }
 0x208   :  { %8763 = vst [vmem:[#allocation204_spill] sm:$0xff] %v6784_v53  ;;  %8764 = vst [vmem:[#allocation205_spill] sm:$0xff] %v6786_v23  ;;  %4956 = vmatprep.subr.bf16.mxu0 %v8766_v57  ;;  %5364 = vmatprep.subr.bf16.mxu1 %v8767_v33  ;;  %v8773_v57 = vrot.slane %v8772_v37, 1  ;;  %v8775_v7 = vrot.slane %v8774_v20, 1  ;;  %v8776_v12 = vld [vmem:[#allocation46_spill] sm:$0xff]  ;;  %v8777_v51 = vld [vmem:[#allocation48_spill] sm:$0xff] }
 0x209   :  { %8768 = vst [vmem:[#allocation206_spill] sm:$0xff] %v6791_v13  ;;  %8769 = vst [vmem:[#allocation207_spill] sm:$0xff] %v6793_v48  ;;  %2040 = vmatprep.mubr.f32.mxu0 %v2039_v55  ;;  %v8780_v25 = vld [vmem:[#allocation69_spill] sm:$0xff]  ;;  %v8781_v23 = vld [vmem:[#allocation71_spill] sm:$0xff]  ;;  %v8782_v55 = vand.u32 4294901760, %v8765_v40  ;;  %v8788_v48 = vand.u32 4294901760, %v8770_v39 }
 0x20a   :  { %v1694_v33 = vadd.f32 %v8773_v57, %v8772_v37  ;;  %v1712_v9 = vadd.f32 %v8775_v7, %v8774_v20  ;;  %v8783_v57 = vld [vmem:[#allocation52_spill] sm:$0xff]  ;;  %v8784_v15 = vld [vmem:[#allocation54_spill] sm:$0xff]  ;;  %v8785_v7 = vld [vmem:[#allocation55_spill] sm:$0xff]  ;;  %v8790_v53 = vand.u32 4294901760, %v8771_v52  ;;  %v2033_v30 = vand.u32 4294901760, %v1841_v11 }
 0x20b   :  { %4958 = vmatpush1.bf16.msra.mxu0 %v8780_v25  ;;  %5366 = vmatpush1.bf16.msra.mxu1 %v8781_v23  ;;  %v3441_v37 = vsub.f32 %v8765_v40, %v8782_v55  ;;  %v8786_v0 = vld [vmem:[#allocation74_spill] sm:$0xff]  ;;  %v8787_v29 = vld [vmem:[#allocation77_spill] sm:$0xff]  ;;  %v3453_v41 = vsub.f32 %v8770_v39, %v8788_v48  ;;  %v2027_v25 = vand.u32 4294901760, %v1840_v28  ;;  %v2031_v23 = vand.u32 4294901760, %v6796_v32  ;;  %v8806_v54 = vld [vmem:[#allocation92_spill] sm:$0xff] }
 0x20c   :  { %4960 = vmatprep.subr.bf16.mxu0 %v8786_v0  ;;  %5368 = vmatprep.subr.bf16.mxu1 %v8787_v29  ;;  %v6826_v55 = vpack.c.bf16 %v3448_v58, %v3436_v62  ;;  %v3459_v20 = vsub.f32 %v8771_v52, %v8790_v53  ;;  %v1723_v47 = vmul.f32 0.03125, %v1694_v33  ;;  %v1725_v40 = vmul.f32 0.03125, %v1712_v9  ;;  %v8795_v53 = vld [vmem:[#allocation80_spill] sm:$0xff]  ;;  %v8796_v33 = vld [vmem:[#allocation83_spill] sm:$0xff]  ;;  %v8801_v13 = vld [vmem:[#allocation86_spill] sm:$0xff] }
 0x20d   :  { %v8791_v0 = vand.u32 4294901760, %v8776_v12  ;;  %v8792_v48 = vand.u32 4294901760, %v8777_v51  ;;  %v3477_v58 = vsub.f32 %v8778_v27, %v8793_v17  ;;  %v8794_v62 = vand.u32 4294901760, %v8779_v43  ;;  %v8800_v27 = vld [vmem:[#allocation57_spill] sm:$0xff] }
 0x20e   :  { %8789 = vst [vmem:[#allocation16_spill] sm:$0xff] %v6826_v55  ;;  %v8797_v9 = vand.u32 4294901760, %v8783_v57  ;;  %v8804_v55 = vld [vmem:[#allocation58_spill] sm:$0xff] }
 0x20f   :  { %v3471_v29 = vsub.f32 %v8776_v12, %v8791_v0  ;;  %v3465_v39 = vsub.f32 %v8777_v51, %v8792_v48  ;;  %v2055_v6 = vsub.f32 %v8779_v43, %v8794_v62  ;;  %4962 = vmatpush1.bf16.msra.mxu0 %v8795_v53  ;;  %5370 = vmatpush1.bf16.msra.mxu1 %v8796_v33  ;;  %v8798_v12 = vand.u32 4294901760, %v8784_v15  ;;  %v8802_v62 = vld [vmem:[#allocation89_spill] sm:$0xff] }
 0x210   :  { %v2067_v0 = vsub.f32 %v8783_v57, %v8797_v9  ;;  %v8799_v51 = vand.u32 4294901760, %v8785_v7  ;;  %4964 = vmatprep.subr.bf16.mxu0 %v8801_v13  ;;  %5372 = vmatprep.subr.bf16.mxu1 %v8802_v62  ;;  %v3442_v53 = vand.u32 4294901760, %v3441_v37  ;;  %v3454_v33 = vand.u32 4294901760, %v3453_v41  ;;  %v8807_v13 = vld [vmem:[#allocation95_spill] sm:$0xff]  ;;  %v8809_v9 = vld [vmem:[#allocation98_spill] sm:$0xff] }
 0x211   :  { %v3483_v48 = vsub.f32 %v8784_v15, %v8798_v12  ;;  %v6857_v43 = vpack.c.bf16 %v2031_v23, %v2027_v25  ;;  %v3460_v57 = vand.u32 4294901760, %v3459_v20  ;;  %v1767_v12 = vsel %vm181_vm4, %v1725_v40, %v1723_v47  ;;  %v8805_v15 = vld [vmem:[#allocation60_spill] sm:$0xff]  ;;  %v8810_v47 = vld [vmem:[#allocation101_spill] sm:$0xff] }
 0x212   :  { %v3495_v17 = vsub.f32 %v8785_v7, %v8799_v51  ;;  %v8377_v46 = vand.u32 4294901760, %v8805_v15  ;;  %v3472_v49 = vand.u32 4294901760, %v3471_v29  ;;  %v3466_v51 = vand.u32 4294901760, %v3465_v39 }
 0x213   :  { %8803 = vst [vmem:[#allocation15_spill] sm:$0xff] %v6857_v43  ;;  %v3478_v7 = vand.u32 4294901760, %v3477_v58  ;;  %v2056_v52 = vand.u32 4294901760, %v2055_v6  ;;  %4966 = vmatpush1.bf16.msra.mxu0 %v8806_v54  ;;  %5374 = vmatpush1.bf16.msra.mxu1 %v8807_v13  ;;  %v2068_v37 = vand.u32 4294901760, %v2067_v0  ;;  %v3484_v41 = vand.u32 4294901760, %v3483_v48  ;;  %v8814_v58 = vld [vmem:[#allocation61_spill] sm:$0xff] }
 0x214   :  { %v3496_v62 = vand.u32 4294901760, %v3495_v17  ;;  %v8808_v43 = vand.u32 4294901760, %v8800_v27  ;;  %4968 = vmatprep.subr.bf16.mxu0 %v8809_v9  ;;  %5376 = vmatprep.subr.bf16.mxu1 %v8810_v47  ;;  %v6871_v40 = vsub.f32 %v1840_v28, %v2027_v25  ;;  %v6873_v39 = vand.u32 4294901760, %v1767_v12  ;;  %v8843_v13 = vld [vmem:[#allocation125_spill] sm:$0xff] }
 0x215   :  { %v8813_v6 = vand.u32 4294901760, %v8804_v55  ;;  %v6881_v48 = vpack.c.bf16 %v3454_v33, %v3442_v53  ;;  %v6887_v17 = vsub.f32 %v6799_v50, %v2029_v8  ;;  %v6892_v28 = vsub.f32 %v8805_v15, %v8377_v46  ;;  %v8819_v53 = vld [vmem:[#allocation104_spill] sm:$0xff]  ;;  %v8823_v46 = vld [vmem:[#allocation63_spill] sm:$0xff] }
 0x216   :  { %v6867_v20 = vsub.f32 %v8800_v27, %v8808_v43  ;;  %8811 = vst [vmem:[#allocation208_spill] sm:$0xff] %v6871_v40  ;;  %8812 = vst [vmem:[#allocation209_spill] sm:$0xff] %v6873_v39  ;;  %v6884_v43 = vsub.f32 %v6796_v32, %v2031_v23  ;;  %v6894_v25 = vpack.c.bf16 %v3472_v49, %v3460_v57  ;;  %v8820_v23 = vld [vmem:[#allocation107_spill] sm:$0xff]  ;;  %v8824_v49 = vld [vmem:[#allocation110_spill] sm:$0xff]  ;;  %v8827_v57 = vand.u32 4294901760, %v8814_v58 }
 0x217   :  { %v6878_v29 = vsub.f32 %v8804_v55, %v8813_v6  ;;  %8816 = vst [vmem:[#allocation211_spill] sm:$0xff] %v6887_v17  ;;  %v6896_v47 = vpack.c.bf16 %v2033_v30, %v2029_v8  ;;  %v6898_v6 = vsub.f32 %v1841_v11, %v2033_v30  ;;  %v6900_v0 = vpack.c.bf16 %v3478_v7, %v3466_v51  ;;  %v8825_v8 = vld [vmem:[#allocation113_spill] sm:$0xff]  ;;  %v8828_v7 = vld [vmem:[#allocation64_spill] sm:$0xff]  ;;  %v8830_v33 = vld [vmem:[#allocation67_spill] sm:$0xff] }
 0x218   :  { %8815 = vst [vmem:[#allocation210_spill] sm:$0xff] %v6884_v43  ;;  %4970 = vmatpush1.bf16.msra.mxu0 %v8819_v53  ;;  %5378 = vmatpush1.bf16.msra.mxu1 %v8820_v23  ;;  %v6904_v32 = vpack.c.bf16 %v2068_v37, %v2056_v52  ;;  %v6906_v50 = vpack.c.bf16 %v3496_v62, %v3484_v41  ;;  %v8829_v37 = vld [vmem:[#allocation66_spill] sm:$0xff]  ;;  %v8833_v53 = vld [vmem:[#allocation72_spill] sm:$0xff]  ;;  %v8834_v30 = vld [vmem:[#allocation73_spill] sm:$0xff]  ;;  %v8838_v51 = vand.u32 4294901760, %v8823_v46  ;;  %v8844_v54 = vand.u32 4294901760, %v8828_v7 }
 0x219   :  { %8817 = vst [vmem:[#allocation212_spill] sm:$0xff] %v6896_v47  ;;  %8818 = vst [vmem:[#allocation213_spill] sm:$0xff] %v6898_v6  ;;  %4972 = vmatprep.subr.bf16.mxu0 %v8824_v49  ;;  %5380 = vmatprep.subr.bf16.mxu1 %v8825_v8  ;;  %v6913_v11 = vsub.f32 %v1767_v12, %v6873_v39  ;;  %v6919_v52 = vsub.f32 %v8814_v58, %v8827_v57  ;;  %v8831_v49 = vld [vmem:[#allocation68_spill] sm:$0xff]  ;;  %v8832_v23 = vld [vmem:[#allocation70_spill] sm:$0xff]  ;;  %v8847_v8 = vand.u32 4294901760, %v8829_v37 }
 0x21a   :  { %8821 = vst [vmem:[#allocation214_spill] sm:$0xff] %v6904_v32  ;;  %8822 = vst [vmem:[#allocation215_spill] sm:$0xff] %v6906_v50  ;;  %v8835_v39 = vld [vmem:[#allocation75_spill] sm:$0xff]  ;;  %v8836_v57 = vld [vmem:[#allocation116_spill] sm:$0xff]  ;;  %v2079_v41 = vsub.f32 %v8823_v46, %v8838_v51  ;;  %v8849_v15 = vand.u32 4294901760, %v8831_v49  ;;  %v8851_v51 = vand.u32 4294901760, %v8833_v53 }
 0x21b   :  { %8826 = vst [vmem:[#allocation216_spill] sm:$0xff] %v6913_v11  ;;  %v8837_v58 = vld [vmem:[#allocation119_spill] sm:$0xff]  ;;  %v8839_v62 = vld [vmem:[#allocation76_spill] sm:$0xff]  ;;  %v8840_v55 = vld [vmem:[#allocation78_spill] sm:$0xff]  ;;  %v3502_v9 = vand.u32 4294901760, %v6919_v52  ;;  %v3507_v12 = vsub.f32 %v8829_v37, %v8847_v8  ;;  %v8853_v37 = vand.u32 4294901760, %v8835_v39 }
 0x21c   :  { %4974 = vmatpush1.bf16.msra.mxu0 %v8836_v57  ;;  %5382 = vmatpush1.bf16.msra.mxu1 %v8837_v58  ;;  %v8841_v27 = vld [vmem:[#allocation79_spill] sm:$0xff]  ;;  %v8842_v6 = vld [vmem:[#allocation122_spill] sm:$0xff]  ;;  %v2091_v58 = vsub.f32 %v8828_v7, %v8844_v54  ;;  %v8845_v57 = vld [vmem:[#allocation81_spill] sm:$0xff]  ;;  %v2085_v46 = vsub.f32 %v8831_v49, %v8849_v15  ;;  %v8850_v54 = vand.u32 4294901760, %v8832_v23  ;;  %v3513_v52 = vsub.f32 %v8833_v53, %v8851_v51 }
 0x21d   :  { %4976 = vmatprep.subr.bf16.mxu0 %v8842_v6  ;;  %5384 = vmatprep.subr.bf16.mxu1 %v8843_v13  ;;  %v8846_v43 = vld [vmem:[#allocation82_spill] sm:$0xff]  ;;  %v8848_v6 = vand.u32 4294901760, %v8830_v33  ;;  %v8852_v7 = vand.u32 4294901760, %v8834_v30  ;;  %v8855_v40 = vld [vmem:[#allocation131_spill] sm:$0xff]  ;;  %v2080_v15 = vand.u32 4294901760, %v2079_v41  ;;  %v8856_v49 = vand.u32 4294901760, %v8839_v62 }
 0x21e   :  { %v2097_v17 = vsub.f32 %v8832_v23, %v8850_v54  ;;  %v8857_v23 = vand.u32 4294901760, %v8840_v55  ;;  %v8858_v53 = vand.u32 4294901760, %v8841_v27  ;;  %v3514_v32 = vand.u32 4294901760, %v3513_v52 }
 0x21f   :  { %v3519_v13 = vsub.f32 %v8830_v33, %v8848_v6  ;;  %v3525_v8 = vsub.f32 %v8834_v30, %v8852_v7  ;;  %v2103_v6 = vsub.f32 %v8835_v39, %v8853_v37  ;;  %v8854_v33 = vld [vmem:[#allocation128_spill] sm:$0xff]  ;;  %v2115_v54 = vsub.f32 %v8839_v62, %v8856_v49  ;;  %v8863_v39 = vld [vmem:[#allocation85_spill] sm:$0xff] }
 0x220   :  { %4978 = vmatpush1.bf16.msra.mxu0 %v8854_v33  ;;  %5386 = vmatpush1.bf16.msra.mxu1 %v8855_v40  ;;  %v3531_v51 = vsub.f32 %v8840_v55, %v8857_v23  ;;  %v3543_v7 = vsub.f32 %v8841_v27, %v8858_v53  ;;  %v8859_v37 = vand.u32 4294901760, %v6913_v11  ;;  %v2092_v40 = vand.u32 4294901760, %v2091_v58  ;;  %v8862_v27 = vld [vmem:[#allocation84_spill] sm:$0xff] }
 0x221   :  { %4980 = vmatprep.subr.bf16.mxu0 %v6481_v10  ;;  %5388 = vmatprep.subr.bf16.mxu1 %v6487_v16  ;;  %v8860_v49 = vand.u32 4294901760, %v8845_v57  ;;  %v8861_v23 = vand.u32 4294901760, %v8846_v43  ;;  %v3508_v62 = vand.u32 4294901760, %v3507_v12  ;;  %v3520_v53 = vand.u32 4294901760, %v3519_v13 }
 0x222   :  { %v6984_v41 = vsub.f32 %v6913_v11, %v8859_v37  ;;  %v2086_v30 = vand.u32 4294901760, %v2085_v46  ;;  %v2098_v50 = vand.u32 4294901760, %v2097_v17  ;;  %v3526_v37 = vand.u32 4294901760, %v3525_v8  ;;  %v8865_v46 = vld [vmem:[#allocation88_spill] sm:$0xff] }
 0x223   :  { %v2109_v33 = vsub.f32 %v8845_v57, %v8860_v49  ;;  %v2121_v55 = vsub.f32 %v8846_v43, %v8861_v23  ;;  %v2104_v58 = vand.u32 4294901760, %v2103_v6  ;;  %v2116_v49 = vand.u32 4294901760, %v2115_v54  ;;  %v8864_v23 = vld [vmem:[#allocation87_spill] sm:$0xff] }
 0x224   :  { %4982 = vmatpush1.bf16.msra.mxu0 %v6493_v59  ;;  %5390 = vmatpush1.bf16.msra.mxu1 %v6499_v14  ;;  %v3532_v11 = vand.u32 4294901760, %v3531_v51  ;;  %v3544_v57 = vand.u32 4294901760, %v3543_v7  ;;  %v8866_v52 = vand.u32 4294901760, %v6867_v20  ;;  %v8867_v8 = vand.u32 4294901760, %v6878_v29  ;;  %v8872_v7 = vld [vmem:[#allocation91_spill] sm:$0xff] }
 0x225   :  { %4984 = vmatprep.subr.bf16.mxu0 %v6506_v56  ;;  %5392 = vmatprep.subr.bf16.mxu1 %v6514_v4  ;;  %v2110_v13 = vand.u32 4294901760, %v2109_v33  ;;  %v2122_v12 = vand.u32 4294901760, %v2121_v55  ;;  %v8868_v6 = vand.u32 4294901760, %v8862_v27  ;;  %v8869_v51 = vand.u32 4294901760, %v8863_v39  ;;  %v8870_v55 = vld [vmem:[#allocation90_spill] sm:$0xff]  ;;  %v8888_v4 = vld [vmem:[#allocation108_spill] sm:$0xff] }
 0x226   :  { %v7004_v10 = vpack.c.bf16 %v8867_v8, %v8866_v52  ;;  %v8871_v17 = vand.u32 4294901760, %v6892_v28  ;;  %v7021_v20 = vpack.c.bf16 %v2092_v40, %v2080_v15  ;;  %v7023_v29 = vpack.c.bf16 %v3520_v53, %v3508_v62  ;;  %v8880_v28 = vld [vmem:[#allocation99_spill] sm:$0xff]  ;;  %v8889_v56 = vld [vmem:[#allocation109_spill] sm:$0xff] }
 0x227   :  { %v7009_v54 = vsub.f32 %v8862_v27, %v8868_v6  ;;  %v7014_v33 = vsub.f32 %v8863_v39, %v8869_v51  ;;  %v7025_v52 = vpack.c.bf16 %v2098_v50, %v2086_v30  ;;  %v7029_v8 = vpack.c.bf16 %v3526_v37, %v3514_v32  ;;  %v8876_v37 = vld [vmem:[#allocation93_spill] sm:$0xff]  ;;  %v8950_v27 = vld [vmem:[#allocation142_spill] sm:$0xff] }
 0x228   :  { %v7019_v16 = vpack.c.bf16 %v3502_v9, %v8871_v17  ;;  %4986 = vmatpush1.bf16.msra.mxu0 %v6522_v60  ;;  %5394 = vmatpush1.bf16.msra.mxu1 %v6528_v19  ;;  %v7031_v6 = vpack.c.bf16 %v2116_v49, %v2104_v58  ;;  %v7033_v51 = vpack.c.bf16 %v3544_v57, %v3532_v11  ;;  %v8873_v50 = vand.u32 4294901760, %v8864_v23  ;;  %v8877_v49 = vld [vmem:[#allocation94_spill] sm:$0xff]  ;;  %v8884_v19 = vld [vmem:[#allocation103_spill] sm:$0xff]  ;;  %v8885_v17 = vld [vmem:[#allocation105_spill] sm:$0xff] }
 0x229   :  { %4988 = vmatprep.subr.bf16.mxu0 %v6535_v38  ;;  %5396 = vmatprep.subr.bf16.mxu1 %v6556_v44  ;;  %v7039_v40 = vpack.c.bf16 %v2122_v12, %v2110_v13  ;;  %v8874_v32 = vand.u32 4294901760, %v8865_v46  ;;  %v8875_v15 = vand.u32 4294901760, %v8870_v55  ;;  %v8878_v12 = vld [vmem:[#allocation96_spill] sm:$0xff]  ;;  %v8881_v57 = vand.u32 4294901760, %v8872_v7  ;;  %v8883_v38 = vld [vmem:[#allocation102_spill] sm:$0xff] }
 0x22a   :  { %v7044_v30 = vsub.f32 %v8864_v23, %v8873_v50  ;;  %v8879_v50 = vld [vmem:[#allocation97_spill] sm:$0xff]  ;;  %v8887_v44 = vand.u32 4294901760, %v8876_v37  ;;  %v8897_v59 = vand.u32 4294901760, %v8884_v19  ;;  %v8476_v43 = vand.u32 4294901760, %v8950_v27 }
 0x22b   :  { %v7049_v11 = vsub.f32 %v8865_v46, %v8874_v32  ;;  %v7056_v53 = vsub.f32 %v8870_v55, %v8875_v15  ;;  %v3567_v62 = vsub.f32 %v8872_v7, %v8881_v57  ;;  %v8882_v15 = vld [vmem:[#allocation100_spill] sm:$0xff] }
 0x22c   :  { %4990 = vmatpush1.bf16.msra.mxu0 %v6571_v63  ;;  %5398 = vmatpush1.bf16.msra.mxu1 %v6582_v35  ;;  %v2128_v32 = vand.u32 4294901760, %v7044_v30  ;;  %v8886_v63 = vld [vmem:[#allocation106_spill] sm:$0xff]  ;;  %v2133_v58 = vsub.f32 %v8876_v37, %v8887_v44  ;;  %v8891_v30 = vand.u32 4294901760, %v8877_v49  ;;  %v8892_v35 = vand.u32 4294901760, %v8878_v12  ;;  %v8948_v37 = vld [vmem:[#allocation139_spill] sm:$0xff] }
 0x22d   :  { %4992 = vmatprep.subr.bf16.mxu0 %v6607_v1  ;;  %5400 = vmatprep.subr.bf16.mxu1 %v6643_v42  ;;  %v2140_v9 = vand.u32 4294901760, %v7049_v11  ;;  %v3556_v57 = vand.u32 4294901760, %v7056_v53  ;;  %v8890_v42 = vand.u32 4294901760, %v6648_v34  ;;  %v8893_v53 = vand.u32 4294901760, %v8879_v50 }
 0x22e   :  { %v2145_v11 = vsub.f32 %v8877_v49, %v8891_v30  ;;  %v3561_v60 = vsub.f32 %v8878_v12, %v8892_v35  ;;  %v8894_v44 = vand.u32 4294901760, %v8880_v28  ;;  %v3568_v34 = vand.u32 4294901760, %v3567_v62 }
 0x22f   :  { %3330 = vmatmul.mubr.f32.vlgmr.msra.gmra.mrb[6].mxu1 %v8890_v42  ;;  %v3573_v14 = vsub.f32 %v8879_v50, %v8893_v53  ;;  %v8895_v42 = vand.u32 4294901760, %v8882_v15  ;;  %v8896_v1 = vand.u32 4294901760, %v8883_v38  ;;  %v3591_v53 = vsub.f32 %v8884_v19, %v8897_v59  ;;  %v8904_v19 = vld [vmem:[#allocation114_spill] sm:$0xff] }
 0x230   :  { %v2151_v13 = vsub.f32 %v8880_v28, %v8894_v44  ;;  %4994 = vmatpush1.bf16.msra.mxu0 %v6632_v31  ;;  %5402 = vmatpush1.bf16.msra.mxu1 %v6659_v24  ;;  %v8898_v44 = vand.u32 4294901760, %v8885_v17  ;;  %v8899_v62 = vand.u32 4294901760, %v8886_v63  ;;  %v8900_v31 = vld [vmem:[#allocation111_spill] sm:$0xff]  ;;  %v8901_v28 = vld [vmem:[#allocation112_spill] sm:$0xff]  ;;  %v8902_v50 = vand.u32 4294901760, %v8888_v4 }
 0x231   :  { %v2163_v30 = vsub.f32 %v8882_v15, %v8895_v42  ;;  %v3579_v35 = vsub.f32 %v8883_v38, %v8896_v1  ;;  %4996 = vmatprep.subr.bf16.mxu0 %v6651_v26  ;;  %5404 = vmatprep.subr.bf16.mxu1 %v6678_v21  ;;  %v2134_v38 = vand.u32 4294901760, %v2133_v58  ;;  %v8903_v26 = vand.u32 4294901760, %v8889_v56 }
 0x232   :  { %v2157_v24 = vsub.f32 %v8885_v17, %v8898_v44  ;;  %v2169_v42 = vsub.f32 %v8886_v63, %v8899_v62  ;;  %v3585_v59 = vsub.f32 %v8888_v4, %v8902_v50  ;;  %3721 = vmatprep.mubr.f32.mxu1 %v6520_v61  ;;  %v2146_v44 = vand.u32 4294901760, %v2145_v11  ;;  %v8905_v63 = vld [vmem:[#allocation115_spill] sm:$0xff] }
 0x233   :  { %v3597_v21 = vsub.f32 %v8889_v56, %v8903_v26  ;;  %v3562_v17 = vand.u32 4294901760, %v3561_v60  ;;  %v3574_v62 = vand.u32 4294901760, %v3573_v14  ;;  %v2152_v58 = vand.u32 4294901760, %v2151_v13 }
 0x234   :  { %4998 = vmatpush1.bf16.msra.mxu0 %v6670_v36  ;;  %5406 = vmatpush1.bf16.msra.mxu1 %v6716_v3  ;;  %v2164_v1 = vand.u32 4294901760, %v2163_v30  ;;  %v3580_v50 = vand.u32 4294901760, %v3579_v35  ;;  %v3592_v4 = vand.u32 4294901760, %v3591_v53  ;;  %v2158_v26 = vand.u32 4294901760, %v2157_v24  ;;  %v8909_v35 = vld [vmem:[#allocation117_spill] sm:$0xff] }
 0x235   :  { %5000 = vmatprep.subr.bf16.mxu0 %v6695_v5  ;;  %5408 = vmatprep.subr.bf16.mxu1 %v6754_v45  ;;  %v2170_v12 = vand.u32 4294901760, %v2169_v42  ;;  %v8906_v11 = vand.u32 4294901760, %v8900_v31  ;;  %v8907_v60 = vand.u32 4294901760, %v8901_v28  ;;  %v3586_v36 = vand.u32 4294901760, %v3585_v59 }
 0x236   :  { %v3598_v3 = vand.u32 4294901760, %v3597_v21  ;;  %v8908_v13 = vand.u32 4294901760, %v8904_v19  ;;  %v8446_v53 = vand.u32 4294901760, %v8909_v35  ;;  %v8910_v45 = vand.u32 4294901760, %v7009_v54 }
 0x237   :  { %v2175_v14 = vsub.f32 %v8900_v31, %v8906_v11  ;;  %v2187_v15 = vsub.f32 %v8901_v28, %v8907_v60  ;;  %v8911_v24 = vand.u32 4294901760, %v7014_v33  ;;  %v7147_v5 = vpack.c.bf16 %v2140_v9, %v2128_v32  ;;  %v8913_v33 = vld [vmem:[#allocation118_spill] sm:$0xff]  ;;  %v8914_v9 = vld [vmem:[#allocation199_spill] sm:$0xff] }
 0x238   :  { %v3603_v30 = vsub.f32 %v8904_v19, %v8908_v13  ;;  %v7149_v11 = vpack.c.bf16 %v3568_v34, %v3556_v57  ;;  %v8912_v60 = vand.u32 4294901760, %v8905_v63  ;;  %5002 = vmatpush1.bf16.msra.mxu0 %v6718_v2  ;;  %5410 = vmatpush1.bf16.msra.mxu1 %v6759_v22  ;;  %v7156_v21 = vpack.c.bf16 %v2146_v44, %v2134_v38  ;;  %v8928_v2 = vld [vmem:[#allocation132_spill] sm:$0xff]  ;;  %v8941_v28 = vld [vmem:[#allocation15_spill] sm:$0xff] }
 0x239   :  { %v7145_v42 = vpack.c.bf16 %v8911_v24, %v8910_v45  ;;  %v7158_v13 = vpack.c.bf16 %v3574_v62, %v3562_v17  ;;  %v7160_v54 = vpack.c.bf16 %v2164_v1, %v2152_v58  ;;  %v8454_v45 = vand.u32 4294901760, %v8913_v33  ;;  %5004 = vmatprep.subr.bf16.mxu0 %v6745_v18  ;;  %5412 = vmatprep.subr.bf16.mxu1 %v8914_v9  ;;  %v8915_v24 = vld [vmem:[#allocation120_spill] sm:$0xff]  ;;  %v8916_v62 = vld [vmem:[#allocation121_spill] sm:$0xff]  ;;  %v8917_v9 = vld [vmem:[#allocation123_spill] sm:$0xff] }
 0x23a   :  { %v3615_v59 = vsub.f32 %v8905_v63, %v8912_v60  ;;  %v7165_v32 = vpack.c.bf16 %v3592_v4, %v3580_v50  ;;  %v7167_v57 = vpack.c.bf16 %v2170_v12, %v2158_v26  ;;  %v2176_v34 = vand.u32 4294901760, %v2175_v14  ;;  %v8918_v50 = vld [vmem:[#allocation124_spill] sm:$0xff]  ;;  %v8919_v26 = vld [vmem:[#allocation197_spill] sm:$0xff]  ;;  %v8920_v14 = vld [vmem:[#allocation203_spill] sm:$0xff] }
 0x23b   :  { %v7170_v22 = vpack.c.bf16 %v3598_v3, %v3586_v36  ;;  %v2188_v38 = vand.u32 4294901760, %v2187_v15  ;;  %v3604_v17 = vand.u32 4294901760, %v3603_v30  ;;  %v7175_v1 = vsub.f32 %v8909_v35, %v8446_v53  ;;  %v8921_v15 = vld [vmem:[#allocation126_spill] sm:$0xff]  ;;  %v8922_v30 = vld [vmem:[#allocation127_spill] sm:$0xff]  ;;  %v8923_v60 = vld [vmem:[#allocation129_spill] sm:$0xff] }
 0x23c   :  { %v3616_v44 = vand.u32 4294901760, %v3615_v59  ;;  %5006 = vmatpush1.bf16.msra.mxu0 %v8919_v26  ;;  %5414 = vmatpush1.bf16.msra.mxu1 %v8920_v14  ;;  %v2193_v36 = vsub.f32 %v8913_v33, %v8454_v45  ;;  %v8924_v18 = vld [vmem:[#allocation201_spill] sm:$0xff]  ;;  %v8925_v58 = vld [vmem:[#allocation16_spill] sm:$0xff]  ;;  %v8926_v12 = vand.u32 4294901760, %v8915_v24  ;;  %v8927_v26 = vld [vmem:[#allocation130_spill] sm:$0xff]  ;;  %v8935_v14 = vand.u32 4294901760, %v8917_v9 }
 0x23d   :  { %5008 = vmatprep.subr.bf16.mxu0 %v8924_v18  ;;  %5416 = vmatprep.subr.bf16.mxu1 %v8925_v58  ;;  %v8929_v35 = vld [vmem:[#allocation133_spill] sm:$0xff]  ;;  %v7196_v33 = vpack.c.bf16 %v2188_v38, %v2176_v34  ;;  %v2182_v53 = vand.u32 4294901760, %v7175_v1  ;;  %v8931_v3 = vld [vmem:[#allocation135_spill] sm:$0xff]  ;;  %v8932_v63 = vld [vmem:[#allocation136_spill] sm:$0xff]  ;;  %v8934_v58 = vand.u32 4294901760, %v8916_v62  ;;  %v8936_v45 = vand.u32 4294901760, %v8918_v50 }
 0x23e   :  { %v3609_v4 = vsub.f32 %v8915_v24, %v8926_v12  ;;  %v7201_v19 = vpack.c.bf16 %v3616_v44, %v3604_v17  ;;  %v2199_v61 = vsub.f32 %v8917_v9, %v8935_v14  ;;  %v8937_v38 = vld [vmem:[#allocation206_spill] sm:$0xff]  ;;  %v2194_v1 = vand.u32 4294901760, %v2193_v36  ;;  %v8994_v9 = vld [vmem:[#allocation205_spill] sm:$0xff] }
 0x23f   :  { %8930 = vst [vmem:[#allocation199_spill] sm:$0xff] %v7196_v33  ;;  %v3621_v12 = vsub.f32 %v8916_v62, %v8934_v58  ;;  %v2211_v34 = vsub.f32 %v8918_v50, %v8936_v45  ;;  %v8938_v17 = vand.u32 4294901760, %v8921_v15  ;;  %v8939_v18 = vand.u32 4294901760, %v8922_v30  ;;  %v8997_v24 = vld [vmem:[#allocation210_spill] sm:$0xff] }
 0x240   :  { %8933 = vst [vmem:[#allocation203_spill] sm:$0xff] %v7201_v19  ;;  %5010 = vmatpush1.bf16.msra.mxu0 %v8937_v38  ;;  %5418 = vmatpush1.bf16.msra.mxu1 %v6881_v48  ;;  %v8940_v59 = vand.u32 4294901760, %v8923_v60  ;;  %v3610_v45 = vand.u32 4294901760, %v3609_v4  ;;  %v8942_v48 = vand.u32 4294901760, %v8927_v26  ;;  %v8943_v38 = vand.u32 4294901760, %v8928_v2  ;;  %v8947_v4 = vld [vmem:[#allocation138_spill] sm:$0xff] }
 0x241   :  { %v3627_v44 = vsub.f32 %v8921_v15, %v8938_v17  ;;  %v3639_v58 = vsub.f32 %v8922_v30, %v8939_v18  ;;  %5012 = vmatprep.subr.bf16.mxu0 %v8941_v28  ;;  %5420 = vmatprep.subr.bf16.mxu1 %v6894_v25  ;;  %v8944_v31 = vand.u32 4294901760, %v8929_v35  ;;  %v8945_v56 = vand.u32 4294901760, %v8931_v3  ;;  %v8951_v19 = vld [vmem:[#allocation214_spill] sm:$0xff] }
 0x242   :  { %v2205_v14 = vsub.f32 %v8923_v60, %v8940_v59  ;;  %v2217_v36 = vsub.f32 %v8927_v26, %v8942_v48  ;;  %v3633_v17 = vsub.f32 %v8928_v2, %v8943_v38  ;;  %v8946_v28 = vand.u32 4294901760, %v8932_v63  ;;  %v8949_v38 = vld [vmem:[#allocation141_spill] sm:$0xff]  ;;  %v8988_v2 = vld [vmem:[#allocation194_spill] sm:$0xff] }
 0x243   :  { %v3645_v18 = vsub.f32 %v8929_v35, %v8944_v31  ;;  %v2223_v59 = vsub.f32 %v8931_v3, %v8945_v56  ;;  %v3622_v7 = vand.u32 4294901760, %v3621_v12  ;;  %v2200_v55 = vand.u32 4294901760, %v2199_v61  ;;  %v8953_v61 = vld [vmem:[#allocation144_spill] sm:$0xff]  ;;  %v8990_v60 = vld [vmem:[#allocation198_spill] sm:$0xff] }
 0x244   :  { %v2235_v25 = vsub.f32 %v8932_v63, %v8946_v28  ;;  %v2212_v46 = vand.u32 4294901760, %v2211_v34  ;;  %5014 = vmatpush1.bf16.msra.mxu0 %v6896_v47  ;;  %5422 = vmatpush1.bf16.msra.mxu1 %v6900_v0  ;;  %v3628_v31 = vand.u32 4294901760, %v3627_v44  ;;  %v3640_v39 = vand.u32 4294901760, %v3639_v58  ;;  %v8952_v28 = vld [vmem:[#allocation215_spill] sm:$0xff]  ;;  %v8986_v3 = vld [vmem:[#allocation192_spill] sm:$0xff]  ;;  %v8992_v15 = vld [vmem:[#allocation202_spill] sm:$0xff] }
 0x245   :  { %v2206_v56 = vand.u32 4294901760, %v2205_v14  ;;  %5016 = vmatprep.subr.bf16.mxu0 %v8951_v19  ;;  %5424 = vmatprep.subr.bf16.mxu1 %v8952_v28  ;;  %v2218_v49 = vand.u32 4294901760, %v2217_v36  ;;  %v3634_v48 = vand.u32 4294901760, %v3633_v17  ;;  %v3646_v12 = vand.u32 4294901760, %v3645_v18  ;;  %v8958_v18 = vld [vmem:[#allocation145_spill] sm:$0xff] }
 0x246   :  { %v8475_v34 = vand.u32 4294901760, %v8953_v61  ;;  %v2224_v33 = vand.u32 4294901760, %v2223_v59  ;;  %v2236_v23 = vand.u32 4294901760, %v2235_v25  ;;  %v8954_v47 = vand.u32 4294901760, %v8947_v4  ;;  %v8959_v25 = vld [vmem:[#allocation147_spill] sm:$0xff] }
 0x247   :  { %v8955_v44 = vand.u32 4294901760, %v8948_v37  ;;  %v8956_v19 = vand.u32 4294901760, %v6984_v41  ;;  %v7261_v14 = vpack.c.bf16 %v2194_v1, %v2182_v53  ;;  %v8957_v36 = vand.u32 4294901760, %v8949_v38  ;;  %v8960_v53 = vld [vmem:[#allocation148_spill] sm:$0xff] }
 0x248   :  { %v7252_v0 = vsub.f32 %v8947_v4, %v8954_v47  ;;  %v8474_v59 = vand.u32 4294901760, %v8958_v18  ;;  %v8473_v47 = vand.u32 4294901760, %v8959_v25  ;;  %5426 = vmatpush1.bf16.msra.mxu1 %v7019_v16  ;;  %v7272_v28 = vpack.c.bf16 %v3622_v7, %v3610_v45  ;;  %v8972_v7 = vld [vmem:[#allocation167_spill] sm:$0xff]  ;;  %v8996_v4 = vld [vmem:[#allocation208_spill] sm:$0xff] }
 0x249   :  { %v7257_v58 = vsub.f32 %v8948_v37, %v8955_v44  ;;  %2046 = vmatmul.mubr.f32.vlgmr.msra.gmra.mrb[4].mxu0 %v8956_v19  ;;  %v7266_v17 = vsub.f32 %v8949_v38, %v8957_v36  ;;  %v7274_v44 = vpack.c.bf16 %v2212_v46, %v2200_v55  ;;  %v7279_v41 = vsub.f32 %v8950_v27, %v8476_v43  ;;  %v8966_v36 = vld [vmem:[#allocation157_spill] sm:$0xff]  ;;  %v8975_v43 = vld [vmem:[#allocation172_spill] sm:$0xff]  ;;  %v8985_v37 = vld [vmem:[#allocation190_spill] sm:$0xff] }
 0x24a   :  { %5018 = vmatpush1.bf16.msra.mxu0 %v7004_v10  ;;  %v8472_v1 = vand.u32 4294901760, %v8960_v53  ;;  %5428 = vmatprep.subr.bf16.mxu1 %v7023_v29  ;;  %v7284_v19 = vpack.c.bf16 %v3640_v39, %v3628_v31  ;;  %v7286_v10 = vpack.c.bf16 %v2218_v49, %v2206_v56  ;;  %v7291_v16 = vsub.f32 %v8953_v61, %v8475_v34  ;;  %v8965_v34 = vld [vmem:[#allocation155_spill] sm:$0xff]  ;;  %v8981_v56 = vld [vmem:[#allocation182_spill] sm:$0xff]  ;;  %v8982_v27 = vld [vmem:[#allocation185_spill] sm:$0xff] }
 0x24b   :  { %5020 = vmatprep.subr.bf16.mxu0 %v7021_v20  ;;  %v7293_v46 = vpack.c.bf16 %v3646_v12, %v3634_v48  ;;  %v7295_v55 = vpack.c.bf16 %v2236_v23, %v2224_v33  ;;  %v3664_v45 = vand.u32 4294901760, %v7257_v58  ;;  %v8961_v20 = vld [vmem:[#allocation183_spill] sm:$0xff]  ;;  %v2230_v39 = vand.u32 4294901760, %v7266_v17  ;;  %v8962_v23 = vld [vmem:[#allocation150_spill] sm:$0xff]  ;;  %v8970_v12 = vld [vmem:[#allocation164_spill] sm:$0xff] }
 0x24c   :  { %2437 = vmatprep.mubr.f32.mxu0 %v8961_v20  ;;  %v7304_v29 = vsub.f32 %v8958_v18, %v8474_v59  ;;  %v7309_v49 = vsub.f32 %v8959_v25, %v8473_v47  ;;  %5430 = vmatpush1.bf16.msra.mxu1 %v7029_v8  ;;  %v2242_v48 = vand.u32 4294901760, %v7279_v41  ;;  %v7318_v31 = vsub.f32 %v8960_v53, %v8472_v1  ;;  %v8963_v1 = vld [vmem:[#allocation151_spill] sm:$0xff]  ;;  %v8964_v59 = vld [vmem:[#allocation154_spill] sm:$0xff]  ;;  %v8968_v41 = vld [vmem:[#allocation160_spill] sm:$0xff] }
 0x24d   :  { %5432 = vmatprep.subr.bf16.mxu1 %v7033_v51  ;;  %v8967_v17 = vld [vmem:[#allocation158_spill] sm:$0xff]  ;;  %v8973_v47 = vld [vmem:[#allocation169_spill] sm:$0xff]  ;;  %v8976_v20 = vld [vmem:[#allocation175_spill] sm:$0xff]  ;;  %v9000_v50 = vand.u32 4294901760, %v8962_v23  ;;  %v8500_v63 = vand.u32 4294901760, %v8966_v36 }
 0x24e   :  { %5022 = vmatpush1.bf16.msra.mxu0 %v7025_v52  ;;  %v3658_v52 = vand.u32 4294901760, %v7291_v16  ;;  %v8969_v51 = vld [vmem:[#allocation162_spill] sm:$0xff]  ;;  %v8971_v16 = vld [vmem:[#allocation165_spill] sm:$0xff]  ;;  %v3670_v58 = vand.u32 4294901760, %v7304_v29  ;;  %v8979_v8 = vld [vmem:[#allocation179_spill] sm:$0xff]  ;;  %v2248_v35 = vand.u32 4294901760, %v7309_v49 }
 0x24f   :  { %5024 = vmatprep.subr.bf16.mxu0 %v7031_v6  ;;  %v8977_v6 = vld [vmem:[#allocation176_spill] sm:$0xff]  ;;  %v8978_v53 = vld [vmem:[#allocation178_spill] sm:$0xff]  ;;  %v8980_v18 = vld [vmem:[#allocation181_spill] sm:$0xff]  ;;  %v2260_v26 = vand.u32 4294901760, %v7318_v31  ;;  %v9003_v49 = vand.u32 4294901760, %v8964_v59 }
 0x250   :  { %5434 = vmatpush1.bf16.msra.mxu1 %v7145_v42  ;;  %v8983_v33 = vld [vmem:[#allocation186_spill] sm:$0xff]  ;;  %v8987_v29 = vld [vmem:[#allocation193_spill] sm:$0xff]  ;;  %v8991_v25 = vld [vmem:[#allocation200_spill] sm:$0xff]  ;;  %v9002_v42 = vand.u32 4294901760, %v7252_v0  ;;  %v9007_v0 = vand.u32 4294901760, %v8968_v41 }
 0x251   :  { %5436 = vmatprep.subr.bf16.mxu1 %v7149_v11  ;;  %v8993_v61 = vld [vmem:[#allocation204_spill] sm:$0xff]  ;;  %v8995_v38 = vld [vmem:[#allocation207_spill] sm:$0xff]  ;;  %v8498_v11 = vand.u32 4294901760, %v8967_v17  ;;  %v2253_v31 = vsub.f32 %v8964_v59, %v9003_v49 }
 0x252   :  { %5026 = vmatpush1.bf16.msra.mxu0 %v7039_v40  ;;  %v8974_v40 = vld [vmem:[#allocation171_spill] sm:$0xff]  ;;  %v5451_v62 = vpack.c.bf16 %v3664_v45, %v9002_v42  ;;  %v5453_v42 = vpack.c.bf16 %v3670_v58, %v3658_v52  ;;  %v2271_v45 = vsub.f32 %v8968_v41, %v9007_v0  ;;  %v9009_v58 = vand.u32 4294901760, %v8971_v16 }
 0x253   :  { %5028 = vmatprep.subr.bf16.mxu0 %v7147_v5  ;;  %v8984_v5 = vld [vmem:[#allocation189_spill] sm:$0xff]  ;;  %v3693_v49 = vsub.f32 %v8967_v17, %v8498_v11  ;;  %v9010_v0 = vand.u32 4294901760, %v8972_v7 }
 0x254   :  { %5438 = vmatpush1.bf16.msra.mxu1 %v7158_v13  ;;  %v9001_v13 = vand.u32 4294901760, %v8963_v1 }
 0x255   :  { %5440 = vmatprep.subr.bf16.mxu1 %v7165_v32 }
 0x256   :  { %5030 = vmatpush1.bf16.msra.mxu0 %v7156_v21  ;;  %v3675_v21 = vsub.f32 %v8962_v23, %v9000_v50  ;;  %v3687_v30 = vsub.f32 %v8963_v1, %v9001_v13  ;;  %v5045_v50 = vpack.c.bf16 %v2242_v48, %v2230_v39  ;;  %v8499_v23 = vand.u32 4294901760, %v8970_v12  ;;  %v9005_v39 = vld [vmem:[#allocation199_spill] sm:$0xff] }
 0x257   :  { %5032 = vmatprep.subr.bf16.mxu0 %v7160_v54  ;;  %v9004_v54 = vand.u32 4294901760, %v8965_v34  ;;  %v9006_v48 = vld [vmem:[#allocation203_spill] sm:$0xff]  ;;  %v5047_v13 = vpack.c.bf16 %v2260_v26, %v2248_v35  ;;  %v2254_v26 = vand.u32 4294901760, %v2253_v31  ;;  %v3694_v35 = vand.u32 4294901760, %v3693_v49 }
 0x258   :  { %5442 = vmatpush1.bf16.msra.mxu1 %v7170_v22  ;;  %v3681_v22 = vsub.f32 %v8966_v36, %v8500_v63  ;;  %v3699_v52 = vsub.f32 %v8970_v12, %v8499_v23  ;;  %v9011_v23 = vand.u32 4294901760, %v8973_v47  ;;  %v2272_v31 = vand.u32 4294901760, %v2271_v45 }
 0x259   :  { %v2265_v32 = vsub.f32 %v8965_v34, %v9004_v54  ;;  %5444 = vmatprep.subr.bf16.mxu1 %v9006_v48  ;;  %v3688_v54 = vand.u32 4294901760, %v3687_v30 }
 0x25a   :  { %5034 = vmatpush1.bf16.msra.mxu0 %v7167_v57  ;;  %v3676_v57 = vand.u32 4294901760, %v3675_v21  ;;  %v3711_v21 = vsub.f32 %v8971_v16, %v9009_v58  ;;  %v2289_v63 = vsub.f32 %v8973_v47, %v9011_v23  ;;  %v3682_v58 = vand.u32 4294901760, %v3681_v22 }
 0x25b   :  { %5036 = vmatprep.subr.bf16.mxu0 %v9005_v39  ;;  %v9008_v39 = vand.u32 4294901760, %v8969_v51  ;;  %v2266_v30 = vand.u32 4294901760, %v2265_v32  ;;  %v9012_v23 = vand.u32 4294901760, %v8974_v40 }
 0x25c   :  { %5446 = vmatpush1.bf16.msra.mxu1 %v7272_v28  ;;  %v8503_v28 = vand.u32 4294901760, %v8977_v6  ;;  %v3712_v12 = vand.u32 4294901760, %v3711_v21  ;;  %v5455_v45 = vpack.c.bf16 %v3688_v54, %v3676_v57  ;;  %v2290_v11 = vand.u32 4294901760, %v2289_v63 }
 0x25d   :  { %v2283_v48 = vsub.f32 %v8969_v51, %v9008_v39  ;;  %v2277_v39 = vsub.f32 %v8972_v7, %v9010_v0  ;;  %5448 = vmatprep.subr.bf16.mxu1 %v7284_v19  ;;  %v8507_v0 = vand.u32 4294901760, %v8979_v8  ;;  %v3700_v7 = vand.u32 4294901760, %v3699_v52 }
 0x25e   :  { %5038 = vmatpush1.bf16.msra.mxu0 %v7261_v14  ;;  %v8513_v14 = vand.u32 4294901760, %v8976_v20  ;;  %v9013_v19 = vand.u32 4294901760, %v8975_v43  ;;  %v5049_v49 = vpack.c.bf16 %v2266_v30, %v2254_v26  ;;  %v2307_v21 = vsub.f32 %v8977_v6, %v8503_v28 }
 0x25f   :  { %5040 = vmatprep.subr.bf16.mxu0 %v7274_v44  ;;  %v2284_v32 = vand.u32 4294901760, %v2283_v48  ;;  %v3705_v44 = vsub.f32 %v8974_v40, %v9012_v23  ;;  %v2278_v48 = vand.u32 4294901760, %v2277_v39  ;;  %v8506_v23 = vand.u32 4294901760, %v8980_v18 }
 0x260   :  { %v3717_v22 = vsub.f32 %v8975_v43, %v9013_v19  ;;  %5450 = vmatpush1.bf16.msra.mxu1 %v7293_v46  ;;  %v2295_v52 = vsub.f32 %v8976_v20, %v8513_v14  ;;  %v5457_v46 = vpack.c.bf16 %v3694_v35, %v3682_v58  ;;  %v9014_v54 = vand.u32 4294901760, %v8978_v53  ;;  %v9021_v14 = vld [vmem:[#allocation22_spill] sm:$0xff] }
 0x261   :  { %5452 = vmatprep.subr.bf16.mxu1 %v5451_v62  ;;  %v5051_v57 = vpack.c.bf16 %v2284_v32, %v2272_v31  ;;  %v2313_v62 = vsub.f32 %v8979_v8, %v8507_v0  ;;  %v3706_v26 = vand.u32 4294901760, %v3705_v44  ;;  %v8504_v39 = vand.u32 4294901760, %v8982_v27  ;;  %v9019_v0 = vld [vmem:[#allocation19_spill] sm:$0xff] }
 0x262   :  { %5042 = vmatpush1.bf16.msra.mxu0 %v7286_v10  ;;  %v8505_v10 = vand.u32 4294901760, %v8981_v56  ;;  %v2301_v63 = vsub.f32 %v8978_v53, %v9014_v54  ;;  %v3718_v30 = vand.u32 4294901760, %v3717_v22  ;;  %v5053_v19 = vpack.c.bf16 %v2290_v11, %v2278_v48  ;;  %v9015_v48 = vld [vmem:[#allocation196_spill] sm:$0xff] }
 0x263   :  { %5044 = vmatprep.subr.bf16.mxu0 %v7295_v55  ;;  %v5459_v55 = vpack.c.bf16 %v3712_v12, %v3700_v7  ;;  %v8508_v28 = vand.u32 4294901760, %v8983_v33  ;;  %v8509_v35 = vand.u32 4294901760, %v8984_v5  ;;  %v8510_v58 = vand.u32 4294901760, %v8985_v37 }
 0x264   :  { %5454 = vmatpush1.bf16.msra.mxu1 %v5453_v42  ;;  %v2296_v31 = vand.u32 4294901760, %v2295_v52  ;;  %v2308_v32 = vand.u32 4294901760, %v2307_v21  ;;  %v2319_v7 = vsub.f32 %v8980_v18, %v8506_v23  ;;  %v2331_v12 = vsub.f32 %v8981_v56, %v8505_v10  ;;  %v9018_v23 = vld [vmem:[#allocation18_spill] sm:$0xff] }
 0x265   :  { %5456 = vmatprep.subr.bf16.mxu1 %v5455_v45  ;;  %v2314_v11 = vand.u32 4294901760, %v2313_v62  ;;  %v8512_v42 = vand.u32 4294901760, %v8986_v3  ;;  %v8511_v44 = vand.u32 4294901760, %v8987_v29  ;;  %v5461_v22 = vpack.c.bf16 %v3718_v30, %v3706_v26  ;;  %v9016_v26 = vld [vmem:[#allocation13_spill] sm:$0xff]  ;;  %v9017_v30 = vld [vmem:[#allocation14_spill] sm:$0xff] }
 0x266   :  { %5046 = vmatpush1.bf16.msra.mxu0 %v5045_v50  ;;  %v2302_v50 = vand.u32 4294901760, %v2301_v63  ;;  %v8514_v45 = vand.u32 4294901760, %v8988_v2  ;;  %v8515_v52 = vand.u32 4294901760, %v9015_v48  ;;  %v2337_v21 = vsub.f32 %v8983_v33, %v8508_v28 }
 0x267   :  { %5048 = vmatprep.subr.bf16.mxu0 %v5047_v13  ;;  %v2325_v13 = vsub.f32 %v8982_v27, %v8504_v39  ;;  %v2343_v54 = vsub.f32 %v8984_v5, %v8509_v35  ;;  %v2355_v63 = vsub.f32 %v8985_v37, %v8510_v58  ;;  %v5055_v62 = vpack.c.bf16 %v2308_v32, %v2296_v31  ;;  %v9023_v31 = vld [vmem:[#allocation25_spill] sm:$0xff]  ;;  %v9024_v32 = vld [vmem:[#allocation27_spill] sm:$0xff] }
 0x268   :  { %5458 = vmatpush1.bf16.msra.mxu1 %v5457_v46  ;;  %v5463_v39 = vpack.c.bf16 %v9017_v30, %v9016_v26  ;;  %v2332_v46 = vand.u32 4294901760, %v2331_v12  ;;  %v5057_v10 = vpack.c.bf16 %v2314_v11, %v2302_v50  ;;  %v5465_v28 = vpack.c.bf16 %v9019_v0, %v9018_v23  ;;  %v9022_v23 = vld [vmem:[#allocation24_spill] sm:$0xff] }
 0x269   :  { %5460 = vmatprep.subr.bf16.mxu1 %v5459_v55  ;;  %v2349_v35 = vsub.f32 %v8986_v3, %v8512_v42  ;;  %v2361_v58 = vsub.f32 %v8987_v29, %v8511_v44  ;;  %v2379_v55 = vsub.f32 %v9015_v48, %v8515_v52  ;;  %v2338_v12 = vand.u32 4294901760, %v2337_v21  ;;  %v9020_v42 = vld [vmem:[#allocation21_spill] sm:$0xff] }
 0x26a   :  { %5050 = vmatpush1.bf16.msra.mxu0 %v5049_v49  ;;  %v2320_v49 = vand.u32 4294901760, %v2319_v7  ;;  %v2326_v7 = vand.u32 4294901760, %v2325_v13  ;;  %v2344_v50 = vand.u32 4294901760, %v2343_v54  ;;  %v2356_v11 = vand.u32 4294901760, %v2355_v63  ;;  %v9026_v54 = vld [vmem:[#allocation168_spill] sm:$0xff] }
 0x26b   :  { %5052 = vmatprep.subr.bf16.mxu0 %v5051_v57  ;;  %v2367_v57 = vsub.f32 %v8988_v2, %v8514_v45  ;;  %v5467_v45 = vpack.c.bf16 %v9021_v14, %v9020_v42  ;;  %v5469_v30 = vpack.c.bf16 %v9023_v31, %v9022_v23  ;;  %v2350_v13 = vand.u32 4294901760, %v2349_v35  ;;  %v9039_v23 = vld [vmem:[#allocation213_spill] sm:$0xff] }
 0x26c   :  { %5462 = vmatpush1.bf16.msra.mxu1 %v5461_v22  ;;  %v5059_v44 = vpack.c.bf16 %v2332_v46, %v2320_v49  ;;  %v2362_v21 = vand.u32 4294901760, %v2361_v58  ;;  %v9028_v46 = vand.u32 4294901760, %v8991_v25  ;;  %v5061_v0 = vpack.c.bf16 %v2338_v12, %v2326_v7  ;;  %v9032_v7 = vld [vmem:[#allocation31_spill] sm:$0xff] }
 0x26d   :  { %5464 = vmatprep.subr.bf16.mxu1 %v5463_v39  ;;  %v2368_v63 = vand.u32 4294901760, %v2367_v57  ;;  %v2380_v39 = vand.u32 4294901760, %v2379_v55  ;;  %v5063_v31 = vpack.c.bf16 %v2356_v11, %v2344_v50  ;;  %v9029_v58 = vand.u32 4294901760, %v8992_v15  ;;  %v9033_v50 = vld [vmem:[#allocation33_spill] sm:$0xff]  ;;  %v9034_v11 = vld [vmem:[#allocation34_spill] sm:$0xff] }
 0x26e   :  { %5054 = vmatpush1.bf16.msra.mxu0 %v5053_v19  ;;  %v9025_v19 = vld [vmem:[#allocation28_spill] sm:$0xff]  ;;  %v2385_v52 = vsub.f32 %v8991_v25, %v9028_v46  ;;  %v9030_v55 = vand.u32 4294901760, %v8993_v61  ;;  %v5475_v35 = vpack.c.bf16 %v9034_v11, %v9033_v50 }
 0x26f   :  { %5056 = vmatprep.subr.bf16.mxu0 %v5055_v62  ;;  %v5471_v22 = vpack.c.bf16 %v9025_v19, %v9024_v32  ;;  %3723 = vmatmul.mubr.f32.vlgmr.msra.gmra.mrb[6].mxu1 %v9026_v54  ;;  %v9027_v62 = vand.u32 4294901760, %v8990_v60  ;;  %v2391_v57 = vsub.f32 %v8992_v15, %v9029_v58  ;;  %v5067_v19 = vpack.c.bf16 %v2380_v39, %v2368_v63 }
 0x270   :  { %5466 = vmatpush1.bf16.msra.mxu1 %v5465_v28  ;;  %v2386_v58 = vand.u32 4294901760, %v2385_v52  ;;  %v9037_v28 = vand.u32 4294901760, %v8995_v38  ;;  %v9040_v52 = vand.u32 4294901760, %v8996_v4 }
 0x271   :  { %v2373_v49 = vsub.f32 %v8990_v60, %v9027_v62  ;;  %5468 = vmatprep.subr.bf16.mxu1 %v5467_v45  ;;  %v2403_v62 = vsub.f32 %v8993_v61, %v9030_v55  ;;  %v5065_v45 = vpack.c.bf16 %v2362_v21, %v2350_v13  ;;  %v9036_v55 = vand.u32 4294901760, %v8994_v9 }
 0x272   :  { %5058 = vmatpush1.bf16.msra.mxu0 %v5057_v10  ;;  %v9031_v10 = vld [vmem:[#allocation30_spill] sm:$0xff]  ;;  %v2409_v32 = vsub.f32 %v8995_v38, %v9037_v28  ;;  %v2392_v13 = vand.u32 4294901760, %v2391_v57  ;;  %v9045_v57 = vand.u32 4294901760, %v9039_v23 }
 0x273   :  { %5060 = vmatprep.subr.bf16.mxu0 %v5059_v44  ;;  %v5473_v12 = vpack.c.bf16 %v9032_v7, %v9031_v10  ;;  %v9035_v44 = vld [vmem:[#allocation161_spill] sm:$0xff]  ;;  %v2374_v54 = vand.u32 4294901760, %v2373_v49  ;;  %v2397_v46 = vsub.f32 %v8994_v9, %v9036_v55  ;;  %v9038_v7 = vld [vmem:[#allocation211_spill] sm:$0xff]  ;;  %v2404_v21 = vand.u32 4294901760, %v2403_v62  ;;  %v9042_v49 = vld [vmem:[#allocation36_spill] sm:$0xff] }
 0x274   :  { %3923 = vmatprep.mubr.f32.mxu1 %v9035_v44  ;;  %5470 = vmatpush1.bf16.msra.mxu1 %v5469_v30  ;;  %v9041_v30 = vand.u32 4294901760, %v8997_v24  ;;  %v9043_v55 = vld [vmem:[#allocation37_spill] sm:$0xff]  ;;  %v2410_v11 = vand.u32 4294901760, %v2409_v32  ;;  %v2433_v62 = vsub.f32 %v9039_v23, %v9045_v57  ;;  %v9048_v32 = vld [vmem:[#allocation42_spill] sm:$0xff] }
 0x275   :  { %5472 = vmatprep.subr.bf16.mxu1 %v5471_v22  ;;  %v5069_v39 = vpack.c.bf16 %v2386_v58, %v2374_v54  ;;  %v5477_v28 = vpack.c.bf16 %v9043_v55, %v9042_v49  ;;  %v2398_v10 = vand.u32 4294901760, %v2397_v46  ;;  %v9047_v54 = vld [vmem:[#allocation40_spill] sm:$0xff]  ;;  %v9050_v57 = vld [vmem:[#allocation45_spill] sm:$0xff] }
 0x276   :  { %5062 = vmatpush1.bf16.msra.mxu0 %v5061_v0  ;;  %v2415_v0 = vsub.f32 %v8996_v4, %v9040_v52  ;;  %v2427_v63 = vsub.f32 %v8997_v24, %v9041_v30  ;;  %v5071_v52 = vpack.c.bf16 %v2404_v21, %v2392_v13  ;;  %v9046_v30 = vld [vmem:[#allocation39_spill] sm:$0xff]  ;;  %v9052_v21 = vld [vmem:[#allocation48_spill] sm:$0xff] }
 0x277   :  { %5064 = vmatprep.subr.bf16.mxu0 %v5063_v31  ;;  %v9044_v31 = vand.u32 4294901760, %v9038_v7  ;;  %v5479_v58 = vpack.c.bf16 %v9047_v54, %v9046_v30  ;;  %v5073_v46 = vpack.c.bf16 %v2410_v11, %v2398_v10  ;;  %v9054_v10 = vld [vmem:[#allocation51_spill] sm:$0xff]  ;;  %v9055_v11 = vld [vmem:[#allocation52_spill] sm:$0xff] }
 0x278   :  { %5474 = vmatpush1.bf16.msra.mxu1 %v5473_v12  ;;  %v2416_v50 = vand.u32 4294901760, %v2415_v0  ;;  %v2428_v55 = vand.u32 4294901760, %v2427_v63  ;;  %v9049_v12 = vld [vmem:[#allocation43_spill] sm:$0xff]  ;;  %v9053_v0 = vld [vmem:[#allocation49_spill] sm:$0xff] }
 0x279   :  { %v2421_v22 = vsub.f32 %v9038_v7, %v9044_v31  ;;  %5476 = vmatprep.subr.bf16.mxu1 %v5475_v35  ;;  %v2434_v31 = vand.u32 4294901760, %v2433_v62  ;;  %v5485_v63 = vpack.c.bf16 %v9053_v0, %v9052_v21  ;;  %v9065_v0 = vld [vmem:[#allocation67_spill] sm:$0xff] }
 0x27a   :  { %5066 = vmatpush1.bf16.msra.mxu0 %v5065_v45  ;;  %v5481_v45 = vpack.c.bf16 %v9049_v12, %v9048_v32  ;;  %v5075_v14 = vpack.c.bf16 %v2428_v55, %v2416_v50  ;;  %v9058_v50 = vld [vmem:[#allocation57_spill] sm:$0xff]  ;;  %v9059_v55 = vld [vmem:[#allocation58_spill] sm:$0xff] }
 0x27b   :  { %5068 = vmatprep.subr.bf16.mxu0 %v5067_v19  ;;  %v2422_v49 = vand.u32 4294901760, %v2421_v22  ;;  %v9051_v19 = vld [vmem:[#allocation46_spill] sm:$0xff]  ;;  %v9057_v22 = vld [vmem:[#allocation55_spill] sm:$0xff] }
 0x27c   :  { %5478 = vmatpush1.bf16.msra.mxu1 %v5477_v28  ;;  %v5483_v35 = vpack.c.bf16 %v9051_v19, %v9050_v57  ;;  %v9056_v28 = vld [vmem:[#allocation54_spill] sm:$0xff] }
 0x27d   :  { %5480 = vmatprep.subr.bf16.mxu1 %v5479_v58  ;;  %v5077_v13 = vpack.c.bf16 %v2434_v31, %v2422_v49  ;;  %v5487_v62 = vpack.c.bf16 %v9057_v22, %v9056_v28  ;;  %v9060_v58 = vld [vmem:[#allocation60_spill] sm:$0xff]  ;;  %v9062_v49 = vld [vmem:[#allocation63_spill] sm:$0xff] }
 0x27e   :  { %5070 = vmatpush1.bf16.msra.mxu0 %v5069_v39  ;;  %v5079_v39 = vpack.c.bf16 %v9055_v11, %v9054_v10  ;;  %v9063_v31 = vld [vmem:[#allocation64_spill] sm:$0xff]  ;;  %v9066_v11 = vld [vmem:[#allocation209_spill] sm:$0xff]  ;;  %v9075_v10 = vld [vmem:[#allocation187_spill] sm:$0xff] }
 0x27f   :  { %5072 = vmatprep.subr.bf16.mxu0 %v5071_v52  ;;  %v5081_v52 = vpack.c.bf16 %v9059_v55, %v9058_v50  ;;  %v9069_v28 = vld [vmem:[#allocation72_spill] sm:$0xff]  ;;  %v9070_v55 = vld [vmem:[#allocation73_spill] sm:$0xff] }
 0x280   :  { %5482 = vmatpush1.bf16.msra.mxu1 %v5481_v45  ;;  %v5493_v50 = vpack.c.bf16 %v9070_v55, %v9069_v28  ;;  %v9082_v28 = vld [vmem:[#allocation90_spill] sm:$0xff] }
 0x281   :  { %5484 = vmatprep.subr.bf16.mxu1 %v5483_v35  ;;  %v9064_v35 = vld [vmem:[#allocation66_spill] sm:$0xff] }
 0x282   :  { %5074 = vmatpush1.bf16.msra.mxu0 %v5073_v46  ;;  %v9061_v46 = vld [vmem:[#allocation61_spill] sm:$0xff]  ;;  %v5491_v21 = vpack.c.bf16 %v9065_v0, %v9064_v35  ;;  %v9078_v0 = vld [vmem:[#allocation84_spill] sm:$0xff] }
 0x283   :  { %5076 = vmatprep.subr.bf16.mxu0 %v5075_v14  ;;  %v5489_v45 = vpack.c.bf16 %v9061_v46, %v9060_v58  ;;  %v5083_v14 = vpack.c.bf16 %v9063_v31, %v9062_v49  ;;  %v9073_v58 = vld [vmem:[#allocation78_spill] sm:$0xff]  ;;  %v9074_v31 = vld [vmem:[#allocation79_spill] sm:$0xff]  ;;  %v9087_v35 = vld [vmem:[#allocation97_spill] sm:$0xff] }
 0x284   :  { %5486 = vmatpush1.bf16.msra.mxu1 %v5485_v63  ;;  %v9068_v63 = vld [vmem:[#allocation70_spill] sm:$0xff]  ;;  %v5495_v49 = vpack.c.bf16 %v9074_v31, %v9073_v58  ;;  %v9084_v31 = vld [vmem:[#allocation93_spill] sm:$0xff] }
 0x285   :  { %5488 = vmatprep.subr.bf16.mxu1 %v5487_v62  ;;  %v9072_v62 = vld [vmem:[#allocation76_spill] sm:$0xff]  ;;  %v9085_v58 = vld [vmem:[#allocation94_spill] sm:$0xff] }
 0x286   :  { %5078 = vmatpush1.bf16.msra.mxu0 %v5077_v13  ;;  %v9067_v13 = vld [vmem:[#allocation68_spill] sm:$0xff] }
 0x287   :  { %5080 = vmatprep.subr.bf16.mxu0 %v5079_v39  ;;  %v5085_v22 = vpack.c.bf16 %v9068_v63, %v9067_v13  ;;  %v9071_v39 = vld [vmem:[#allocation75_spill] sm:$0xff]  ;;  %v9079_v63 = vld [vmem:[#allocation85_spill] sm:$0xff] }
 0x288   :  { %5490 = vmatpush1.bf16.msra.mxu1 %v5489_v45  ;;  %v5087_v46 = vpack.c.bf16 %v9072_v62, %v9071_v39  ;;  %v9077_v45 = vld [vmem:[#allocation82_spill] sm:$0xff]  ;;  %v5497_v13 = vpack.c.bf16 %v9079_v63, %v9078_v0  ;;  %v9083_v62 = vld [vmem:[#allocation91_spill] sm:$0xff]  ;;  %v9089_v63 = vld [vmem:[#allocation100_spill] sm:$0xff] }
 0x289   :  { %2439 = vmatmul.mubr.f32.vlgmr.msra.gmra.mrb[4].mxu0 %v9066_v11  ;;  %5492 = vmatprep.subr.bf16.mxu1 %v5491_v21  ;;  %v9081_v21 = vld [vmem:[#allocation88_spill] sm:$0xff]  ;;  %v5499_v39 = vpack.c.bf16 %v9083_v62, %v9082_v28  ;;  %v9091_v0 = vld [vmem:[#allocation103_spill] sm:$0xff]  ;;  %v9093_v62 = vld [vmem:[#allocation106_spill] sm:$0xff] }
 0x28a   :  { %5082 = vmatpush1.bf16.msra.mxu0 %v5081_v52  ;;  %2639 = vmatprep.mubr.f32.mxu0 %v9075_v10  ;;  %v9076_v52 = vld [vmem:[#allocation81_spill] sm:$0xff] }
 0x28b   :  { %5084 = vmatprep.subr.bf16.mxu0 %v5083_v14  ;;  %v5089_v11 = vpack.c.bf16 %v9077_v45, %v9076_v52  ;;  %v9080_v14 = vld [vmem:[#allocation87_spill] sm:$0xff]  ;;  %v9095_v28 = vld [vmem:[#allocation109_spill] sm:$0xff] }
 0x28c   :  { %5494 = vmatpush1.bf16.msra.mxu1 %v5493_v50  ;;  %v5091_v55 = vpack.c.bf16 %v9081_v21, %v9080_v14  ;;  %v9086_v50 = vld [vmem:[#allocation96_spill] sm:$0xff]  ;;  %v9088_v45 = vld [vmem:[#allocation99_spill] sm:$0xff]  ;;  %v9092_v21 = vld [vmem:[#allocation105_spill] sm:$0xff] }
 0x28d   :  { %5496 = vmatprep.subr.bf16.mxu1 %v5495_v49  ;;  %v5501_v19 = vpack.c.bf16 %v9087_v35, %v9086_v50  ;;  %v9090_v49 = vld [vmem:[#allocation102_spill] sm:$0xff]  ;;  %v9097_v35 = vld [vmem:[#allocation112_spill] sm:$0xff]  ;;  %v9099_v50 = vld [vmem:[#allocation115_spill] sm:$0xff] }
 0x28e   :  { %5086 = vmatpush1.bf16.msra.mxu0 %v5085_v22  ;;  %v5093_v22 = vpack.c.bf16 %v9085_v58, %v9084_v31  ;;  %v5503_v52 = vpack.c.bf16 %v9091_v0, %v9090_v49  ;;  %v9096_v58 = vld [vmem:[#allocation111_spill] sm:$0xff]  ;;  %v9101_v0 = vld [vmem:[#allocation118_spill] sm:$0xff] }
 0x28f   :  { %5088 = vmatprep.subr.bf16.mxu0 %v5087_v46  ;;  %v5095_v46 = vpack.c.bf16 %v9089_v63, %v9088_v45  ;;  %v9100_v63 = vld [vmem:[#allocation117_spill] sm:$0xff] }
 0x290   :  { %5498 = vmatpush1.bf16.msra.mxu1 %v5497_v13  ;;  %v9094_v13 = vld [vmem:[#allocation108_spill] sm:$0xff] }
 0x291   :  { %5500 = vmatprep.subr.bf16.mxu1 %v5499_v39  ;;  %v5505_v14 = vpack.c.bf16 %v9095_v28, %v9094_v13  ;;  %v9098_v39 = vld [vmem:[#allocation114_spill] sm:$0xff] }
 0x292   :  { %5090 = vmatpush1.bf16.msra.mxu0 %v5089_v11  ;;  %v5097_v11 = vpack.c.bf16 %v9093_v62, %v9092_v21  ;;  %v5507_v31 = vpack.c.bf16 %v9099_v50, %v9098_v39  ;;  %v9103_v62 = vld [vmem:[#allocation120_spill] sm:$0xff] }
 0x293   :  { %5092 = vmatprep.subr.bf16.mxu0 %v5091_v55  ;;  %v5099_v55 = vpack.c.bf16 %v9097_v35, %v9096_v58  ;;  %v9108_v35 = vld [vmem:[#allocation127_spill] sm:$0xff]  ;;  %v9109_v58 = vld [vmem:[#allocation126_spill] sm:$0xff] }
 0x294   :  { %5502 = vmatpush1.bf16.msra.mxu1 %v5501_v19  ;;  %v9102_v19 = vld [vmem:[#allocation121_spill] sm:$0xff]  ;;  %v9110_v13 = vpack.c.bf16 %v9108_v35, %v9109_v58  ;;  %v9127_v58 = vld [vmem:[#allocation144_spill] sm:$0xff] }
 0x295   :  { %5504 = vmatprep.subr.bf16.mxu1 %v5503_v52  ;;  %v9104_v21 = vpack.c.bf16 %v9102_v19, %v9103_v62  ;;  %v9106_v52 = vld [vmem:[#allocation123_spill] sm:$0xff]  ;;  %v9121_v62 = vld [vmem:[#allocation138_spill] sm:$0xff] }
 0x296   :  { %5094 = vmatpush1.bf16.msra.mxu0 %v5093_v22  ;;  %v5101_v22 = vpack.c.bf16 %v9101_v0, %v9100_v63  ;;  %v9114_v0 = vld [vmem:[#allocation133_spill] sm:$0xff]  ;;  %v9118_v63 = vld [vmem:[#allocation135_spill] sm:$0xff] }
 0x297   :  { %5096 = vmatprep.subr.bf16.mxu0 %v5095_v46  ;;  %v9105_v46 = vld [vmem:[#allocation124_spill] sm:$0xff] }
 0x298   :  { %5506 = vmatpush1.bf16.msra.mxu1 %v5505_v14  ;;  %v9107_v28 = vpack.c.bf16 %v9105_v46, %v9106_v52  ;;  %v9112_v14 = vld [vmem:[#allocation129_spill] sm:$0xff] }
 0x299   :  { %5508 = vmatprep.subr.bf16.mxu1 %v5507_v31  ;;  %v9124_v52 = vld [vmem:[#allocation141_spill] sm:$0xff] }
 0x29a   :  { %5098 = vmatpush1.bf16.msra.mxu0 %v5097_v11  ;;  %v9111_v11 = vld [vmem:[#allocation130_spill] sm:$0xff] }
 0x29b   :  { %5100 = vmatprep.subr.bf16.mxu0 %v5099_v55  ;;  %v9113_v50 = vpack.c.bf16 %v9111_v11, %v9112_v14  ;;  %v9115_v55 = vld [vmem:[#allocation132_spill] sm:$0xff]  ;;  %v9130_v14 = vld [vmem:[#allocation147_spill] sm:$0xff] }
 0x29c   :  { %5510 = vmatpush1.bf16.msra.mxu1 %v9104_v21  ;;  %v9116_v31 = vpack.c.bf16 %v9114_v0, %v9115_v55  ;;  %v9120_v21 = vld [vmem:[#allocation139_spill] sm:$0xff] }
 0x29d   :  { %5512 = vmatprep.subr.bf16.mxu1 %v9110_v13  ;;  %v9122_v46 = vpack.c.bf16 %v9120_v21, %v9121_v62  ;;  %v9126_v13 = vld [vmem:[#allocation145_spill] sm:$0xff] }
 0x29e   :  { %5102 = vmatpush1.bf16.msra.mxu0 %v5101_v22  ;;  %v9117_v22 = vld [vmem:[#allocation136_spill] sm:$0xff]  ;;  %v9128_v11 = vpack.c.bf16 %v9126_v13, %v9127_v58 }
 0x29f   :  { %5104 = vmatprep.subr.bf16.mxu0 %v9107_v28  ;;  %v9119_v19 = vpack.c.bf16 %v9117_v22, %v9118_v63  ;;  %v9123_v28 = vld [vmem:[#allocation142_spill] sm:$0xff] }
 0x2a0   :  { %5514 = vmatpush1.bf16.msra.mxu1 %v9116_v31  ;;  %v9125_v35 = vpack.c.bf16 %v9123_v28, %v9124_v52  ;;  %v9132_v31 = vld [vmem:[#allocation150_spill] sm:$0xff] }
 0x2a1   :  { %5516 = vmatprep.subr.bf16.mxu1 %v9122_v46  ;;  %v9133_v22 = vpack.c.bf16 %v8963_v1, %v9132_v31  ;;  %v9135_v46 = vpack.c.bf16 %v8967_v17, %v8966_v36 }
 0x2a2   :  { %5106 = vmatpush1.bf16.msra.mxu0 %v9113_v50  ;;  %v9129_v50 = vld [vmem:[#allocation148_spill] sm:$0xff] }
 0x2a3   :  { %5108 = vmatprep.subr.bf16.mxu0 %v9119_v19  ;;  %v9131_v0 = vpack.c.bf16 %v9129_v50, %v9130_v14  ;;  %v9134_v19 = vpack.c.bf16 %v8965_v34, %v8964_v59 }
 0x2a4   :  { %5518 = vmatpush1.bf16.msra.mxu1 %v9128_v11  ;;  %v9137_v11 = vld [vmem:[#allocation164_spill] sm:$0xff] }
 0x2a5   :  { %5520 = vmatprep.subr.bf16.mxu1 %v9133_v22  ;;  %v9138_v50 = vpack.c.bf16 %v8971_v16, %v9137_v11  ;;  %v9141_v22 = vpack.c.bf16 %v8975_v43, %v8974_v40  ;;  %v9148_v43 = vld [vmem:[#allocation20_spill] sm:$0xff] }
 0x2a6   :  { %5110 = vmatpush1.bf16.msra.mxu0 %v9125_v35  ;;  %v9136_v35 = vpack.c.bf16 %v8969_v51, %v8968_v41  ;;  %v9144_v51 = vld [vmem:[#allocation173_spill] sm:$0xff] }
 0x2a7   :  { %5112 = vmatprep.subr.bf16.mxu0 %v9131_v0  ;;  %v9139_v0 = vld [vmem:[#allocation167_spill] sm:$0xff] }
 0x2a8   :  { %5522 = vmatpush1.bf16.msra.mxu1 %v9135_v46  ;;  %v9140_v1 = vpack.c.bf16 %v8973_v47, %v9139_v0  ;;  %v9143_v46 = vld [vmem:[#allocation12_spill] sm:$0xff] }
 0x2a9   :  { %5524 = vmatprep.subr.bf16.mxu1 %v9138_v50  ;;  %v9146_v50 = vld [vmem:[#allocation17_spill] sm:$0xff] }
 0x2aa   :  { %5114 = vmatpush1.bf16.msra.mxu0 %v9134_v19  ;;  %v9142_v19 = vpack.c.bf16 %v8977_v6, %v8976_v20 }
 0x2ab   :  { %5116 = vmatprep.subr.bf16.mxu0 %v9136_v35  ;;  %v9145_v35 = vpack.c.bf16 %v8979_v8, %v8978_v53 }
 0x2ac   :  { %5526 = vmatpush1.bf16.msra.mxu1 %v9141_v22  ;;  %v9149_v22 = vand.u32 4294901760, %v9035_v44  ;;  %v9156_v44 = vpack.c.bf16 %v9015_v48, %v8988_v2 }
 0x2ad   :  { %5528 = vmatprep.subr.bf16.mxu1 %v9143_v46  ;;  %v9151_v46 = vld [vmem:[#allocation23_spill] sm:$0xff] }
 0x2ae   :  { %5118 = vmatpush1.bf16.msra.mxu0 %v9140_v1  ;;  %v9147_v1 = vpack.c.bf16 %v8981_v56, %v8980_v18 }
 0x2af   :  { %5120 = vmatprep.subr.bf16.mxu0 %v9142_v19  ;;  %3926 = vmatmul.mubr.f32.vlgmr.msra.gmra.mrb[6].mxu1 %v9144_v51  ;;  %v9150_v19 = vpack.c.bf16 %v8983_v33, %v8982_v27 }
 0x2b0   :  { %5530 = vmatpush1.bf16.msra.mxu1 %v9146_v50  ;;  %4063 = vmatprep.mubr.f32.mxu1 %v9149_v22  ;;  %v9153_v50 = vld [vmem:[#allocation26_spill] sm:$0xff]  ;;  %v9157_v22 = vld [vmem:[#allocation32_spill] sm:$0xff] }
 0x2b1   :  { %5532 = vmatprep.subr.bf16.mxu1 %v9148_v43  ;;  %v9155_v43 = vld [vmem:[#allocation29_spill] sm:$0xff] }
 0x2b2   :  { %5122 = vmatpush1.bf16.msra.mxu0 %v9145_v35  ;;  %v9152_v35 = vpack.c.bf16 %v8985_v37, %v8984_v5 }
 0x2b3   :  { %5124 = vmatprep.subr.bf16.mxu0 %v9147_v1  ;;  %v9154_v1 = vpack.c.bf16 %v8987_v29, %v8986_v3 }
 0x2b4   :  { %5534 = vmatpush1.bf16.msra.mxu1 %v9151_v46  ;;  %v9159_v46 = vld [vmem:[#allocation35_spill] sm:$0xff] }
 0x2b5   :  { %5536 = vmatprep.subr.bf16.mxu1 %v9153_v50  ;;  %v9161_v50 = vld [vmem:[#allocation38_spill] sm:$0xff] }
 0x2b6   :  { %5126 = vmatpush1.bf16.msra.mxu0 %v9150_v19  ;;  %v9158_v19 = vpack.c.bf16 %v8991_v25, %v8990_v60 }
 0x2b7   :  { %5128 = vmatprep.subr.bf16.mxu0 %v9152_v35  ;;  %v9160_v35 = vpack.c.bf16 %v8993_v61, %v8992_v15  ;;  %v9166_v61 = vpack.c.bf16 %v9039_v23, %v9038_v7  ;;  %v9180_v23 = vld [vmem:[#allocation80_spill] sm:$0xff]  ;;  %v9217_v15 = vld [vmem:[#allocation174_spill] sm:$0xff] }
 0x2b8   :  { %5538 = vmatpush1.bf16.msra.mxu1 %v9155_v43  ;;  %v9163_v43 = vld [vmem:[#allocation41_spill] sm:$0xff] }
 0x2b9   :  { %5540 = vmatprep.subr.bf16.mxu1 %v9157_v22  ;;  %v9165_v22 = vld [vmem:[#allocation44_spill] sm:$0xff] }
 0x2ba   :  { %5130 = vmatpush1.bf16.msra.mxu0 %v9154_v1  ;;  %v9162_v1 = vpack.c.bf16 %v8995_v38, %v8994_v9  ;;  %v9169_v38 = vld [vmem:[#allocation53_spill] sm:$0xff] }
 0x2bb   :  { %5132 = vmatprep.subr.bf16.mxu0 %v9156_v44  ;;  %v9164_v44 = vpack.c.bf16 %v8997_v24, %v8996_v4  ;;  %v9172_v24 = vld [vmem:[#allocation59_spill] sm:$0xff]  ;;  %v9194_v4 = vld [vmem:[#allocation122_spill] sm:$0xff] }
 0x2bc   :  { %5542 = vmatpush1.bf16.msra.mxu1 %v9159_v46 }
 0x2bd   :  { %5544 = vmatprep.subr.bf16.mxu1 %v9161_v50  ;;  %v9168_v50 = vld [vmem:[#allocation50_spill] sm:$0xff] }
 0x2be   :  { %5134 = vmatpush1.bf16.msra.mxu0 %v9158_v19 }
 0x2bf   :  { %5136 = vmatprep.subr.bf16.mxu0 %v9160_v35  ;;  %v9167_v35 = vld [vmem:[#allocation47_spill] sm:$0xff] }
 0x2c0   :  { %5546 = vmatpush1.bf16.msra.mxu1 %v9163_v43  ;;  %v9171_v43 = vld [vmem:[#allocation56_spill] sm:$0xff] }
 0x2c1   :  { %5548 = vmatprep.subr.bf16.mxu1 %v9165_v22  ;;  %v1288_v19 = vpop.f32.mrb[4].mxu1  ;;  %v9174_v22 = vld [vmem:[#allocation65_spill] sm:$0xff] }
 0x2c2   :  { %5138 = vmatpush1.bf16.msra.mxu0 %v9162_v1  ;;  %v4853_v46 = vpop.f32.mrb[5].mxu1  ;;  %v9170_v1 = vld [vmem:[#allocation216_spill] sm:$0xff] }
 0x2c3   :  { %5140 = vmatprep.subr.bf16.mxu0 %v9164_v44  ;;  %v9173_v44 = vld [vmem:[#allocation62_spill] sm:$0xff]  ;;  %v9175_v46 = vand.u32 4294901760, %v9075_v10  ;;  %v9185_v10 = vld [vmem:[#allocation95_spill] sm:$0xff] }
 0x2c4   :  { %5550 = vmatpush1.bf16.msra.mxu1 %v9167_v35  ;;  %v9177_v35 = vld [vmem:[#allocation71_spill] sm:$0xff] }
 0x2c5   :  { %5552 = vmatprep.subr.bf16.mxu1 %v9169_v38  ;;  %v9179_v38 = vld [vmem:[#allocation77_spill] sm:$0xff] }
 0x2c6   :  { %5142 = vmatpush1.bf16.msra.mxu0 %v9166_v61  ;;  %v9176_v61 = vld [vmem:[#allocation69_spill] sm:$0xff] }
 0x2c7   :  { %5144 = vmatprep.subr.bf16.mxu0 %v9168_v50  ;;  %v9178_v50 = vld [vmem:[#allocation74_spill] sm:$0xff] }
 0x2c8   :  { %5554 = vmatpush1.bf16.msra.mxu1 %v9172_v24  ;;  %v9182_v24 = vld [vmem:[#allocation86_spill] sm:$0xff] }
 0x2c9   :  { %2642 = vmatmul.mubr.f32.vlgmr.msra.gmra.mrb[4].mxu0 %v9170_v1  ;;  %5556 = vmatprep.subr.bf16.mxu1 %v9174_v22  ;;  %v9184_v22 = vld [vmem:[#allocation92_spill] sm:$0xff] }
 0x2ca   :  { %5146 = vmatpush1.bf16.msra.mxu0 %v9171_v43  ;;  %2779 = vmatprep.mubr.f32.mxu0 %v9175_v46  ;;  %v9181_v43 = vld [vmem:[#allocation83_spill] sm:$0xff]  ;;  %v9186_v46 = vld [vmem:[#allocation98_spill] sm:$0xff] }
 0x2cb   :  { %5148 = vmatprep.subr.bf16.mxu0 %v9173_v44  ;;  %v9183_v44 = vld [vmem:[#allocation89_spill] sm:$0xff] }
 0x2cc   :  { %5558 = vmatpush1.bf16.msra.mxu1 %v9177_v35  ;;  %v9188_v35 = vld [vmem:[#allocation104_spill] sm:$0xff] }
 0x2cd   :  { %5560 = vmatprep.subr.bf16.mxu1 %v9179_v38  ;;  %v9190_v38 = vld [vmem:[#allocation110_spill] sm:$0xff] }
 0x2ce   :  { %5150 = vmatpush1.bf16.msra.mxu0 %v9176_v61  ;;  %v9187_v61 = vld [vmem:[#allocation101_spill] sm:$0xff] }
 0x2cf   :  { %5152 = vmatprep.subr.bf16.mxu0 %v9178_v50  ;;  %v9189_v50 = vld [vmem:[#allocation107_spill] sm:$0xff] }
 0x2d0   :  { %5562 = vmatpush1.bf16.msra.mxu1 %v9181_v43 }
 0x2d1   :  { %5564 = vmatprep.subr.bf16.mxu1 %v9183_v44  ;;  %v9192_v44 = vld [vmem:[#allocation116_spill] sm:$0xff] }
 0x2d2   :  { %5154 = vmatpush1.bf16.msra.mxu0 %v9180_v23  ;;  %v9191_v23 = vld [vmem:[#allocation113_spill] sm:$0xff] }
 0x2d3   :  { %5156 = vmatprep.subr.bf16.mxu0 %v9182_v24 }
 0x2d4   :  { %5566 = vmatpush1.bf16.msra.mxu1 %v9185_v10 }
 0x2d5   :  { %5568 = vmatprep.subr.bf16.mxu1 %v9187_v61  ;;  %v9215_v61 = vld [vmem:[#allocation19_spill] sm:$0xff] }
 0x2d6   :  { %5158 = vmatpush1.bf16.msra.mxu0 %v9184_v22  ;;  %v9193_v22 = vld [vmem:[#allocation119_spill] sm:$0xff] }
 0x2d7   :  { %5160 = vmatprep.subr.bf16.mxu0 %v9186_v46  ;;  %v9195_v46 = vld [vmem:[#allocation125_spill] sm:$0xff] }
 0x2d8   :  { %5570 = vmatpush1.bf16.msra.mxu1 %v9189_v50  ;;  %v9197_v50 = vld [vmem:[#allocation131_spill] sm:$0xff] }
 0x2d9   :  { %5572 = vmatprep.subr.bf16.mxu1 %v9191_v23  ;;  %v1658_v43 = vpop.f32.mrb[2].mxu0  ;;  %v9199_v23 = vld [vmem:[#allocation137_spill] sm:$0xff] }
 0x2da   :  { %5162 = vmatpush1.bf16.msra.mxu0 %v9188_v35  ;;  %v5720_v24 = vadd.f32 %v1658_v43, %v1288_v19  ;;  %v4878_v7 = vpop.f32.mrb[3].mxu0  ;;  %v9196_v35 = vld [vmem:[#allocation128_spill] sm:$0xff]  ;;  %v9202_v19 = vld [vmem:[#allocation146_spill] sm:$0xff] }
 0x2db   :  { %5164 = vmatprep.subr.bf16.mxu0 %v9190_v38  ;;  %v9198_v38 = vld [vmem:[#allocation134_spill] sm:$0xff]  ;;  %v9200_v43 = vld [vmem:[#allocation140_spill] sm:$0xff]  ;;  %v9201_v7 = vld [vmem:[#allocation143_spill] sm:$0xff] }
 0x2dc   :  { %5574 = vmatpush1.bf16.msra.mxu1 %v9193_v22  ;;  %v4640_v10 = vmul.f32 -1.442695, %v5720_v24  ;;  %v9203_v24 = vld [vmem:[#allocation149_spill] sm:$0xff] }
 0x2dd   :  { %5576 = vmatprep.subr.bf16.mxu1 %v9195_v46  ;;  %v9205_v46 = vld [vmem:[#allocation156_spill] sm:$0xff] }
 0x2de   :  { %5166 = vmatpush1.bf16.msra.mxu0 %v9192_v44  ;;  %5778 = vpow2.f32 %v4640_v10 }
 0x2df   :  { %5168 = vmatprep.subr.bf16.mxu0 %v9194_v4  ;;  %v9204_v4 = vld [vmem:[#allocation153_spill] sm:$0xff] }
 0x2e0   :  { %5578 = vmatpush1.bf16.msra.mxu1 %v9197_v50  ;;  %v9207_v50 = vld [vmem:[#allocation163_spill] sm:$0xff] }
 0x2e1   :  { %5580 = vmatprep.subr.bf16.mxu1 %v9199_v23  ;;  %v9209_v23 = vld [vmem:[#allocation14_spill] sm:$0xff] }
 0x2e2   :  { %5170 = vmatpush1.bf16.msra.mxu0 %v9196_v35  ;;  %v9206_v35 = vld [vmem:[#allocation159_spill] sm:$0xff]  ;;  %v9210_v22 = vand.u32 4294901760, %v9209_v23 }
 0x2e3   :  { %5172 = vmatprep.subr.bf16.mxu0 %v9198_v38  ;;  %v9208_v38 = vand.u32 4294901760, %v9016_v26  ;;  %v9219_v26 = vld [vmem:[#allocation22_spill] sm:$0xff] }
 0x2e4   :  { %5582 = vmatpush1.bf16.msra.mxu1 %v9201_v7  ;;  %v9211_v7 = vld [vmem:[#allocation166_spill] sm:$0xff] }
 0x2e5   :  { %5584 = vmatprep.subr.bf16.mxu1 %v9203_v24  ;;  %v9213_v24 = vld [vmem:[#allocation18_spill] sm:$0xff] }
 0x2e6   :  { %5174 = vmatpush1.bf16.msra.mxu0 %v9200_v43  ;;  %v5591_v43 = vpack.c.bf16 %v9210_v22, %v9208_v38  ;;  %v9221_v38 = vand.u32 4294901760, %v9144_v51  ;;  %v9222_v22 = vld [vmem:[#allocation177_spill] sm:$0xff]  ;;  %v9233_v51 = vld [vmem:[#allocation184_spill] sm:$0xff] }
 0x2e7   :  { %5176 = vmatprep.subr.bf16.mxu0 %v9202_v19  ;;  %v9212_v19 = vld [vmem:[#allocation170_spill] sm:$0xff] }
 0x2e8   :  { %5586 = vmatpush1.bf16.msra.mxu1 %v9205_v46  ;;  %v5779_v10 = vpop.eup %5778  ;;  %v9216_v46 = vand.u32 4294901760, %v9215_v61 }
 0x2e9   :  { %5588 = vmatprep.subr.bf16.mxu1 %v9207_v50  ;;  %v1665_v44 = vadd.f32 1.0, %v5779_v10  ;;  %v9218_v50 = vand.u32 4294901760, %v9020_v42  ;;  %v9230_v42 = vld [vmem:[#allocation28_spill] sm:$0xff] }
 0x2ea   :  { %5178 = vmatpush1.bf16.msra.mxu0 %v9204_v4  ;;  %v9214_v4 = vand.u32 4294901760, %v9213_v24  ;;  %v9225_v24 = vld [vmem:[#allocation25_spill] sm:$0xff] }
 0x2eb   :  { %5180 = vmatprep.subr.bf16.mxu0 %v9206_v35  ;;  %5780 = vrcp.f32 %v1665_v44  ;;  %v9220_v35 = vand.u32 4294901760, %v9219_v26  ;;  %v9223_v44 = vld [vmem:[#allocation24_spill] sm:$0xff] }
 0x2ec   :  { %5590 = vmatpush1.bf16.msra.mxu1 %v9212_v19  ;;  %v5593_v9 = vpack.c.bf16 %v9216_v46, %v9214_v4  ;;  %v9224_v10 = vand.u32 4294901760, %v9223_v44  ;;  %v9226_v19 = vand.u32 4294901760, %v9225_v24  ;;  %v9227_v4 = vld [vmem:[#allocation180_spill] sm:$0xff]  ;;  %v9228_v46 = vld [vmem:[#allocation27_spill] sm:$0xff] }
 0x2ed   :  { %5592 = vmatprep.subr.bf16.mxu1 %v5591_v43  ;;  %v5595_v23 = vpack.c.bf16 %v9220_v35, %v9218_v50  ;;  %v9229_v43 = vand.u32 4294901760, %v9228_v46  ;;  %v9232_v50 = vld [vmem:[#allocation152_spill] sm:$0xff]  ;;  %v9234_v35 = vld [vmem:[#allocation30_spill] sm:$0xff] }
 0x2ee   :  { %5182 = vmatpush1.bf16.msra.mxu0 %v9211_v7  ;;  %v5597_v61 = vpack.c.bf16 %v9226_v19, %v9224_v10  ;;  %v4641_v19 = vld [vmem:[%s8150_s3] ss:$0 sm:$0xff]  ;;  %v9239_v10 = vld [vmem:[#allocation33_spill] sm:$0xff]  ;;  %s5890_s3 = smov [#allocation7]  }
 0x2ef   :  { %5184 = vmatprep.subr.bf16.mxu0 %v9217_v15  ;;  %4067 = vmatmul.mubr.f32.vlgmr.msra.gmra.mrb[6].mxu1 %v9221_v38  ;;  %v9231_v15 = vand.u32 4294901760, %v9230_v42  ;;  %v9236_v38 = vld [vmem:[#allocation31_spill] sm:$0xff]  ;;  %v9240_v24 = vand.u32 4294901760, %v9239_v10  ;;  %v9250_v10 = vand.u32 4294901760, %v9046_v30  ;;  %s8129_s27 = sshll.u32 %s5890_s3, 4  ;;  %s4628_s27 = int_to_ptr.vmem [resolvable:$true] %s8129_s27 }
 0x2f0   :  { %5594 = vmatpush1.bf16.msra.mxu1 %v5593_v9  ;;  %4330 = vmatprep.mubr.f32.mxu1 %v9232_v50  ;;  %v9235_v9 = vand.u32 4294901760, %v9234_v35  ;;  %v9237_v44 = vand.u32 4294901760, %v9236_v38  ;;  %v9244_v35 = vld [vmem:[#allocation191_spill] sm:$0xff]  ;;  %s5854_s30 = scalar_lea.vmem %s4628_s27, 2048  ;;  %p5859_p3 = scmp.lt.s32.totalorder %s4628_s27, %s4628_s27 }
 0x2f1   :  { %5596 = vmatprep.subr.bf16.mxu1 %v5595_v23  ;;  %v5599_v26 = vpack.c.bf16 %v9231_v15, %v9229_v43  ;;  %v9238_v23 = vld [vmem:[#allocation188_spill] sm:$0xff]  ;;  %v9241_v15 = vld [vmem:[#allocation34_spill] sm:$0xff]  ;;  %p5855_p2 = scmp.ne.s32.totalorder %s4628_s27, %s5854_s30  ;;  %p5860_p4 = scmp.lt.s32.totalorder %s5854_s30, %s5854_s30 }
 0x2f2   :  { %5186 = vmatpush1.bf16.msra.mxu0 %v9222_v22  ;;  %v5601_v22 = vpack.c.bf16 %v9237_v44, %v9235_v9  ;;  %v9242_v46 = vand.u32 4294901760, %v9241_v15  ;;  %v9245_v9 = vld [vmem:[#allocation36_spill] sm:$0xff]  ;;  %v9247_v44 = vld [vmem:[#allocation37_spill] sm:$0xff] }
 0x2f3   :  { %5188 = vmatprep.subr.bf16.mxu0 %v9227_v4  ;;  %v9246_v38 = vand.u32 4294901760, %v9245_v9  ;;  %p5861_p5 = por %p5860_p4, %p5859_p3 }
 0x2f4   :  { %5598 = vmatpush1.bf16.msra.mxu1 %v5597_v61  ;;  %v5603_v43 = vpack.c.bf16 %v9242_v46, %v9240_v24  ;;  %v9251_v24 = vand.u32 4294901760, %v9047_v54  ;;  %v9252_v46 = vld [vmem:[#allocation197_spill] sm:$0xff]  ;;  %v9260_v54 = vld [vmem:[#allocation48_spill] sm:$0xff] }
 0x2f5   :  { %5600 = vmatprep.subr.bf16.mxu1 %v5599_v26  ;;  %v7814_v42 = vpop.eup %5780  ;;  %p5862_p6 = pnand %p5861_p5, %p5855_p2 }
 0x2f6   :  { %5190 = vmatpush1.bf16.msra.mxu0 %v9233_v51  ;;  %9243 = vst [vmem:[#allocation16_spill] sm:$0xff] %v7814_v42  ;;  %v1675_v61 = vmul.f32 %v7814_v42, %v4641_v19  ;;  %v9248_v51 = vand.u32 4294901760, %v9247_v44  ;;  %v5607_v15 = vpack.c.bf16 %v9251_v24, %v9250_v10  ;;  %v9254_v19 = vand.u32 4294901760, %v9049_v12  ;;  %v9255_v44 = vld [vmem:[#allocation201_spill] sm:$0xff]  ;;  %v9265_v12 = vld [vmem:[#allocation51_spill] sm:$0xff] }
 0x2f7   :  { %5192 = vmatprep.subr.bf16.mxu0 %v9238_v23  ;;  %v9249_v23 = vld [vmem:[#allocation195_spill] sm:$0xff]  ;;  %v9262_v10 = vld [vmem:[#allocation49_spill] sm:$0xff] }
 0x2f8   :  { %5602 = vmatpush1.bf16.msra.mxu1 %v5601_v22  ;;  %v5605_v4 = vpack.c.bf16 %v9248_v51, %v9246_v38  ;;  %v1677_v26 = vsel %vm1676_vm8, %v1675_v61, 0.0  ;;  %v9253_v22 = vand.u32 4294901760, %v9048_v32  ;;  %v9256_v51 = vand.u32 4294901760, %v9050_v57  ;;  %v9259_v38 = vld [vmem:[#allocation206_spill] sm:$0xff]  ;;  %v9264_v32 = vld [vmem:[#allocation15_spill] sm:$0xff] }
 0x2f9   :  { %5604 = vmatprep.subr.bf16.mxu1 %v5603_v43  ;;  %1678 = vadd.xlane.f32.xlu0 %v1677_v26  ;;  %v9257_v43 = vld [vmem:[#allocation46_spill] sm:$0xff]  ;;  %v9261_v26 = vand.u32 4294901760, %v9260_v54 }
 0x2fa   :  { %5194 = vmatpush1.bf16.msra.mxu0 %v9244_v35  ;;  %v5609_v9 = vpack.c.bf16 %v9254_v19, %v9253_v22  ;;  %v9258_v61 = vand.u32 4294901760, %v9257_v43  ;;  %v9266_v22 = vand.u32 4294901760, %v9265_v12  ;;  %v9267_v19 = vld [vmem:[#allocation52_spill] sm:$0xff]  ;;  %v9269_v57 = vld [vmem:[#allocation54_spill] sm:$0xff]  ;;  %v9271_v43 = vld [vmem:[#allocation55_spill] sm:$0xff] }
 0x2fb   :  { %5196 = vmatprep.subr.bf16.mxu0 %v9249_v23 }
 0x2fc   :  { %5606 = vmatpush1.bf16.msra.mxu1 %v5605_v4  ;;  %v5611_v30 = vpack.c.bf16 %v9258_v61, %v9256_v51  ;;  %v9263_v4 = vand.u32 4294901760, %v9262_v10  ;;  %v9272_v51 = vand.u32 4294901760, %v9271_v43  ;;  %v9276_v10 = vld [vmem:[#allocation58_spill] sm:$0xff] }
 0x2fd   :  { %5608 = vmatprep.subr.bf16.mxu1 %v5607_v15  ;;  %v9268_v15 = vand.u32 4294901760, %v9267_v19  ;;  %v9286_v43 = vld [vmem:[#allocation66_spill] sm:$0xff] }
 0x2fe   :  { %5198 = vmatpush1.bf16.msra.mxu0 %v9252_v46  ;;  %v5613_v24 = vpack.c.bf16 %v9263_v4, %v9261_v26  ;;  %v9277_v26 = vand.u32 4294901760, %v9276_v10  ;;  %v9280_v46 = vld [vmem:[#allocation61_spill] sm:$0xff]  ;;  %v9290_v10 = vand.u32 4294901760, %v9170_v1 }
 0x2ff   :  { %5200 = vmatprep.subr.bf16.mxu0 %v9255_v44  ;;  %v5207_v42 = vpack.c.bf16 %v9268_v15, %v9266_v22  ;;  %v9270_v44 = vand.u32 4294901760, %v9269_v57  ;;  %v9281_v12 = vand.u32 4294901760, %v9280_v46  ;;  %v9282_v22 = vld [vmem:[#allocation63_spill] sm:$0xff]  ;;  %v9284_v15 = vld [vmem:[#allocation64_spill] sm:$0xff] }
 0x300   :  { %5610 = vmatpush1.bf16.msra.mxu1 %v5609_v9  ;;  %v9274_v9 = vld [vmem:[#allocation57_spill] sm:$0xff]  ;;  %v9283_v19 = vand.u32 4294901760, %v9282_v22  ;;  %v9285_v57 = vand.u32 4294901760, %v9284_v15  ;;  %v9299_v15 = vld [vmem:[#allocation75_spill] sm:$0xff] }
 0x301   :  { %5612 = vmatprep.subr.bf16.mxu1 %v5611_v30  ;;  %v5615_v61 = vpack.c.bf16 %v9272_v51, %v9270_v44  ;;  %v9275_v54 = vand.u32 4294901760, %v9274_v9  ;;  %v9287_v51 = vand.u32 4294901760, %v9286_v43 }
 0x302   :  { %5202 = vmatpush1.bf16.msra.mxu0 %v9259_v38  ;;  %v9273_v38 = vld [vmem:[#allocation212_spill] sm:$0xff]  ;;  %v5211_v44 = vpack.c.bf16 %v9285_v57, %v9283_v19  ;;  %v9300_v57 = vand.u32 4294901760, %v9299_v15 }
 0x303   :  { %5204 = vmatprep.subr.bf16.mxu0 %v9264_v32  ;;  %v5209_v4 = vpack.c.bf16 %v9277_v26, %v9275_v54  ;;  %v9278_v32 = vld [vmem:[#allocation60_spill] sm:$0xff]  ;;  %v9293_v54 = vld [vmem:[#allocation70_spill] sm:$0xff] }
 0x304   :  { %5614 = vmatpush1.bf16.msra.mxu1 %v5613_v24  ;;  %v9279_v30 = vand.u32 4294901760, %v9278_v32  ;;  %v9288_v24 = vld [vmem:[#allocation67_spill] sm:$0xff]  ;;  %v9291_v32 = vld [vmem:[#allocation68_spill] sm:$0xff] }
 0x305   :  { %5616 = vmatprep.subr.bf16.mxu1 %v5615_v61  ;;  %v9292_v46 = vand.u32 4294901760, %v9291_v32  ;;  %v9295_v26 = vld [vmem:[#allocation72_spill] sm:$0xff]  ;;  %v9307_v32 = vld [vmem:[#allocation183_spill] sm:$0xff] }
 0x306   :  { %5206 = vmatpush1.bf16.msra.mxu0 %v9273_v38  ;;  %v5617_v23 = vpack.c.bf16 %v9281_v12, %v9279_v30  ;;  %v9289_v38 = vand.u32 4294901760, %v9288_v24  ;;  %v9296_v30 = vand.u32 4294901760, %v9295_v26  ;;  %v9297_v12 = vld [vmem:[#allocation73_spill] sm:$0xff] }
 0x307   :  { %5208 = vmatprep.subr.bf16.mxu0 %v5207_v42  ;;  %v9294_v42 = vand.u32 4294901760, %v9293_v54  ;;  %v9298_v22 = vand.u32 4294901760, %v9297_v12  ;;  %v9314_v12 = vld [vmem:[#allocation85_spill] sm:$0xff] }
 0x308   :  { %v5619_v9 = vpack.c.bf16 %v9289_v38, %v9287_v51  ;;  %5618 = vmatpush1.bf16.msra.mxu1 %v5617_v23  ;;  %v9301_v38 = vld [vmem:[#allocation76_spill] sm:$0xff]  ;;  %v9303_v51 = vld [vmem:[#allocation78_spill] sm:$0xff]  ;;  %v9305_v23 = vld [vmem:[#allocation79_spill] sm:$0xff] }
 0x309   :  { %2783 = vmatmul.mubr.f32.vlgmr.msra.gmra.mrb[4].mxu0 %v9290_v10  ;;  %v5213_v61 = vpack.c.bf16 %v9294_v42, %v9292_v46  ;;  %v5621_v19 = vpack.c.bf16 %v9298_v22, %v9296_v30  ;;  %v9302_v43 = vand.u32 4294901760, %v9301_v38  ;;  %v9306_v24 = vand.u32 4294901760, %v9305_v23  ;;  %v9308_v46 = vld [vmem:[#allocation81_spill] sm:$0xff]  ;;  %v9310_v42 = vld [vmem:[#allocation82_spill] sm:$0xff] }
 0x30a   :  { %5210 = vmatpush1.bf16.msra.mxu0 %v5209_v4  ;;  %5620 = vmatprep.subr.bf16.mxu1 %v5619_v9  ;;  %v9304_v4 = vand.u32 4294901760, %v9303_v51  ;;  %v9309_v54 = vand.u32 4294901760, %v9308_v46  ;;  %v9311_v26 = vand.u32 4294901760, %v9310_v42  ;;  %v9312_v9 = vld [vmem:[#allocation84_spill] sm:$0xff]  ;;  %v9315_v22 = vand.u32 4294901760, %v9314_v12  ;;  %v9320_v23 = vld [vmem:[#allocation90_spill] sm:$0xff] }
 0x30b   :  { %5212 = vmatprep.subr.bf16.mxu0 %v5211_v44  ;;  %v5215_v1 = vpack.c.bf16 %v9302_v43, %v9300_v57  ;;  %3046 = vmatprep.mubr.f32.mxu0 %v9307_v32  ;;  %v9313_v30 = vand.u32 4294901760, %v9312_v9  ;;  %v9316_v57 = vld [vmem:[#allocation87_spill] sm:$0xff]  ;;  %v9318_v43 = vld [vmem:[#allocation88_spill] sm:$0xff] }
 0x30c   :  { %v5623_v10 = vpack.c.bf16 %v9306_v24, %v9304_v4  ;;  %5622 = vmatpush1.bf16.msra.mxu1 %v5621_v19  ;;  %v5217_v44 = vpack.c.bf16 %v9311_v26, %v9309_v54  ;;  %v9317_v38 = vand.u32 4294901760, %v9316_v57  ;;  %v9319_v51 = vand.u32 4294901760, %v9318_v43  ;;  %v9322_v19 = vld [vmem:[#allocation91_spill] sm:$0xff]  ;;  %v9324_v54 = vld [vmem:[#allocation93_spill] sm:$0xff]  ;;  %v9326_v26 = vld [vmem:[#allocation94_spill] sm:$0xff] }
 0x30d   :  { %v5625_v15 = vpack.c.bf16 %v9315_v22, %v9313_v30  ;;  %v9323_v24 = vand.u32 4294901760, %v9322_v19  ;;  %v9325_v42 = vand.u32 4294901760, %v9324_v54  ;;  %v9327_v9 = vand.u32 4294901760, %v9326_v26  ;;  %v9328_v30 = vld [vmem:[#allocation96_spill] sm:$0xff] }
 0x30e   :  { %5214 = vmatpush1.bf16.msra.mxu0 %v5213_v61  ;;  %5624 = vmatprep.subr.bf16.mxu1 %v5623_v10  ;;  %v5219_v4 = vpack.c.bf16 %v9319_v51, %v9317_v38  ;;  %v9321_v61 = vand.u32 4294901760, %v9320_v23  ;;  %v9330_v10 = vld [vmem:[#allocation97_spill] sm:$0xff]  ;;  %v9332_v38 = vand.u32 4294901760, %v9088_v45  ;;  %v9333_v43 = vld [vmem:[#allocation100_spill] sm:$0xff] }
 0x30f   :  { %5216 = vmatprep.subr.bf16.mxu0 %v5215_v1  ;;  %v5221_v12 = vpack.c.bf16 %v9327_v9, %v9325_v42  ;;  %v9329_v1 = vand.u32 4294901760, %v9328_v30  ;;  %v9331_v22 = vand.u32 4294901760, %v9330_v10  ;;  %v9334_v51 = vand.u32 4294901760, %v9333_v43  ;;  %v9340_v42 = vld [vmem:[#allocation106_spill] sm:$0xff]  ;;  %v9342_v30 = vld [vmem:[#allocation108_spill] sm:$0xff]  ;;  %v9346_v10 = vld [vmem:[#allocation111_spill] sm:$0xff] }
 0x310   :  { %v5627_v46 = vpack.c.bf16 %v9323_v24, %v9321_v61  ;;  %5626 = vmatpush1.bf16.msra.mxu1 %v5625_v15  ;;  %v9336_v15 = vld [vmem:[#allocation103_spill] sm:$0xff]  ;;  %v9338_v24 = vld [vmem:[#allocation105_spill] sm:$0xff]  ;;  %v9341_v26 = vand.u32 4294901760, %v9340_v42 }
 0x311   :  { %v5629_v57 = vpack.c.bf16 %v9331_v22, %v9329_v1  ;;  %v5223_v23 = vpack.c.bf16 %v9334_v51, %v9332_v38  ;;  %v9337_v61 = vand.u32 4294901760, %v9336_v15  ;;  %v9339_v54 = vand.u32 4294901760, %v9338_v24  ;;  %v9353_v15 = vld [vmem:[#allocation117_spill] sm:$0xff]  ;;  %v9355_v24 = vld [vmem:[#allocation118_spill] sm:$0xff] }
 0x312   :  { %5218 = vmatpush1.bf16.msra.mxu0 %v5217_v44  ;;  %5628 = vmatprep.subr.bf16.mxu1 %v5627_v46  ;;  %v9335_v44 = vand.u32 4294901760, %v9090_v49  ;;  %v9344_v46 = vld [vmem:[#allocation109_spill] sm:$0xff]  ;;  %v9347_v22 = vand.u32 4294901760, %v9346_v10  ;;  %v9348_v49 = vld [vmem:[#allocation112_spill] sm:$0xff] }
 0x313   :  { %5220 = vmatprep.subr.bf16.mxu0 %v5219_v4  ;;  %v5225_v9 = vpack.c.bf16 %v9341_v26, %v9339_v54  ;;  %v9343_v4 = vand.u32 4294901760, %v9342_v30  ;;  %v9345_v1 = vand.u32 4294901760, %v9344_v46  ;;  %v9349_v38 = vand.u32 4294901760, %v9348_v49  ;;  %v9357_v26 = vld [vmem:[#allocation120_spill] sm:$0xff]  ;;  %v9361_v46 = vld [vmem:[#allocation123_spill] sm:$0xff]  ;;  %v9365_v49 = vld [vmem:[#allocation126_spill] sm:$0xff] }
 0x314   :  { %v5631_v19 = vpack.c.bf16 %v9337_v61, %v9335_v44  ;;  %5630 = vmatpush1.bf16.msra.mxu1 %v5629_v57  ;;  %v9351_v57 = vld [vmem:[#allocation115_spill] sm:$0xff]  ;;  %v9354_v61 = vand.u32 4294901760, %v9353_v15  ;;  %v9356_v54 = vand.u32 4294901760, %v9355_v24  ;;  %v9371_v15 = vld [vmem:[#allocation130_spill] sm:$0xff] }
 0x315   :  { %v5633_v45 = vpack.c.bf16 %v9345_v1, %v9343_v4  ;;  %v5227_v43 = vpack.c.bf16 %v9349_v38, %v9347_v22  ;;  %v9352_v51 = vand.u32 4294901760, %v9351_v57  ;;  %v9362_v1 = vand.u32 4294901760, %v9361_v46  ;;  %v9369_v57 = vld [vmem:[#allocation129_spill] sm:$0xff] }
 0x316   :  { %5222 = vmatpush1.bf16.msra.mxu0 %v5221_v12  ;;  %5632 = vmatprep.subr.bf16.mxu1 %v5631_v19  ;;  %v9350_v12 = vand.u32 4294901760, %v9098_v39  ;;  %v5229_v42 = vpack.c.bf16 %v9356_v54, %v9354_v61  ;;  %v9359_v19 = vld [vmem:[#allocation121_spill] sm:$0xff]  ;;  %v9363_v39 = vld [vmem:[#allocation124_spill] sm:$0xff]  ;;  %v9372_v61 = vand.u32 4294901760, %v9371_v15  ;;  %v9394_v15 = vand.u32 4294901760, %v8967_v17 }
 0x317   :  { %5224 = vmatprep.subr.bf16.mxu0 %v5223_v23  ;;  %v9358_v23 = vand.u32 4294901760, %v9357_v26  ;;  %v9360_v30 = vand.u32 4294901760, %v9359_v19  ;;  %v9364_v10 = vand.u32 4294901760, %v9363_v39  ;;  %v9377_v19 = vld [vmem:[#allocation136_spill] sm:$0xff]  ;;  %v9381_v39 = vand.u32 4294901760, %v9124_v52 }
 0x318   :  { %v5635_v44 = vpack.c.bf16 %v9352_v51, %v9350_v12  ;;  %5634 = vmatpush1.bf16.msra.mxu1 %v5633_v45  ;;  %v9367_v45 = vld [vmem:[#allocation127_spill] sm:$0xff]  ;;  %v9370_v51 = vand.u32 4294901760, %v9369_v57 }
 0x319   :  { %v5637_v4 = vpack.c.bf16 %v9360_v30, %v9358_v23  ;;  %v5231_v22 = vpack.c.bf16 %v9364_v10, %v9362_v1  ;;  %v9368_v38 = vand.u32 4294901760, %v9367_v45  ;;  %v9376_v23 = vand.u32 4294901760, %v9118_v63 }
 0x31a   :  { %5226 = vmatpush1.bf16.msra.mxu0 %v5225_v9  ;;  %5636 = vmatprep.subr.bf16.mxu1 %v5635_v44  ;;  %v9366_v9 = vand.u32 4294901760, %v9365_v49  ;;  %v5233_v24 = vpack.c.bf16 %v9372_v61, %v9370_v51  ;;  %v9374_v44 = vld [vmem:[#allocation133_spill] sm:$0xff]  ;;  %v9378_v30 = vand.u32 4294901760, %v9377_v19  ;;  %v9384_v49 = vand.u32 4294901760, %v9126_v13 }
 0x31b   :  { %5228 = vmatprep.subr.bf16.mxu0 %v5227_v43  ;;  %v9373_v43 = vand.u32 4294901760, %v9115_v55  ;;  %v9375_v54 = vand.u32 4294901760, %v9374_v44  ;;  %v9382_v55 = vand.u32 4294901760, %v9123_v28  ;;  %v9391_v28 = vand.u32 4294901760, %v8964_v59 }
 0x31c   :  { %v5639_v12 = vpack.c.bf16 %v9368_v38, %v9366_v9  ;;  %5638 = vmatpush1.bf16.msra.mxu1 %v5637_v4  ;;  %v5235_v46 = vpack.c.bf16 %v9378_v30, %v9376_v23  ;;  %v9380_v4 = vand.u32 4294901760, %v9120_v21  ;;  %v9385_v9 = vand.u32 4294901760, %v9130_v14  ;;  %v9403_v23 = vld [vmem:[#allocation172_spill] sm:$0xff] }
 0x31d   :  { %v5641_v26 = vpack.c.bf16 %v9375_v54, %v9373_v43  ;;  %v5237_v10 = vpack.c.bf16 %v9382_v55, %v9381_v39  ;;  %v9388_v38 = vand.u32 4294901760, %v9132_v31  ;;  %v9393_v51 = vand.u32 4294901760, %v8966_v36  ;;  %v9396_v31 = vld [vmem:[#allocation162_spill] sm:$0xff]  ;;  %v9412_v39 = vld [vmem:[#allocation168_spill] sm:$0xff] }
 0x31e   :  { %5230 = vmatpush1.bf16.msra.mxu0 %v5229_v42  ;;  %5640 = vmatprep.subr.bf16.mxu1 %v5639_v12  ;;  %v9379_v42 = vand.u32 4294901760, %v9121_v62  ;;  %v9386_v62 = vld [vmem:[#allocation148_spill] sm:$0xff]  ;;  %v9389_v12 = vld [vmem:[#allocation151_spill] sm:$0xff]  ;;  %v9395_v61 = vand.u32 4294901760, %v8968_v41  ;;  %v9398_v44 = vand.u32 4294901760, %v9137_v11  ;;  %v9399_v54 = vand.u32 4294901760, %v8971_v16 }
 0x31f   :  { %5232 = vmatprep.subr.bf16.mxu0 %v5231_v22  ;;  %v9383_v22 = vand.u32 4294901760, %v9127_v58  ;;  %v9387_v45 = vand.u32 4294901760, %v9386_v62  ;;  %v9390_v57 = vand.u32 4294901760, %v9389_v12  ;;  %v9392_v58 = vand.u32 4294901760, %v8965_v34  ;;  %v9431_v12 = vld [vmem:[#allocation204_spill] sm:$0xff] }
 0x320   :  { %v5643_v1 = vpack.c.bf16 %v9380_v4, %v9379_v42  ;;  %5642 = vmatpush1.bf16.msra.mxu1 %v5641_v26  ;;  %v5649_v14 = vpack.c.bf16 %v9394_v15, %v9393_v51  ;;  %v5651_v59 = vpack.c.bf16 %v9399_v54, %v9398_v44  ;;  %v9400_v34 = vand.u32 4294901760, %v9139_v0  ;;  %v9409_v42 = vld [vmem:[#allocation12_spill] sm:$0xff]  ;;  %v9446_v54 = vld [vmem:[#allocation213_spill] sm:$0xff] }
 0x321   :  { %v5645_v63 = vpack.c.bf16 %v9384_v49, %v9383_v22  ;;  %v5239_v21 = vpack.c.bf16 %v9387_v45, %v9385_v9  ;;  %v5647_v52 = vpack.c.bf16 %v9390_v57, %v9388_v38  ;;  %v5241_v13 = vpack.c.bf16 %v9392_v58, %v9391_v28  ;;  %v9436_v58 = vld [vmem:[#allocation207_spill] sm:$0xff] }
 0x322   :  { %5234 = vmatpush1.bf16.msra.mxu0 %v5233_v24  ;;  %5644 = vmatprep.subr.bf16.mxu1 %v5643_v1  ;;  %v9397_v24 = vand.u32 4294901760, %v9396_v31  ;;  %v9401_v36 = vand.u32 4294901760, %v8973_v47  ;;  %v9402_v26 = vand.u32 4294901760, %v8974_v40  ;;  %v9404_v19 = vand.u32 4294901760, %v9403_v23  ;;  %v9451_v23 = vld [vmem:[#allocation53_spill] sm:$0xff] }
 0x323   :  { %5236 = vmatprep.subr.bf16.mxu0 %v5235_v46  ;;  %v9405_v30 = vand.u32 4294901760, %v8976_v20  ;;  %v9406_v11 = vand.u32 4294901760, %v8977_v6  ;;  %v9407_v46 = vand.u32 4294901760, %v8978_v53  ;;  %v9408_v0 = vand.u32 4294901760, %v8979_v8  ;;  %v9413_v20 = vld [vmem:[#allocation17_spill] sm:$0xff]  ;;  %v9416_v8 = vld [vmem:[#allocation20_spill] sm:$0xff] }
 0x324   :  { %5646 = vmatpush1.bf16.msra.mxu1 %v5645_v63  ;;  %v5243_v43 = vpack.c.bf16 %v9397_v24, %v9395_v61  ;;  %v5245_v17 = vpack.c.bf16 %v9401_v36, %v9400_v34  ;;  %v5653_v41 = vpack.c.bf16 %v9404_v19, %v9402_v26  ;;  %v9410_v40 = vand.u32 4294901760, %v8980_v18  ;;  %v9443_v24 = vld [vmem:[#allocation41_spill] sm:$0xff]  ;;  %v9448_v36 = vld [vmem:[#allocation44_spill] sm:$0xff]  ;;  %v9450_v26 = vld [vmem:[#allocation50_spill] sm:$0xff] }
 0x325   :  { %5648 = vmatprep.subr.bf16.mxu1 %v5647_v52  ;;  %v5247_v16 = vpack.c.bf16 %v9406_v11, %v9405_v30  ;;  %v5249_v47 = vpack.c.bf16 %v9408_v0, %v9407_v46  ;;  %v9411_v4 = vand.u32 4294901760, %v8981_v56  ;;  %v9414_v6 = vand.u32 4294901760, %v8982_v27  ;;  %v9419_v56 = vld [vmem:[#allocation23_spill] sm:$0xff]  ;;  %v9452_v19 = vld [vmem:[#allocation209_spill] sm:$0xff]  ;;  %v9455_v11 = vld [vmem:[#allocation62_spill] sm:$0xff] }
 0x326   :  { %5238 = vmatpush1.bf16.msra.mxu0 %v5237_v10  ;;  %v9415_v53 = vand.u32 4294901760, %v8983_v33  ;;  %v9417_v10 = vand.u32 4294901760, %v8984_v5  ;;  %v9418_v18 = vand.u32 4294901760, %v8985_v37  ;;  %v9420_v49 = vand.u32 4294901760, %v8986_v3  ;;  %v9422_v33 = vld [vmem:[#allocation26_spill] sm:$0xff]  ;;  %v9425_v37 = vld [vmem:[#allocation29_spill] sm:$0xff] }
 0x327   :  { %5240 = vmatprep.subr.bf16.mxu0 %v5239_v21  ;;  %v5251_v1 = vpack.c.bf16 %v9411_v4, %v9410_v40  ;;  %v9421_v27 = vand.u32 4294901760, %v8987_v29  ;;  %v9423_v9 = vand.u32 4294901760, %v8988_v2  ;;  %v9424_v5 = vand.u32 4294901760, %v9015_v48  ;;  %v9428_v3 = vld [vmem:[#allocation32_spill] sm:$0xff]  ;;  %v9429_v29 = vld [vmem:[#allocation202_spill] sm:$0xff]  ;;  %v9433_v2 = vld [vmem:[#allocation35_spill] sm:$0xff] }
 0x328   :  { %5650 = vmatpush1.bf16.msra.mxu1 %v5649_v14  ;;  %v5253_v55 = vpack.c.bf16 %v9415_v53, %v9414_v6  ;;  %v5255_v22 = vpack.c.bf16 %v9418_v18, %v9417_v10  ;;  %v9427_v45 = vand.u32 4294901760, %v8991_v25  ;;  %v9430_v38 = vand.u32 4294901760, %v9429_v29  ;;  %v9434_v48 = vld [vmem:[#allocation205_spill] sm:$0xff]  ;;  %v9439_v25 = vld [vmem:[#allocation208_spill] sm:$0xff]  ;;  %v9441_v14 = vld [vmem:[#allocation210_spill] sm:$0xff] }
 0x329   :  { %5652 = vmatprep.subr.bf16.mxu1 %v5651_v59  ;;  %v5257_v63 = vpack.c.bf16 %v9421_v27, %v9420_v49  ;;  %v5259_v62 = vpack.c.bf16 %v9424_v5, %v9423_v9  ;;  %v9432_v57 = vand.u32 4294901760, %v9431_v12  ;;  %v9435_v28 = vand.u32 4294901760, %v9434_v48  ;;  %v9454_v30 = vld [vmem:[#allocation59_spill] sm:$0xff]  ;;  %v9457_v46 = vld [vmem:[#allocation69_spill] sm:$0xff]  ;;  %v9461_v40 = vld [vmem:[#allocation80_spill] sm:$0xff] }
 0x32a   :  { %5242 = vmatpush1.bf16.msra.mxu0 %v5241_v13  ;;  %v9437_v13 = vand.u32 4294901760, %v9436_v58  ;;  %v9440_v15 = vand.u32 4294901760, %v9439_v25  ;;  %v9442_v61 = vand.u32 4294901760, %v9441_v14  ;;  %v9447_v59 = vand.u32 4294901760, %v9446_v54  ;;  %v9458_v0 = vld [vmem:[#allocation71_spill] sm:$0xff]  ;;  %v9465_v6 = vld [vmem:[#allocation92_spill] sm:$0xff] }
 0x32b   :  { %5244 = vmatprep.subr.bf16.mxu0 %v5243_v43  ;;  %v5263_v52 = vpack.c.bf16 %v9432_v57, %v9430_v38  ;;  %v9444_v43 = vld [vmem:[#allocation211_spill] sm:$0xff]  ;;  %v9471_v18 = vld [vmem:[#allocation110_spill] sm:$0xff]  ;;  %v9486_v29 = vld [vmem:[#allocation156_spill] sm:$0xff] }
 0x32c   :  { %5654 = vmatpush1.bf16.msra.mxu1 %v5653_v41  ;;  %v5265_v51 = vpack.c.bf16 %v9437_v13, %v9435_v28  ;;  %v5267_v31 = vpack.c.bf16 %v9442_v61, %v9440_v15  ;;  %v9445_v44 = vand.u32 4294901760, %v9444_v43  ;;  %v9453_v41 = vld [vmem:[#allocation56_spill] sm:$0xff]  ;;  %v9462_v4 = vld [vmem:[#allocation83_spill] sm:$0xff]  ;;  %v9475_v27 = vld [vmem:[#allocation122_spill] sm:$0xff] }
 0x32d   :  { %5656 = vmatprep.subr.bf16.mxu1 %v9409_v42  ;;  %v9460_v42 = vld [vmem:[#allocation77_spill] sm:$0xff]  ;;  %v9466_v53 = vld [vmem:[#allocation95_spill] sm:$0xff]  ;;  %v9479_v5 = vld [vmem:[#allocation134_spill] sm:$0xff] }
 0x32e   :  { %5246 = vmatpush1.bf16.msra.mxu0 %v5245_v17  ;;  %v5269_v34 = vpack.c.bf16 %v9447_v59, %v9445_v44  ;;  %v9449_v17 = vld [vmem:[#allocation47_spill] sm:$0xff]  ;;  %v9489_v57 = vld [vmem:[#allocation170_spill] sm:$0xff]  ;;  %v9492_v48 = vld [vmem:[#allocation180_spill] sm:$0xff] }
 0x32f   :  { %5248 = vmatprep.subr.bf16.mxu0 %v5247_v16  ;;  %4332 = vmatmul.mubr.f32.vlgmr.msra.gmra.mrb[6].mxu1 %v9412_v39  ;;  %v9456_v16 = vld [vmem:[#allocation65_spill] sm:$0xff]  ;;  %v9470_v10 = vld [vmem:[#allocation107_spill] sm:$0xff]  ;;  %v9493_v28 = vld [vmem:[#allocation184_spill] sm:$0xff] }
 0x330   :  { %5658 = vmatpush1.bf16.msra.mxu1 %v9413_v20  ;;  %4467 = vmatprep.mubr.f32.mxu1 %v9232_v50  ;;  %v9426_v50 = vand.u32 4294901760, %v8990_v60  ;;  %v9438_v60 = vld [vmem:[#allocation38_spill] sm:$0xff]  ;;  %v9464_v20 = vld [vmem:[#allocation89_spill] sm:$0xff]  ;;  %v9474_v49 = vld [vmem:[#allocation119_spill] sm:$0xff] }
 0x331   :  { %5660 = vmatprep.subr.bf16.mxu1 %v9416_v8  ;;  %v9469_v8 = vld [vmem:[#allocation104_spill] sm:$0xff]  ;;  %v9478_v9 = vld [vmem:[#allocation131_spill] sm:$0xff] }
 0x332   :  { %5250 = vmatpush1.bf16.msra.mxu0 %v5249_v47  ;;  %v5261_v21 = vpack.c.bf16 %v9427_v45, %v9426_v50  ;;  %v9459_v47 = vld [vmem:[#allocation74_spill] sm:$0xff]  ;;  %v9482_v50 = vld [vmem:[#allocation143_spill] sm:$0xff]  ;;  %v9494_v58 = vld [vmem:[#allocation188_spill] sm:$0xff] }
 0x333   :  { %5252 = vmatprep.subr.bf16.mxu0 %v5251_v1  ;;  %v9463_v1 = vld [vmem:[#allocation86_spill] sm:$0xff]  ;;  %v9487_v38 = vld [vmem:[#allocation159_spill] sm:$0xff]  ;;  %v9502_v44 = vld [vmem:[#allocation16_spill] sm:$0xff] }
 0x334   :  { %5662 = vmatpush1.bf16.msra.mxu1 %v9419_v56  ;;  %v9473_v56 = vld [vmem:[#allocation116_spill] sm:$0xff]  ;;  %v9483_v45 = vld [vmem:[#allocation146_spill] sm:$0xff]  ;;  %v9488_v12 = vld [vmem:[#allocation163_spill] sm:$0xff] }
 0x335   :  { %5664 = vmatprep.subr.bf16.mxu1 %v9422_v33  ;;  %v9477_v33 = vld [vmem:[#allocation128_spill] sm:$0xff]  ;;  %v9495_v13 = vld [vmem:[#allocation195_spill] sm:$0xff] }
 0x336   :  { %5254 = vmatpush1.bf16.msra.mxu0 %v5253_v55  ;;  %v9468_v55 = vld [vmem:[#allocation101_spill] sm:$0xff]  ;;  %v9499_v25 = vld [vmem:[#allocation15_spill] sm:$0xff] }
 0x337   :  { %5256 = vmatprep.subr.bf16.mxu0 %v5255_v22  ;;  %v9472_v22 = vld [vmem:[#allocation113_spill] sm:$0xff] }
 0x338   :  { %5666 = vmatpush1.bf16.msra.mxu1 %v9425_v37  ;;  %v9481_v37 = vld [vmem:[#allocation140_spill] sm:$0xff] }
 0x339   :  { %5668 = vmatprep.subr.bf16.mxu1 %v9428_v3  ;;  %v9485_v3 = vld [vmem:[#allocation153_spill] sm:$0xff] }
 0x33a   :  { %5258 = vmatpush1.bf16.msra.mxu0 %v5257_v63  ;;  %v9476_v63 = vld [vmem:[#allocation125_spill] sm:$0xff] }
 0x33b   :  { %5260 = vmatprep.subr.bf16.mxu0 %v5259_v62  ;;  %v9480_v62 = vld [vmem:[#allocation137_spill] sm:$0xff] }
 0x33c   :  { %5670 = vmatpush1.bf16.msra.mxu1 %v9433_v2  ;;  %v9491_v2 = vld [vmem:[#allocation177_spill] sm:$0xff] }
 0x33d   :  { %5672 = vmatprep.subr.bf16.mxu1 %v9438_v60  ;;  %v9498_v60 = vld [vmem:[#allocation206_spill] sm:$0xff] }
 0x33e   :  { %5262 = vmatpush1.bf16.msra.mxu0 %v5261_v21  ;;  %v9484_v21 = vld [vmem:[#allocation149_spill] sm:$0xff] }
 0x33f   :  { %5264 = vmatprep.subr.bf16.mxu0 %v5263_v52  ;;  %v9490_v52 = vld [vmem:[#allocation174_spill] sm:$0xff] }
 0x340   :  { %5674 = vmatpush1.bf16.msra.mxu1 %v9443_v24 }
 0x341   :  { %5676 = vmatprep.subr.bf16.mxu1 %v9448_v36 }
 0x342   :  { %5266 = vmatpush1.bf16.msra.mxu0 %v5265_v51  ;;  %v9496_v51 = vld [vmem:[#allocation197_spill] sm:$0xff] }
 0x343   :  { %5268 = vmatprep.subr.bf16.mxu0 %v5267_v31 }
 0x344   :  { %5678 = vmatpush1.bf16.msra.mxu1 %v9449_v17 }
 0x345   :  { %5680 = vmatprep.subr.bf16.mxu1 %v9451_v23 }
 0x346   :  { %5270 = vmatpush1.bf16.msra.mxu0 %v5269_v34 }
 0x347   :  { %5272 = vmatprep.subr.bf16.mxu0 %v9450_v26 }
 0x348   :  { %5682 = vmatpush1.bf16.msra.mxu1 %v9454_v30 }
 0x349   :  { %3048 = vmatmul.mubr.f32.vlgmr.msra.gmra.mrb[4].mxu0 %v9452_v19  ;;  %5684 = vmatprep.subr.bf16.mxu1 %v9456_v16 }
 0x34a   :  { %5274 = vmatpush1.bf16.msra.mxu0 %v9453_v41  ;;  %3183 = vmatprep.mubr.f32.mxu0 %v9307_v32  ;;  %v9467_v32 = vld [vmem:[#allocation98_spill] sm:$0xff] }
 0x34b   :  { %5276 = vmatprep.subr.bf16.mxu0 %v9455_v11 }
 0x34c   :  { %5686 = vmatpush1.bf16.msra.mxu1 %v9458_v0 }
 0x34d   :  { %5688 = vmatprep.subr.bf16.mxu1 %v9460_v42 }
 0x34e   :  { %5278 = vmatpush1.bf16.msra.mxu0 %v9457_v46 }
 0x34f   :  { %5280 = vmatprep.subr.bf16.mxu0 %v9459_v47 }
 0x350   :  { %5690 = vmatpush1.bf16.msra.mxu1 %v9462_v4  ;;  %v5889_v4 = vmov 1966171168  }
 0x351   :  { %5692 = vmatprep.subr.bf16.mxu1 %v9464_v20 }
 0x352   :  { %5282 = vmatpush1.bf16.msra.mxu0 %v9461_v40 }
 0x353   :  { %5284 = vmatprep.subr.bf16.mxu0 %v9463_v1  ;;  %v4533_v1 = vunpack.c.l.s4 %v5889_v4 }
 0x354   :  { %5694 = vmatpush1.bf16.msra.mxu1 %v9466_v53 }
 0x355   :  { %5696 = vmatprep.subr.bf16.mxu1 %v9468_v55 }
 0x356   :  { %5286 = vmatpush1.bf16.msra.mxu0 %v9465_v6  ;;  %v4534_v6 = vunpack.c.0.s8 %v4533_v1  ;;  %v5806_v1 = vld [vmem:[#allocation2 + $0x60] sm:$0xff] }
 0x357   :  { %5288 = vmatprep.subr.bf16.mxu0 %v9467_v32 }
 0x358   :  { %5698 = vmatpush1.bf16.msra.mxu1 %v9470_v10 }
 0x359   :  { %5700 = vmatprep.subr.bf16.mxu1 %v9472_v22 }
 0x35a   :  { %5290 = vmatpush1.bf16.msra.mxu0 %v9469_v8 }
 0x35b   :  { %5292 = vmatprep.subr.bf16.mxu0 %v9471_v18 }
 0x35c   :  { %5702 = vmatpush1.bf16.msra.mxu1 %v9474_v49 }
 0x35d   :  { %5704 = vmatprep.subr.bf16.mxu1 %v9476_v63 }
 0x35e   :  { %5294 = vmatpush1.bf16.msra.mxu0 %v9473_v56 }
 0x35f   :  { %5296 = vmatprep.subr.bf16.mxu0 %v9475_v27 }
 0x360   :  { %5706 = vmatpush1.bf16.msra.mxu1 %v9478_v9 }
 0x361   :  { %5708 = vmatprep.subr.bf16.mxu1 %v9480_v62 }
 0x362   :  { %5298 = vmatpush1.bf16.msra.mxu0 %v9477_v33 }
 0x363   :  { %5300 = vmatprep.subr.bf16.mxu0 %v9479_v5 }
 0x364   :  { %5710 = vmatpush1.bf16.msra.mxu1 %v9482_v50 }
 0x365   :  { %5712 = vmatprep.subr.bf16.mxu1 %v9484_v21 }
 0x366   :  { %5302 = vmatpush1.bf16.msra.mxu0 %v9481_v37 }
 0x367   :  { %5304 = vmatprep.subr.bf16.mxu0 %v9483_v45 }
 0x368   :  { %5714 = vmatpush1.bf16.msra.mxu1 %v9486_v29 }
 0x369   :  { %5716 = vmatprep.subr.bf16.mxu1 %v9488_v12 }
 0x36a   :  { %5306 = vmatpush1.bf16.msra.mxu0 %v9485_v3 }
 0x36b   :  { %5308 = vmatprep.subr.bf16.mxu0 %v9487_v38 }
 0x36c   :  { %5718 = vmatpush1.bf16.msra.mxu1 %v9489_v57 }
 0x36e   :  { %5310 = vmatpush1.bf16.msra.mxu0 %v9211_v7  ;;  %v9497_v7 = vld [vmem:[#allocation201_spill] sm:$0xff] }
 0x36f   :  { %5312 = vmatprep.subr.bf16.mxu0 %v9490_v52  ;;  %4469 = vmatmul.mubr.f32.vlgmr.msra.gmra.mrb[6].mxu1 %v9412_v39  ;;  %v9500_v39 = vld [vmem:[#allocation212_spill] sm:$0xff] }
 0x372   :  { %5314 = vmatpush1.bf16.msra.mxu0 %v9491_v2 }
 0x373   :  { %5316 = vmatprep.subr.bf16.mxu0 %v9492_v48 }
 0x376   :  { %5318 = vmatpush1.bf16.msra.mxu0 %v9493_v28 }
 0x377   :  { %5320 = vmatprep.subr.bf16.mxu0 %v9494_v58 }
 0x37a   :  { %5322 = vmatpush1.bf16.msra.mxu0 %v9244_v35  ;;  %v9501_v35 = vld [vmem:[#allocation11_spill] sm:$0xff] }
 0x37b   :  { %5324 = vmatprep.subr.bf16.mxu0 %v9495_v13  ;;  %v4490_v24 = vsub.s32 0, %v9501_v35  ;;  %v4509_v34 = vsub.s32 1, %v9501_v35  ;;  %v4537_v22 = vsub.s32 %v4534_v6, %v9501_v35  ;;  %v5795_v35 = vld [vmem:[#allocation2 + $0x8] sm:$0xff] }
 0x37c   :  { %v5807_v6 = vld [vmem:[#allocation2 + $0x68] sm:$0xff] }
 0x37e   :  { %5326 = vmatpush1.bf16.msra.mxu0 %v9496_v51 }
 0x37f   :  { %5328 = vmatprep.subr.bf16.mxu0 %v9497_v7 }
 0x382   :  { %5330 = vmatpush1.bf16.msra.mxu0 %v9498_v60 }
 0x383   :  { %5332 = vmatprep.subr.bf16.mxu0 %v9499_v25 }
 0x386   :  { %5334 = vmatpush1.bf16.msra.mxu0 %v9500_v39  ;;  %v1679_v15 = vpop.xlane.xlu0 %1678 }
 0x387   :  { %v4642_v14 = vmul.f32 -1.442695, %v1679_v15 }
 0x389   :  { %3185 = vmatmul.mubr.f32.vlgmr.msra.gmra.mrb[4].mxu0 %v9452_v19  ;;  %5782 = vpow2.f32 %v4642_v14 }
 0x393   :  { %v5783_v61 = vpop.eup %5782 }
 0x394   :  { %v1683_v31 = vadd.f32 1.0, %v5783_v61  ;;  %v5794_v61 = vld [vmem:[#allocation2] sm:$0xff] }
 0x396   :  { %5784 = vrcp.f32 %v1683_v31 }
 0x3a0   :  { %v5785_v43 = vpop.eup %5784 }
 0x3a1   :  { %v4487_v54 = vmul.f32 %v5785_v43, %v9502_v44  ;;  %v4526_v53 = vsub.f32 1.0, %v5785_v43  ;;  %v5796_v43 = vld [vmem:[#allocation2 + $0x10] sm:$0xff] }
 0x3a3   :  { %v4491_v59 = vrot.slane %v4487_v54, %v4490_v24  ;;  %v4510_v36 = vrot.slane %v4487_v54, %v4509_v34  ;;  %v5797_v54 = vld [vmem:[#allocation2 + $0x18] sm:$0xff] }
 0x3a5   :  { %4497 = vbcast.lane.b32.xlu0 %v4491_v59, 264  ;;  %4493 = vbcast.lane.b32.xlu1 %v4491_v59, 256 }
 0x3a9   :  { %4516 = vbcast.lane.b32.xlu0 %v4510_v36, 264  ;;  %4501 = vbcast.lane.b32.xlu1 %v4491_v59, 272 }
 0x3ad   :  { %4524 = vbcast.lane.b32.xlu0 %v4510_v36, 280  ;;  %4505 = vbcast.lane.b32.xlu1 %v4491_v59, 280 }
 0x3b1   :  { %4512 = vbcast.lane.b32.xlu1 %v4510_v36, 256 }
 0x3b5   :  { %4520 = vbcast.lane.b32.xlu1 %v4510_v36, 272 }
 0x417   :  { %v4494_v40 = vpop.permute.xlu1 %4493  ;;  %v4498_v56 = vpop.permute.xlu0 %4497 }
 0x41b   :  { %v4502_v20 = vpop.permute.xlu1 %4501  ;;  %v4517_v5 = vpop.permute.xlu0 %4516 }
 0x41f   :  { %v4506_v10 = vpop.permute.xlu1 %4505  ;;  %v4525_v51 = vpop.permute.xlu0 %4524 }
 0x423   :  { %v4513_v63 = vpop.permute.xlu1 %4512 }
 0x427   :  { %v4521_v2 = vpop.permute.xlu1 %4520 }
 0x442   :  { %v4470_v17 = vpop.f32.mrb[6].mxu1 }
 0x443   :  { %v4472_v26 = vpop.f32.mrb[7].mxu1 }
 0x45c   :  { %v3186_v23 = vpop.f32.mrb[4].mxu0 }
 0x45d   :  { %v5721_v19 = vadd.f32 %v4470_v17, %v3186_v23  ;;  %v3188_v41 = vpop.f32.mrb[5].mxu0  ;;  %v5799_v17 = vld [vmem:[#allocation2 + $0x28] sm:$0xff]  ;;  %v5800_v23 = vld [vmem:[#allocation2 + $0x30] sm:$0xff] }
 0x45e   :  { %v5722_v30 = vadd.f32 %v4472_v26, %v3188_v41  ;;  %v5801_v41 = vld [vmem:[#allocation2 + $0x38] sm:$0xff] }
 0x45f   :  { %v4643_v11 = vmul.f32 -1.442695, %v5721_v19 }
 0x460   :  { %v4644_v16 = vmul.f32 -1.442695, %v5722_v30 }
 0x461   :  { %5786 = vpow2.f32 %v4643_v11  ;;  %v5802_v11 = vld [vmem:[#allocation2 + $0x40] sm:$0xff] }
 0x462   :  { %5788 = vpow2.f32 %v4644_v16 }
 0x46b   :  { %v5787_v46 = vpop.eup %5786 }
 0x46c   :  { %v5789_v0 = vpop.eup %5788  ;;  %v4481_v47 = vadd.f32 1.0, %v5787_v46  ;;  %v5803_v46 = vld [vmem:[#allocation2 + $0x48] sm:$0xff] }
 0x46d   :  { %v4482_v42 = vadd.f32 1.0, %v5789_v0 }
 0x46e   :  { %5790 = vrcp.f32 %v4481_v47  ;;  %v5804_v47 = vld [vmem:[#allocation2 + $0x50] sm:$0xff] }
 0x46f   :  { %5792 = vrcp.f32 %v4482_v42 }
 0x478   :  { %v5791_v32 = vpop.eup %5790 }
 0x479   :  { %v5793_v55 = vpop.eup %5792  ;;  %v4527_v8 = vmul.f32 %v5791_v32, %v4526_v53  ;;  %v5808_v32 = vld [vmem:[#allocation2 + $0x70] sm:$0xff] }
 0x47a   :  { %v4528_v18 = vmul.f32 %v5793_v55, %v4526_v53 }
 0x47c   :  { %v4531_v49 = vcombine.low %v4527_v8, %v4528_v18  ;;  %v5809_v8 = vld [vmem:[#allocation2 + $0x78] sm:$0xff] }
 0x47e   :  { %v4538_v27 = vrot.slane %v4531_v49, %v4537_v22 }
 0x480   :  { %v4539_v33 = vcombine.high %v4538_v27, %v4538_v27  ;;  %v4546_v9 = vrot.slane %v4538_v27, %v4537_v22 }
 0x482   :  { %v4553_v62 = vrot.slane %v4539_v33, %v4537_v22  ;;  %v4557_v37 = vrot.slane %v4546_v9, %v4490_v24  ;;  %v4561_v50 = vrot.slane %v4546_v9, %v4509_v34 }
 0x484   :  { %v4565_v45 = vrot.slane %v4553_v62, %v4490_v24  ;;  %v4569_v21 = vrot.slane %v4553_v62, %v4509_v34  ;;  %v4574_v3 = vadd.f32 %v4557_v37, %v4494_v40  ;;  %v4575_v29 = vadd.f32 %v4561_v50, %v4494_v40  ;;  %v5798_v34 = vld [vmem:[#allocation2 + $0x20] sm:$0xff]  ;;  %v5805_v40 = vld [vmem:[#allocation2 + $0x58] sm:$0xff] }
 0x485   :  { %v4576_v38 = vadd.f32 %v4557_v37, %v4498_v56  ;;  %v4577_v12 = vadd.f32 %v4561_v50, %v4498_v56  ;;  %v4578_v57 = vadd.f32 %v4557_v37, %v4502_v20  ;;  %v4579_v52 = vadd.f32 %v4561_v50, %v4502_v20 }
 0x486   :  { %v4580_v48 = vadd.f32 %v4557_v37, %v4506_v10  ;;  %v4581_v28 = vadd.f32 %v4561_v50, %v4506_v10  ;;  %v4582_v58 = vadd.f32 %v4565_v45, %v4513_v63  ;;  %v4583_v13 = vadd.f32 %v4569_v21, %v4513_v63 }
 0x487   :  { %v4584_v7 = vadd.f32 %v4565_v45, %v4517_v5  ;;  %v4585_v60 = vadd.f32 %v4569_v21, %v4517_v5  ;;  %v4586_v25 = vadd.f32 %v4565_v45, %v4521_v2  ;;  %v4587_v39 = vadd.f32 %v4569_v21, %v4521_v2 }
 0x488   :  { %v4588_v15 = vadd.f32 %v4565_v45, %v4525_v51  ;;  %v4589_v14 = vadd.f32 %v4569_v21, %v4525_v51  ;;  %v4590_v31 = vmul.f32 %v5794_v61, %v4574_v3  ;;  %v4591_v24 = vmul.f32 %v5795_v35, %v4575_v29 }
 0x489   :  { %v4592_v44 = vmul.f32 %v5796_v43, %v4576_v38  ;;  %v4593_v59 = vmul.f32 %v5797_v54, %v4577_v12  ;;  %v4594_v36 = vmul.f32 %v5798_v34, %v4578_v57  ;;  %v4595_v26 = vmul.f32 %v5799_v17, %v4579_v52 }
 0x48a   :  { %v4596_v19 = vmul.f32 %v5800_v23, %v4580_v48  ;;  %v4597_v30 = vmul.f32 %v5801_v41, %v4581_v28  ;;  %v4598_v16 = vmul.f32 %v5802_v11, %v4582_v58  ;;  %v4599_v0 = vmul.f32 %v5803_v46, %v4583_v13  ;;  %4606 = vst [vmem:[#allocation7] sm:$0xff] %v4590_v31 }
 0x48b   :  { %4607 = vst [vmem:[#allocation7 + $0x8] sm:$0xff] %v4591_v24  ;;  %v4600_v42 = vmul.f32 %v5804_v47, %v4584_v7  ;;  %v4601_v4 = vmul.f32 %v5805_v40, %v4585_v60  ;;  %v4602_v20 = vmul.f32 %v5806_v1, %v4586_v25  ;;  %v4603_v53 = vmul.f32 %v5807_v6, %v4587_v39 }
 0x48c   :  { %4608 = vst [vmem:[#allocation7 + $0x10] sm:$0xff] %v4592_v44  ;;  %4609 = vst [vmem:[#allocation7 + $0x18] sm:$0xff] %v4593_v59  ;;  %v4604_v55 = vmul.f32 %v5808_v32, %v4588_v15  ;;  %v4605_v10 = vmul.f32 %v5809_v8, %v4589_v14 }
 0x48d   :  { %4610 = vst [vmem:[#allocation7 + $0x20] sm:$0xff] %v4594_v36  ;;  %4611 = vst [vmem:[#allocation7 + $0x28] sm:$0xff] %v4595_v26 }
 0x48e   :  { %4612 = vst [vmem:[#allocation7 + $0x30] sm:$0xff] %v4596_v19  ;;  %4613 = vst [vmem:[#allocation7 + $0x38] sm:$0xff] %v4597_v30 }
 0x48f   :  { %4614 = vst [vmem:[#allocation7 + $0x40] sm:$0xff] %v4598_v16  ;;  %4615 = vst [vmem:[#allocation7 + $0x48] sm:$0xff] %v4599_v0 }
 0x490   :  { %4616 = vst [vmem:[#allocation7 + $0x50] sm:$0xff] %v4600_v42  ;;  %4617 = vst [vmem:[#allocation7 + $0x58] sm:$0xff] %v4601_v4 }
 0x491   :  { %4618 = vst [vmem:[#allocation7 + $0x60] sm:$0xff] %v4602_v20  ;;  %4619 = vst [vmem:[#allocation7 + $0x68] sm:$0xff] %v4603_v53 }
 0x492   :  { %4620 = vst [vmem:[#allocation7 + $0x70] sm:$0xff] %v4604_v55  ;;  %4621 = vst [vmem:[#allocation7 + $0x78] sm:$0xff] %v4605_v10 }
 0x493   :  { %5865 = shalt.err (!%p5862_p6)
}
 0x494   :  { %s5866_s8 = scalar_lea.hbm %s8152_s5, 2048 }
 0x495   :  { %p5867_p7 = scmp.ne.s32.totalorder %s8152_s5, %s5866_s8  ;;  %p5870_p8 = scmp.lt.u32.totalorder %s5866_s8, %s8152_s5 }
 0x497   :  { %p5872_p9 = pnand %p5870_p8, %p5867_p7 }
 0x499   :  { %5875 = shalt.err (!%p5872_p9)
}
 0x49a   :  { %4633 = dma.vmem_to_hbm [thread:$0]  %s4628_s27, 2048, %s8152_s5, [#allocation4], %s5883_s28, %s5883_s28, %s5884_s29  }
 0x49b   :  { %5880 = dma.done.wait [#allocation4], 2048  }
 0x49c   :  { %5881 = vsyncadd [#allocation4], 4294965248 }
 0x49d   :  { %4637 = vsyncpa [#allocation3], 1 }
 0x49e   :  { %4638 = vsyncpa [#allocation6], 1 }
 0x49f   :  { %4639 = vsyncpa [#allocation4], 1 }

// kernel: tpu_custom_call.1
= control target key start
LH: loop header
LB: loop body
LE: loop exit
PB: predicated region body
PF: predicated region fallthrough
CT: control target
= control target key end

     0   :  { %10 = vsyncpa [#allocation3], 0  ;;  %s1553_s0 = inlined_call_operand.hbm [shape: f32[2,32,256], index: 0, kind: input, shape index: {}]   ;;  %s1554_s1 = inlined_call_operand.vmem [shape: f32[32,2], index: 1, kind: input, shape index: {}]   ;;  %s1555_s2 = inlined_call_operand.vmem [shape: f32[2,32], index: 2, kind: input, shape index: {}]   ;;  %s1556_s3 = inlined_call_operand.vmem [shape: f32[1,32], index: 3, kind: input, shape index: {}]   ;;  %s1557_s4 = inlined_call_operand.hbm [shape: f32[512,256], index: 4, kind: input, shape index: {}]   ;;  %s1558_s5 = inlined_call_operand.hbm [shape: f32[2,32,256], index: 5, kind: output, shape index: {}]  }
   0x1   :  { %11 = vsyncpa [#allocation6], 0 }
   0x2   :  { %12 = vsyncpa [#allocation4], 0  ;;  %s1311_s18 = smov [#allocation2]   ;;  %s1239_s22 = scalar_lea.hbm %s1553_s0, 2048 }
   0x3   :  { %s18_s19 = sshll.u32 %s1311_s18, 4  ;;  %p1240_p0 = scmp.ne.s32.totalorder %s1553_s0, %s1239_s22  ;;  %s19_s19 = int_to_ptr.vmem [resolvable:$true] %s18_s19 }
   0x4   :  { %p1243_p1 = scmp.lt.u32.totalorder %s1239_s22, %s1553_s0 }
   0x6   :  { %p1245_p2 = pnand %p1243_p1, %p1240_p0 }
   0x8   :  { %1248 = shalt.err (!%p1245_p2)
}
   0x9   :  { %s1249_s27 = scalar_lea.vmem %s19_s19, 2048  ;;  %p1254_p4 = scmp.lt.s32.totalorder %s19_s19, %s19_s19 }
   0xa   :  { %p1250_p3 = scmp.ne.s32.totalorder %s19_s19, %s1249_s27  ;;  %p1255_p5 = scmp.lt.s32.totalorder %s1249_s27, %s1249_s27 }
   0xc   :  { %p1256_p6 = por %p1255_p5, %p1254_p4 }
   0xe   :  { %p1257_p7 = pnand %p1256_p6, %p1250_p3 }
  0x10   :  { %1260 = shalt.err (!%p1257_p7)
}
  0x11   :  { %s1312_s28 = smov 256   ;;  %s1313_s29 = smov 16  }
  0x12   :  { %24 = dma.hbm_to_vmem [thread:$0]  %s1553_s0, 2048, %s19_s19, [#allocation3], %s1312_s28, %s1312_s28, %s1313_s29  }
  0x13   :  { %s1314_s7 = smov [#allocation5]   ;;  %s1261_s11 = scalar_lea.hbm %s1557_s4, 16384 }
  0x14   :  { %s36_s8 = sshll.u32 %s1314_s7, 4  ;;  %p1262_p8 = scmp.ne.s32.totalorder %s1557_s4, %s1261_s11  ;;  %s37_s8 = int_to_ptr.vmem [resolvable:$true] %s36_s8 }
  0x15   :  { %p1265_p9 = scmp.lt.u32.totalorder %s1261_s11, %s1557_s4 }
  0x17   :  { %p1267_p10 = pnand %p1265_p9, %p1262_p8 }
  0x19   :  { %1270 = shalt.err (!%p1267_p10)
}
  0x1a   :  { %s1271_s16 = scalar_lea.vmem %s37_s8, 16384  ;;  %p1276_p12 = scmp.lt.s32.totalorder %s37_s8, %s37_s8 }
  0x1b   :  { %p1272_p11 = scmp.ne.s32.totalorder %s37_s8, %s1271_s16  ;;  %p1277_p13 = scmp.lt.s32.totalorder %s1271_s16, %s1271_s16 }
  0x1d   :  { %p1278_p0 = por %p1277_p13, %p1276_p12 }
  0x1f   :  { %p1279_p1 = pnand %p1278_p0, %p1272_p11 }
  0x21   :  { %1282 = shalt.err (!%p1279_p1)
}
  0x22   :  { %42 = dma.hbm_to_vmem [thread:$0]  %s1557_s4, 16384, %s37_s8, [#allocation6], %s1312_s28, %s1312_s28, %s1313_s29  }
  0x23   :  { %1305 = dma.done.wait [#allocation3], 2048  }
  0x24   :  { %1306 = vsyncadd [#allocation3], 4294965248 }
  0x25   :  { %1307 = dma.done.wait [#allocation6], 16384  }
  0x26   :  { %1308 = vsyncadd [#allocation6], 4294950912  ;;  %v1380_v0 = vld [vmem:[#allocation2 + $0x40] sm:$0xff]  ;;  %v1382_v1 = vld [vmem:[#allocation2 + $0x48] sm:$0xff]  ;;  %v1315_v35 = vmov 0.0|0.0   ;;  %vm1316_vm0 = vmmov 0   ;;  %v135_v40 = vlaneseq }
  0x27   :  { %v1384_v2 = vld [vmem:[#allocation2] sm:$0xff]  ;;  %v77_v3 = vadd.f32 %v1382_v1, %v1380_v0  ;;  %v1388_v4 = vld [vmem:[#allocation2 + $0x8] sm:$0xff]  ;;  %v1390_v5 = vld [vmem:[#allocation2 + $0x50] sm:$0xff]  ;;  %v110_v27 = vmax.f32 %v1380_v0, %v1382_v1  ;;  %1056 = vmatprep.subr.bf16.mxu0 %v1315_v35  ;;  %1062 = vmatprep.subr.bf16.mxu1 %v1315_v35  ;;  %v1317_v39 = vmov 0.0   ;;  %vm146_vm1 = vcmask 130112  }
  0x28   :  { %v1392_v6 = vld [vmem:[#allocation2 + $0x58] sm:$0xff]  ;;  %v65_v7 = vadd.f32 %v1388_v4, %v1384_v2  ;;  %v1396_v8 = vld [vmem:[#allocation2 + $0x10] sm:$0xff]  ;;  %v1404_v12 = vld [vmem:[#allocation2 + $0x60] sm:$0xff]  ;;  %v98_v25 = vmax.f32 %v1384_v2, %v1388_v4  ;;  %1037 = vmatprep.mubr.msk.f32.mxu0 %vm1316_vm0, %v1317_v39  ;;  %1048 = vmatprep.mubr.msk.f32.mxu1 %vm1316_vm0, %v1317_v39  ;;  %v136_v42 = vand.u32 127, %v135_v40  ;;  %v1458_v47 = vshrl.u32 %v135_v40, 7 }
  0x29   :  { %v1398_v9 = vld [vmem:[#allocation2 + $0x18] sm:$0xff]  ;;  %78 = vadd.xlane.f32.xlu1 %v77_v3  ;;  %v80_v10 = vadd.f32 %v1392_v6, %v1390_v5  ;;  %v1406_v13 = vld [vmem:[#allocation2 + $0x68] sm:$0xff]  ;;  %v1408_v14 = vld [vmem:[#allocation2 + $0x20] sm:$0xff]  ;;  %v113_v26 = vmax.f32 %v1390_v5, %v1392_v6  ;;  %vm153_vm2 = vcmask 195712   ;;  %vm160_vm3 = vcmask 261312  }
  0x2a   :  { %66 = vadd.xlane.f32.xlu0 %v65_v7  ;;  %v68_v11 = vadd.f32 %v1398_v9, %v1396_v8  ;;  %v1410_v15 = vld [vmem:[#allocation2 + $0x28] sm:$0xff]  ;;  %v83_v16 = vadd.f32 %v1406_v13, %v1404_v12  ;;  %v1416_v18 = vld [vmem:[#allocation2 + $0x70] sm:$0xff]  ;;  %v1418_v19 = vld [vmem:[#allocation2 + $0x78] sm:$0xff]  ;;  %v101_v24 = vmax.f32 %v1396_v8, %v1398_v9  ;;  %v116_v28 = vmax.f32 %v1404_v12, %v1406_v13 }
  0x2b   :  { %v71_v17 = vadd.f32 %v1410_v15, %v1408_v14  ;;  %v1420_v20 = vld [vmem:[#allocation2 + $0x30] sm:$0xff]  ;;  %v1422_v21 = vld [vmem:[#allocation2 + $0x38] sm:$0xff]  ;;  %v86_v22 = vadd.f32 %v1418_v19, %v1416_v18  ;;  %v104_v29 = vmax.f32 %v1408_v14, %v1410_v15  ;;  %v122_v30 = vld [vmem:[%s1554_s1] sm:$0xff]  ;;  %v119_v32 = vmax.f32 %v1416_v18, %v1418_v19 }
  0x2c   :  { %v74_v23 = vadd.f32 %v1422_v21, %v1420_v20  ;;  %v123_v31 = vld [vmem:[%s1554_s1 + $0x8] sm:$0xff]  ;;  %v107_v34 = vmax.f32 %v1420_v20, %v1422_v21  ;;  %v124_v36 = vld [vmem:[%s1554_s1 + $0x10] sm:$0xff]  ;;  %v125_v37 = vld [vmem:[%s1554_s1 + $0x18] sm:$0xff]  ;;  %v141_v44 = vadd.s32 4294967288, %v136_v42  ;;  %v148_v46 = vadd.s32 4294967280, %v136_v42 }
  0x2d   :  { %81 = vadd.xlane.f32.xlu1 %v80_v10  ;;  %v1057_v33 = vpack.c.bf16 %v123_v31, %v122_v30  ;;  %v1060_v38 = vpack.c.bf16 %v125_v37, %v124_v36  ;;  %v155_v51 = vadd.s32 4294967272, %v136_v42  ;;  %v139_v55 = vsub.s32 %v136_v42, %v1458_v47 }
  0x2e   :  { %69 = vadd.xlane.f32.xlu0 %v68_v11  ;;  %v144_v49 = vsub.s32 %v141_v44, %v1458_v47  ;;  %v151_v53 = vsub.s32 %v148_v46, %v1458_v47  ;;  %vm181_vm4 = vcmask 1041409   ;;  %vm183_vm5 = vcmask 261120  }
  0x2f   :  { %1058 = vmatpush3.bf16.msra.mxu0 %v1057_v33  ;;  %1064 = vmatpush3.bf16.msra.mxu1 %v1057_v33  ;;  %v158_v62 = vsub.s32 %v155_v51, %v1458_v47  ;;  %vm382_vm6 = vcmask 1041408   ;;  %vm378_vm7 = vcmask 15360   ;;  %vm470_vm8 = vcmask 254976  }
  0x30   :  { %1059 = vmatprep.subr.bf16.mxu0 %v1315_v35  ;;  %1065 = vmatprep.subr.bf16.mxu1 %v1315_v35 }
  0x31   :  { %84 = vadd.xlane.f32.xlu1 %v83_v16 }
  0x32   :  { %72 = vadd.xlane.f32.xlu0 %v71_v17 }
  0x33   :  { %1061 = vmatpush3.bf16.msra.mxu0 %v1060_v38  ;;  %1067 = vmatpush3.bf16.msra.mxu1 %v1060_v38 }
  0x34   :  { %1051 = vmatprep.subr.mxu0 %v1317_v39 }
  0x35   :  { %87 = vadd.xlane.f32.xlu1 %v86_v22 }
  0x36   :  { %75 = vadd.xlane.f32.xlu0 %v74_v23 }
  0x39   :  { %102 = vmax.xlane.f32.xlu1 %v101_v24 }
  0x3a   :  { %99 = vmax.xlane.f32.xlu0 %v98_v25 }
  0x3d   :  { %114 = vmax.xlane.f32.xlu1 %v113_v26 }
  0x3e   :  { %111 = vmax.xlane.f32.xlu0 %v110_v27 }
  0x41   :  { %117 = vmax.xlane.f32.xlu1 %v116_v28 }
  0x42   :  { %105 = vmax.xlane.f32.xlu0 %v104_v29 }
  0x45   :  { %120 = vmax.xlane.f32.xlu1 %v119_v32 }
  0x46   :  { %108 = vmax.xlane.f32.xlu0 %v107_v34 }
  0xb6   :  { %v79_v41 = vpop.xlane.xlu1 %78 }
  0xb7   :  { %v67_v43 = vpop.xlane.xlu0 %66  ;;  %v94_v56 = vmul.f32 0.00390625, %v79_v41 }
  0xb8   :  { %v90_v59 = vmul.f32 0.00390625, %v67_v43 }
  0xb9   :  { %v165_v10 = vrot.slane %v94_v56, %v139_v55 }
  0xba   :  { %v82_v45 = vpop.xlane.xlu1 %81  ;;  %v140_v22 = vrot.slane %v90_v59, %v139_v55  ;;  %v576_v59 = vld [vmem:[#allocation5 + $0x18] sm:$0xff] }
  0xbb   :  { %v70_v48 = vpop.xlane.xlu0 %69  ;;  %v95_v50 = vmul.f32 0.00390625, %v82_v45 }
  0xbc   :  { %v91_v52 = vmul.f32 0.00390625, %v70_v48 }
  0xbd   :  { %v169_v61 = vrot.slane %v95_v50, %v144_v49 }
  0xbe   :  { %v85_v54 = vpop.xlane.xlu1 %84  ;;  %v145_v63 = vrot.slane %v91_v52, %v144_v49 }
  0xbf   :  { %v96_v57 = vmul.f32 0.00390625, %v85_v54  ;;  %v73_v58 = vpop.xlane.xlu0 %72  ;;  %v170_v24 = vsel %vm146_vm1, %v169_v61, %v165_v10 }
  0xc0   :  { %v92_v60 = vmul.f32 0.00390625, %v73_v58  ;;  %v147_v26 = vsel %vm146_vm1, %v145_v63, %v140_v22  ;;  %v641_v22 = vld [vmem:[#allocation5 + $0x220] sm:$0xff] }
  0xc1   :  { %v174_v3 = vrot.slane %v96_v57, %v151_v53 }
  0xc2   :  { %v88_v7 = vpop.xlane.xlu1 %87  ;;  %v152_v11 = vrot.slane %v92_v60, %v151_v53  ;;  %v638_v60 = vld [vmem:[#allocation5 + $0x208] sm:$0xff] }
  0xc3   :  { %v97_v16 = vmul.f32 0.00390625, %v88_v7  ;;  %v76_v17 = vpop.xlane.xlu0 %75  ;;  %v175_v27 = vsel %vm153_vm2, %v174_v3, %v170_v24  ;;  %v637_v3 = vld [vmem:[#allocation5 + $0x200] sm:$0xff]  ;;  %v639_v7 = vld [vmem:[#allocation5 + $0x210] sm:$0xff] }
  0xc4   :  { %v93_v23 = vmul.f32 0.00390625, %v76_v17  ;;  %v154_v30 = vsel %vm153_vm2, %v152_v11, %v147_v26  ;;  %v1134_v10 = vpack.c.bf16 %v639_v7, %v637_v3  ;;  %v642_v11 = vld [vmem:[#allocation5 + $0x228] sm:$0xff]  ;;  %v648_v26 = vld [vmem:[#allocation5 + $0x258] sm:$0xff]  ;;  %v669_v7 = vld [vmem:[#allocation5 + $0x300] sm:$0xff] }
  0xc5   :  { %v179_v25 = vrot.slane %v97_v16, %v158_v62  ;;  %v644_v16 = vld [vmem:[#allocation5 + $0x238] sm:$0xff] }
  0xc6   :  { %v159_v28 = vrot.slane %v93_v23, %v158_v62  ;;  %v103_v29 = vpop.xlane.xlu1 %102  ;;  %v1136_v17 = vpack.c.bf16 %v644_v16, %v642_v11  ;;  %v643_v23 = vld [vmem:[#allocation5 + $0x230] sm:$0xff]  ;;  %v674_v16 = vld [vmem:[#allocation5 + $0x328] sm:$0xff] }
  0xc7   :  { %v100_v31 = vpop.xlane.xlu0 %99  ;;  %v180_v32 = vsel %vm160_vm3, %v179_v25, %v175_v27  ;;  %v271_v42 = vrot.slane %v103_v29, %v144_v49  ;;  %v1138_v24 = vpack.c.bf16 %v643_v23, %v641_v22  ;;  %v646_v25 = vld [vmem:[#allocation5 + $0x248] sm:$0xff]  ;;  %v647_v29 = vld [vmem:[#allocation5 + $0x250] sm:$0xff]  ;;  %v673_v23 = vld [vmem:[#allocation5 + $0x320] sm:$0xff] }
  0xc8   :  { %v161_v33 = vsel %vm160_vm3, %v159_v28, %v154_v30  ;;  %v267_v43 = vrot.slane %v100_v31, %v139_v55  ;;  %v1140_v27 = vpack.c.bf16 %v648_v26, %v646_v25  ;;  %v645_v28 = vld [vmem:[#allocation5 + $0x240] sm:$0xff]  ;;  %v650_v31 = vld [vmem:[#allocation5 + $0x268] sm:$0xff] }
  0xc9   :  { %v182_v34 = vsel %vm181_vm4, %v180_v32, %v161_v33  ;;  %v1142_v30 = vpack.c.bf16 %v647_v29, %v645_v28  ;;  %v652_v32 = vld [vmem:[#allocation5 + $0x278] sm:$0xff]  ;;  %v678_v26 = vld [vmem:[#allocation5 + $0x348] sm:$0xff]  ;;  %v677_v29 = vld [vmem:[#allocation5 + $0x340] sm:$0xff] }
  0xca   :  { %1038 = vmatmul.mubr.msk.f32.vlgmr.msra.gmra.mrb[0].mxu0 %vm183_vm5, %v182_v34  ;;  %v115_v35 = vpop.xlane.xlu1 %114  ;;  %v272_v52 = vsel %vm146_vm1, %v271_v42, %v267_v43  ;;  %v1144_v33 = vpack.c.bf16 %v652_v32, %v650_v31  ;;  %v649_v34 = vld [vmem:[#allocation5 + $0x260] sm:$0xff]  ;;  %v655_v42 = vld [vmem:[#allocation5 + $0x290] sm:$0xff]  ;;  %v682_v32 = vld [vmem:[#allocation5 + $0x368] sm:$0xff] }
  0xcb   :  { %v112_v36 = vpop.xlane.xlu0 %111  ;;  %1053 = vmatprep.mubr.msk.f32.mxu0 %vm1316_vm0, %v1317_v39  ;;  %v290_v38 = vrot.slane %v115_v35, %v144_v49  ;;  %v651_v35 = vld [vmem:[#allocation5 + $0x270] sm:$0xff] }
  0xcc   :  { %v286_v40 = vrot.slane %v112_v36, %v139_v55  ;;  %v574_v55 = vld [vmem:[#allocation5 + $0x8] sm:$0xff]  ;;  %v1146_v36 = vpack.c.bf16 %v651_v35, %v649_v34  ;;  %v681_v35 = vld [vmem:[#allocation5 + $0x360] sm:$0xff] }
  0xcd   :  { %v1068_v61 = vpack.c.bf16 %v576_v59, %v574_v55  ;;  %v665_v59 = vld [vmem:[#allocation5 + $0x2e0] sm:$0xff] }
  0xce   :  { %v118_v37 = vpop.xlane.xlu1 %117  ;;  %v291_v48 = vsel %vm146_vm1, %v290_v38, %v286_v40  ;;  %v656_v38 = vld [vmem:[#allocation5 + $0x298] sm:$0xff] }
  0xcf   :  { %v106_v41 = vpop.xlane.xlu0 %105  ;;  %v295_v44 = vrot.slane %v118_v37, %v151_v53  ;;  %v654_v37 = vld [vmem:[#allocation5 + $0x288] sm:$0xff] }
  0xd0   :  { %v276_v45 = vrot.slane %v106_v41, %v151_v53  ;;  %v126_v53 = vld [vmem:[%s1555_s2] sm:$0x3]  ;;  %v1148_v40 = vpack.c.bf16 %v656_v38, %v654_v37  ;;  %v686_v38 = vld [vmem:[#allocation5 + $0x388] sm:$0xff] }
  0xd1   :  { %v296_v54 = vsel %vm153_vm2, %v295_v44, %v291_v48  ;;  %1052 = vmatpush3.msk.msra.mxu0 %vm382_vm6, %v126_v53  ;;  %v653_v41 = vld [vmem:[#allocation5 + $0x280] sm:$0xff]  ;;  %v658_v44 = vld [vmem:[#allocation5 + $0x2a8] sm:$0xff]  ;;  %v668_v53 = vld [vmem:[#allocation5 + $0x2f8] sm:$0xff] }
  0xd2   :  { %v121_v46 = vpop.xlane.xlu1 %120  ;;  %v277_v39 = vsel %vm153_vm2, %v276_v45, %v272_v52  ;;  %1069 = vmatprep.subr.bf16.mxu0 %v1068_v61  ;;  %v1150_v43 = vpack.c.bf16 %v655_v42, %v653_v41  ;;  %v660_v45 = vld [vmem:[#allocation5 + $0x2b8] sm:$0xff]  ;;  %v657_v48 = vld [vmem:[#allocation5 + $0x2a0] sm:$0xff]  ;;  %v662_v52 = vld [vmem:[#allocation5 + $0x2c8] sm:$0xff] }
  0xd3   :  { %v300_v50 = vrot.slane %v121_v46, %v158_v62  ;;  %v109_v51 = vpop.xlane.xlu0 %108  ;;  %v1152_v46 = vpack.c.bf16 %v660_v45, %v658_v44  ;;  %v685_v42 = vld [vmem:[#allocation5 + $0x380] sm:$0xff]  ;;  %v690_v45 = vld [vmem:[#allocation5 + $0x3a8] sm:$0xff] }
  0xd4   :  { %v281_v56 = vrot.slane %v109_v51, %v158_v62  ;;  %v640_v62 = vld [vmem:[#allocation5 + $0x218] sm:$0xff] }
  0xd5   :  { %v301_v57 = vsel %vm160_vm3, %v300_v50, %v296_v54  ;;  %v1132_v63 = vpack.c.bf16 %v640_v62, %v638_v60  ;;  %v659_v50 = vld [vmem:[#allocation5 + $0x2b0] sm:$0xff]  ;;  %v664_v54 = vld [vmem:[#allocation5 + $0x2d8] sm:$0xff]  ;;  %v670_v62 = vld [vmem:[#allocation5 + $0x308] sm:$0xff] }
  0xd6   :  { %v282_v58 = vsel %vm160_vm3, %v281_v56, %v277_v39  ;;  %v1154_v51 = vpack.c.bf16 %v659_v50, %v657_v48  ;;  %v1156_v56 = vpack.c.bf16 %v664_v54, %v662_v52  ;;  %v661_v39 = vld [vmem:[#allocation5 + $0x2c0] sm:$0xff]  ;;  %v667_v60 = vld [vmem:[#allocation5 + $0x2f0] sm:$0xff]  ;;  %v548_v50 = vmax.f32 %v1382_v1, %v1392_v6 }
  0xd7   :  { %v302_v49 = vsel %vm181_vm4, %v301_v57, %v282_v58  ;;  %1133 = vmatprep.subr.bf16.mxu1 %v1132_v63  ;;  %v663_v57 = vld [vmem:[#allocation5 + $0x2d0] sm:$0xff]  ;;  %v1162_v61 = vpack.c.bf16 %v667_v60, %v665_v59  ;;  %v672_v63 = vld [vmem:[#allocation5 + $0x318] sm:$0xff]  ;;  %v689_v52 = vld [vmem:[#allocation5 + $0x3a0] sm:$0xff] }
  0xd8   :  { %1049 = vmatmul.mubr.msk.f32.vlgmr.msra.gmra.mrb[0].mxu1 %vm183_vm5, %v302_v49  ;;  %v1158_v58 = vpack.c.bf16 %v663_v57, %v661_v39  ;;  %v666_v49 = vld [vmem:[#allocation5 + $0x2e8] sm:$0xff]  ;;  %v1164_v3 = vpack.c.bf16 %v672_v63, %v670_v62  ;;  %v691_v54 = vld [vmem:[#allocation5 + $0x3b0] sm:$0xff]  ;;  %v696_v57 = vld [vmem:[#allocation5 + $0x3d8] sm:$0xff] }
  0xd9   :  { %1135 = vmatpush1.bf16.msra.mxu1 %v1134_v10  ;;  %v1160_v55 = vpack.c.bf16 %v668_v53, %v666_v49  ;;  %v671_v10 = vld [vmem:[#allocation5 + $0x310] sm:$0xff]  ;;  %v694_v39 = vld [vmem:[#allocation5 + $0x3c8] sm:$0xff]  ;;  %v539_v49 = vmax.f32 %v1380_v0, %v1390_v5  ;;  %v521_v53 = vmax.f32 %v1384_v2, %v1396_v8  ;;  %v693_v60 = vld [vmem:[#allocation5 + $0x3c0] sm:$0xff] }
  0xda   :  { %1137 = vmatprep.subr.bf16.mxu1 %v1136_v17  ;;  %v1166_v11 = vpack.c.bf16 %v671_v10, %v669_v7  ;;  %v676_v17 = vld [vmem:[#allocation5 + $0x338] sm:$0xff]  ;;  %v698_v63 = vld [vmem:[#allocation5 + $0x3e8] sm:$0xff] }
  0xdb   :  { %v1168_v22 = vpack.c.bf16 %v676_v17, %v674_v16  ;;  %v540_v10 = vmax.f32 %v539_v49, %v1404_v12  ;;  %v697_v16 = vld [vmem:[#allocation5 + $0x3e0] sm:$0xff]  ;;  %v699_v17 = vld [vmem:[#allocation5 + $0x3f0] sm:$0xff] }
  0xdd   :  { %1139 = vmatpush1.bf16.msra.mxu1 %v1138_v24  ;;  %v675_v24 = vld [vmem:[#allocation5 + $0x330] sm:$0xff] }
  0xde   :  { %1141 = vmatprep.subr.bf16.mxu1 %v1140_v27  ;;  %v1170_v25 = vpack.c.bf16 %v675_v24, %v673_v23  ;;  %v680_v27 = vld [vmem:[#allocation5 + $0x358] sm:$0xff]  ;;  %v1194_v24 = vpack.c.bf16 %v699_v17, %v697_v16  ;;  %v573_v17 = vld [vmem:[#allocation5] sm:$0xff] }
  0xdf   :  { %v1172_v28 = vpack.c.bf16 %v680_v27, %v678_v26 }
  0xe1   :  { %1143 = vmatpush1.bf16.msra.mxu1 %v1142_v30  ;;  %v679_v30 = vld [vmem:[#allocation5 + $0x350] sm:$0xff] }
  0xe2   :  { %1145 = vmatprep.subr.bf16.mxu1 %v1144_v33  ;;  %v1174_v31 = vpack.c.bf16 %v679_v30, %v677_v29  ;;  %v684_v33 = vld [vmem:[#allocation5 + $0x378] sm:$0xff] }
  0xe3   :  { %v1176_v34 = vpack.c.bf16 %v684_v33, %v682_v32 }
  0xe5   :  { %1147 = vmatpush1.bf16.msra.mxu1 %v1146_v36  ;;  %v683_v36 = vld [vmem:[#allocation5 + $0x370] sm:$0xff] }
  0xe6   :  { %1149 = vmatprep.subr.bf16.mxu1 %v1148_v40  ;;  %v1178_v37 = vpack.c.bf16 %v683_v36, %v681_v35  ;;  %v688_v40 = vld [vmem:[#allocation5 + $0x398] sm:$0xff] }
  0xe7   :  { %v1180_v41 = vpack.c.bf16 %v688_v40, %v686_v38 }
  0xe9   :  { %1151 = vmatpush1.bf16.msra.mxu1 %v1150_v43  ;;  %v687_v43 = vld [vmem:[#allocation5 + $0x390] sm:$0xff] }
  0xea   :  { %1153 = vmatprep.subr.bf16.mxu1 %v1152_v46  ;;  %v1182_v44 = vpack.c.bf16 %v687_v43, %v685_v42  ;;  %v692_v46 = vld [vmem:[#allocation5 + $0x3b8] sm:$0xff] }
  0xeb   :  { %v1184_v48 = vpack.c.bf16 %v692_v46, %v690_v45 }
  0xed   :  { %1155 = vmatpush1.bf16.msra.mxu1 %v1154_v51  ;;  %v530_v51 = vmax.f32 %v1388_v4, %v1398_v9 }
  0xee   :  { %1157 = vmatprep.subr.bf16.mxu1 %v1156_v56  ;;  %v1186_v56 = vpack.c.bf16 %v691_v54, %v689_v52 }
  0xef   :  { %v531_v59 = vmax.f32 %v530_v51, %v1410_v15 }
  0xf1   :  { %1159 = vmatpush1.bf16.msra.mxu1 %v1158_v58  ;;  %v1188_v58 = vpack.c.bf16 %v696_v57, %v694_v39  ;;  %v507_v57 = vadd.f32 %v1392_v6, %v1382_v1 }
  0xf2   :  { %1161 = vmatprep.subr.bf16.mxu1 %v1160_v55  ;;  %v549_v55 = vmax.f32 %v548_v50, %v1406_v13 }
  0xf3   :  { %v508_v49 = vadd.f32 %v507_v57, %v1406_v13  ;;  %v596_v57 = vld [vmem:[#allocation5 + $0xb8] sm:$0xff] }
  0xf4   :  { %v550_v23 = vmax.f32 %v549_v55, %v1418_v19 }
  0xf5   :  { %1163 = vmatpush1.bf16.msra.mxu1 %v1162_v61  ;;  %v695_v61 = vld [vmem:[#allocation5 + $0x3d0] sm:$0xff] }
  0xf6   :  { %1165 = vmatprep.subr.bf16.mxu1 %v1164_v3  ;;  %v1190_v62 = vpack.c.bf16 %v695_v61, %v693_v60  ;;  %v700_v3 = vld [vmem:[#allocation5 + $0x3f8] sm:$0xff]  ;;  %v551_v26 = vrot.slane %v550_v23, 4 }
  0xf7   :  { %v1192_v7 = vpack.c.bf16 %v700_v3, %v698_v63 }
  0xf8   :  { %v552_v30 = vmax.f32 %v550_v23, %v551_v26 }
  0xf9   :  { %1167 = vmatpush1.bf16.msra.mxu1 %v1166_v11  ;;  %v522_v11 = vmax.f32 %v521_v53, %v1408_v14 }
  0xfa   :  { %1169 = vmatprep.subr.bf16.mxu1 %v1168_v22  ;;  %v532_v22 = vmax.f32 %v531_v59, %v1422_v21  ;;  %v509_v59 = vadd.f32 %v508_v49, %v1418_v19  ;;  %v578_v19 = vld [vmem:[#allocation5 + $0x28] sm:$0xff] }
  0xfb   :  { %v523_v27 = vmax.f32 %v522_v11, %v1420_v20 }
  0xfc   :  { %v510_v61 = vrot.slane %v509_v59, 4 }
  0xfd   :  { %1171 = vmatpush1.bf16.msra.mxu1 %v1170_v25  ;;  %v533_v25 = vrot.slane %v532_v22, 4 }
  0xfe   :  { %1173 = vmatprep.subr.bf16.mxu1 %v1172_v28  ;;  %v541_v28 = vmax.f32 %v540_v10, %v1416_v18  ;;  %v511_v63 = vadd.f32 %v510_v61, %v509_v59  ;;  %v598_v59 = vld [vmem:[#allocation5 + $0xc8] sm:$0xff] }
  0xff   :  { %v534_v29 = vmax.f32 %v532_v22, %v533_v25 }
 0x100   :  { %v542_v32 = vrot.slane %v541_v28, 4 }
 0x101   :  { %1175 = vmatpush1.bf16.msra.mxu1 %v1174_v31  ;;  %v524_v31 = vrot.slane %v523_v27, 4  ;;  %v535_v33 = vrot.slane %v534_v29, 2 }
 0x102   :  { %1177 = vmatprep.subr.bf16.mxu1 %v1176_v34  ;;  %v553_v34 = vrot.slane %v552_v30, 2  ;;  %v543_v36 = vmax.f32 %v541_v28, %v542_v32  ;;  %v579_v32 = vld [vmem:[#allocation5 + $0x30] sm:$0xff] }
 0x103   :  { %v525_v35 = vmax.f32 %v523_v27, %v524_v31  ;;  %v577_v31 = vld [vmem:[#allocation5 + $0x20] sm:$0xff] }
 0x104   :  { %v554_v38 = vmax.f32 %v552_v30, %v553_v34  ;;  %v582_v34 = vld [vmem:[#allocation5 + $0x48] sm:$0xff] }
 0x105   :  { %1179 = vmatpush1.bf16.msra.mxu1 %v1178_v37  ;;  %v536_v37 = vmax.f32 %v534_v29, %v535_v33  ;;  %v526_v40 = vrot.slane %v525_v35, 2 }
 0x106   :  { %1181 = vmatprep.subr.bf16.mxu1 %v1180_v41  ;;  %v544_v41 = vrot.slane %v543_v36, 2  ;;  %v555_v43 = vrot.slane %v554_v38, 1 }
 0x107   :  { %v537_v42 = vrot.slane %v536_v37, 1 }
 0x108   :  { %v545_v45 = vmax.f32 %v543_v36, %v544_v41  ;;  %v1074_v36 = vpack.c.bf16 %v579_v32, %v577_v31  ;;  %v586_v41 = vld [vmem:[#allocation5 + $0x68] sm:$0xff] }
 0x109   :  { %1183 = vmatpush1.bf16.msra.mxu1 %v1182_v44  ;;  %v527_v44 = vmax.f32 %v525_v35, %v526_v40  ;;  %v538_v46 = vmax.f32 %v536_v37, %v537_v42  ;;  %v584_v35 = vld [vmem:[#allocation5 + $0x58] sm:$0xff]  ;;  %v583_v40 = vld [vmem:[#allocation5 + $0x50] sm:$0xff] }
 0x10a   :  { %1185 = vmatprep.subr.bf16.mxu1 %v1184_v48  ;;  %v556_v48 = vmax.f32 %v554_v38, %v555_v43  ;;  %v546_v51 = vrot.slane %v545_v45, 1  ;;  %v1076_v37 = vpack.c.bf16 %v584_v35, %v582_v34  ;;  %v581_v38 = vld [vmem:[#allocation5 + $0x40] sm:$0xff]  ;;  %v588_v42 = vld [vmem:[#allocation5 + $0x78] sm:$0xff]  ;;  %v615_v34 = vld [vmem:[#allocation5 + $0x150] sm:$0xff] }
 0x10b   :  { %v528_v50 = vrot.slane %v527_v44, 1  ;;  %v1078_v43 = vpack.c.bf16 %v583_v40, %v581_v38  ;;  %v618_v35 = vld [vmem:[#allocation5 + $0x168] sm:$0xff]  ;;  %v617_v40 = vld [vmem:[#allocation5 + $0x160] sm:$0xff] }
 0x10c   :  { %v570_v52 = vsel %vm181_vm4, %v556_v48, %v538_v46  ;;  %v587_v46 = vld [vmem:[#allocation5 + $0x70] sm:$0xff]  ;;  %v590_v48 = vld [vmem:[#allocation5 + $0x88] sm:$0xff] }
 0x10d   :  { %1187 = vmatpush1.bf16.msra.mxu1 %v1186_v56  ;;  %836 = vmatprep.mubr.f32.mxu1 %v570_v52  ;;  %v529_v54 = vmax.f32 %v527_v44, %v528_v50  ;;  %v547_v56 = vmax.f32 %v545_v45, %v546_v51  ;;  %v1080_v44 = vpack.c.bf16 %v588_v42, %v586_v41  ;;  %v585_v45 = vld [vmem:[#allocation5 + $0x60] sm:$0xff]  ;;  %v592_v50 = vld [vmem:[#allocation5 + $0x98] sm:$0xff]  ;;  %v619_v41 = vld [vmem:[#allocation5 + $0x170] sm:$0xff] }
 0x10e   :  { %1189 = vmatprep.subr.bf16.mxu1 %v1188_v58  ;;  %v489_v58 = vadd.f32 %v1398_v9, %v1388_v4  ;;  %v1082_v51 = vpack.c.bf16 %v587_v46, %v585_v45  ;;  %v1084_v52 = vpack.c.bf16 %v592_v50, %v590_v48  ;;  %v622_v42 = vld [vmem:[#allocation5 + $0x188] sm:$0xff]  ;;  %v621_v50 = vld [vmem:[#allocation5 + $0x180] sm:$0xff] }
 0x10f   :  { %v569_v39 = vsel %vm181_vm4, %v547_v56, %v529_v54  ;;  %v589_v54 = vld [vmem:[#allocation5 + $0x80] sm:$0xff]  ;;  %v591_v56 = vld [vmem:[#allocation5 + $0x90] sm:$0xff] }
 0x110   :  { %v490_v53 = vadd.f32 %v489_v58, %v1410_v15  ;;  %v575_v15 = vld [vmem:[#allocation5 + $0x10] sm:$0xff]  ;;  %v1086_v58 = vpack.c.bf16 %v591_v56, %v589_v54  ;;  %v628_v54 = vld [vmem:[#allocation5 + $0x1b8] sm:$0xff] }
 0x111   :  { %1191 = vmatpush1.bf16.msra.mxu1 %v1190_v62  ;;  %v1070_v28 = vpack.c.bf16 %v575_v15, %v573_v17  ;;  %v608_v17 = vld [vmem:[#allocation5 + $0x118] sm:$0xff] }
 0x112   :  { %1193 = vmatprep.subr.bf16.mxu1 %v1192_v7  ;;  %v491_v55 = vadd.f32 %v490_v53, %v1422_v21  ;;  %v512_v7 = vrot.slane %v511_v63, 2  ;;  %v593_v53 = vld [vmem:[#allocation5 + $0xa0] sm:$0xff] }
 0x114   :  { %v492_v60 = vrot.slane %v491_v55, 4  ;;  %v513_v6 = vadd.f32 %v512_v7, %v511_v63  ;;  %v597_v63 = vld [vmem:[#allocation5 + $0xc0] sm:$0xff]  ;;  %v602_v7 = vld [vmem:[#allocation5 + $0xe8] sm:$0xff] }
 0x115   :  { %1195 = vmatpush1.bf16.msra.mxu1 %v1194_v24  ;;  %v580_v24 = vld [vmem:[#allocation5 + $0x38] sm:$0xff] }
 0x116   :  { %v493_v62 = vadd.f32 %v492_v60, %v491_v55  ;;  %v514_v4 = vrot.slane %v513_v6, 1  ;;  %v1072_v30 = vpack.c.bf16 %v580_v24, %v578_v19  ;;  %v595_v55 = vld [vmem:[#allocation5 + $0xb0] sm:$0xff]  ;;  %v600_v60 = vld [vmem:[#allocation5 + $0xd8] sm:$0xff]  ;;  %v610_v19 = vld [vmem:[#allocation5 + $0x128] sm:$0xff] }
 0x117   :  { %v1090_v61 = vpack.c.bf16 %v595_v55, %v593_v53  ;;  %v627_v53 = vld [vmem:[#allocation5 + $0x1b0] sm:$0xff]  ;;  %v630_v55 = vld [vmem:[#allocation5 + $0x1c8] sm:$0xff] }
 0x118   :  { %837 = vmatmul.mubr.f32.vlgmr.msra.gmra.mrb[2].mxu1 %v569_v39  ;;  %v494_v3 = vrot.slane %v493_v62, 2  ;;  %v515_v13 = vadd.f32 %v514_v4, %v513_v6  ;;  %v594_v39 = vld [vmem:[#allocation5 + $0xa8] sm:$0xff]  ;;  %v601_v4 = vld [vmem:[#allocation5 + $0xe0] sm:$0xff] }
 0x119   :  { %v1088_v49 = vpack.c.bf16 %v596_v57, %v594_v39 }
 0x11a   :  { %v495_v1 = vadd.f32 %v494_v3, %v493_v62  ;;  %v520_v21 = vmul.f32 0.03125, %v515_v13  ;;  %v1092_v62 = vpack.c.bf16 %v600_v60, %v598_v59  ;;  %v599_v3 = vld [vmem:[#allocation5 + $0xd0] sm:$0xff]  ;;  %v606_v13 = vld [vmem:[#allocation5 + $0x108] sm:$0xff]  ;;  %v632_v59 = vld [vmem:[#allocation5 + $0x1d8] sm:$0xff] }
 0x11b   :  { %v1094_v6 = vpack.c.bf16 %v599_v3, %v597_v63  ;;  %v1124_v63 = vpack.c.bf16 %v632_v59, %v630_v55  ;;  %v629_v3 = vld [vmem:[#allocation5 + $0x1c0] sm:$0xff] }
 0x11c   :  { %v496_v16 = vrot.slane %v495_v1, 1 }
 0x11e   :  { %v497_v9 = vadd.f32 %v496_v16, %v495_v1  ;;  %v480_v1 = vadd.f32 %v1396_v8, %v1384_v2  ;;  %v612_v2 = vld [vmem:[#allocation5 + $0x138] sm:$0xff] }
 0x120   :  { %v518_v22 = vmul.f32 0.03125, %v497_v9  ;;  %v603_v9 = vld [vmem:[#allocation5 + $0xf0] sm:$0xff] }
 0x122   :  { %v562_v33 = vsel %vm181_vm4, %v520_v21, %v518_v22  ;;  %v481_v22 = vadd.f32 %v480_v1, %v1408_v14  ;;  %v1098_v21 = vpack.c.bf16 %v603_v9, %v601_v4  ;;  %v616_v14 = vld [vmem:[#allocation5 + $0x158] sm:$0xff]  ;;  %v633_v9 = vld [vmem:[#allocation5 + $0x1e0] sm:$0xff] }
 0x124   :  { %v482_v24 = vadd.f32 %v481_v22, %v1420_v20 }
 0x19d   :  { %v252_v10 = vpop.f32.mrb[0].mxu0 }
 0x19e   :  { %v1039_v11 = vpop.f32.mrb[1].mxu0  ;;  %v375_v25 = vmax.f32 %v252_v10, 0.0  ;;  %v604_v10 = vld [vmem:[#allocation5 + $0xf8] sm:$0xff] }
 0x19f   :  { %v498_v11 = vadd.f32 %v1390_v5, %v1380_v0  ;;  %v1096_v16 = vpack.c.bf16 %v604_v10, %v602_v7  ;;  %v605_v0 = vld [vmem:[#allocation5 + $0x100] sm:$0xff]  ;;  %v607_v5 = vld [vmem:[#allocation5 + $0x110] sm:$0xff]  ;;  %v634_v10 = vld [vmem:[#allocation5 + $0x1e8] sm:$0xff] }
 0x1a0   :  { %v631_v7 = vld [vmem:[#allocation5 + $0x1d0] sm:$0xff] }
 0x1a1   :  { %v499_v15 = vadd.f32 %v498_v11, %v1404_v12  ;;  %v611_v12 = vld [vmem:[#allocation5 + $0x130] sm:$0xff]  ;;  %v636_v11 = vld [vmem:[#allocation5 + $0x1f8] sm:$0xff]  ;;  %v1126_v1 = vpack.c.bf16 %v631_v7, %v629_v3 }
 0x1a2   :  { %v1128_v4 = vpack.c.bf16 %v636_v11, %v634_v10 }
 0x1a3   :  { %v500_v8 = vadd.f32 %v499_v15, %v1416_v18  ;;  %v620_v18 = vld [vmem:[#allocation5 + $0x178] sm:$0xff] }
 0x1a4   :  { %v1112_v38 = vpack.c.bf16 %v620_v18, %v618_v35 }
 0x1a5   :  { %v501_v31 = vrot.slane %v500_v8, 4 }
 0x1ab   :  { %v371_v23 = vpop.f32.mrb[0].mxu1 }
 0x1ac   :  { %v376_v26 = vmax.f32 %v371_v23, 0.0  ;;  %v1050_v27 = vpop.f32.mrb[1].mxu1  ;;  %v1100_v23 = vpack.c.bf16 %v608_v17, %v606_v13  ;;  %v635_v13 = vld [vmem:[#allocation5 + $0x1f0] sm:$0xff] }
 0x1ad   :  { %v609_v27 = vld [vmem:[#allocation5 + $0x120] sm:$0xff]  ;;  %v1130_v17 = vpack.c.bf16 %v635_v13, %v633_v9 }
 0x1ae   :  { %v377_v29 = vadd.f32 %v376_v26, %v375_v25  ;;  %v1102_v25 = vpack.c.bf16 %v607_v5, %v605_v0  ;;  %v1104_v26 = vpack.c.bf16 %v612_v2, %v610_v19  ;;  %v1225_v13 = vld [vmem:[#allocation2] sm:$0xff] }
 0x1b0   :  { %1054 = vmatmul.mubr.msk.f32.vlgmr.msra.gmra.mrb[2].mxu0 %vm378_vm7, %v377_v29  ;;  %v1106_v29 = vpack.c.bf16 %v611_v12, %v609_v27 }
 0x1b1   :  { %1071 = vmatpush1.bf16.msra.mxu0 %v1070_v28  ;;  %765 = vmatprep.mubr.f32.mxu0 %v562_v33  ;;  %v614_v28 = vld [vmem:[#allocation5 + $0x148] sm:$0xff]  ;;  %v613_v33 = vld [vmem:[#allocation5 + $0x140] sm:$0xff] }
 0x1b2   :  { %1073 = vmatprep.subr.bf16.mxu0 %v1072_v30  ;;  %v483_v30 = vrot.slane %v482_v24, 4  ;;  %v1108_v32 = vpack.c.bf16 %v616_v14, %v614_v28  ;;  %v1110_v20 = vpack.c.bf16 %v615_v34, %v613_v33 }
 0x1b5   :  { %1075 = vmatpush1.bf16.msra.mxu0 %v1074_v36  ;;  %v484_v36 = vadd.f32 %v483_v30, %v482_v24  ;;  %v1013_v24 = vld [vmem:[%s1556_s3] ss:$0 sm:$0xff]  ;;  %s1319_s3 = smov [#allocation7]  }
 0x1b6   :  { %1077 = vmatprep.subr.bf16.mxu0 %v1076_v37  ;;  %v502_v37 = vadd.f32 %v501_v31, %v500_v8  ;;  %s995_s27 = sshll.u32 %s1319_s3, 4  ;;  %s996_s27 = int_to_ptr.vmem [resolvable:$true] %s995_s27 }
 0x1b7   :  { %v485_v45 = vrot.slane %v484_v36, 2  ;;  %s1283_s30 = scalar_lea.vmem %s996_s27, 2048  ;;  %p1288_p3 = scmp.lt.s32.totalorder %s996_s27, %s996_s27 }
 0x1b8   :  { %v503_v46 = vrot.slane %v502_v37, 2  ;;  %p1284_p2 = scmp.ne.s32.totalorder %s996_s27, %s1283_s30  ;;  %p1289_p4 = scmp.lt.s32.totalorder %s1283_s30, %s1283_s30 }
 0x1b9   :  { %1079 = vmatpush1.bf16.msra.mxu0 %v1078_v43  ;;  %v624_v43 = vld [vmem:[#allocation5 + $0x198] sm:$0xff]  ;;  %v486_v39 = vadd.f32 %v485_v45, %v484_v36 }
 0x1ba   :  { %1081 = vmatprep.subr.bf16.mxu0 %v1080_v44  ;;  %v1114_v44 = vpack.c.bf16 %v619_v41, %v617_v40  ;;  %v1116_v48 = vpack.c.bf16 %v624_v43, %v622_v42  ;;  %v504_v57 = vadd.f32 %v503_v46, %v502_v37  ;;  %v1318_v40 = vmov 1966171168   ;;  %p1290_p5 = por %p1289_p4, %p1288_p3 }
 0x1bb   :  { %v901_v41 = vunpack.c.l.s4 %v1318_v40  ;;  %v1234_v40 = vld [vmem:[#allocation2 + $0x38] sm:$0xff] }
 0x1bc   :  { %p1291_p6 = pnand %p1290_p5, %p1284_p2 }
 0x1bd   :  { %1083 = vmatpush1.bf16.msra.mxu0 %v1082_v51  ;;  %v623_v51 = vld [vmem:[#allocation5 + $0x190] sm:$0xff]  ;;  %v902_v45 = vunpack.c.0.s8 %v901_v41 }
 0x1be   :  { %1085 = vmatprep.subr.bf16.mxu0 %v1084_v52  ;;  %v626_v52 = vld [vmem:[#allocation5 + $0x1a8] sm:$0xff]  ;;  %v1118_v56 = vpack.c.bf16 %v623_v51, %v621_v50  ;;  %v877_v51 = vsub.s32 1, %v1458_v47 }
 0x1c1   :  { %1087 = vmatpush1.bf16.msra.mxu0 %v1086_v58  ;;  %v1120_v58 = vpack.c.bf16 %v628_v54, %v626_v52 }
 0x1c2   :  { %1089 = vmatprep.subr.bf16.mxu0 %v1088_v49  ;;  %v625_v49 = vld [vmem:[#allocation5 + $0x1a0] sm:$0xff] }
 0x1c3   :  { %v1122_v60 = vpack.c.bf16 %v627_v53, %v625_v49 }
 0x1c5   :  { %1091 = vmatpush1.bf16.msra.mxu0 %v1090_v61  ;;  %v487_v61 = vrot.slane %v486_v39, 1 }
 0x1c6   :  { %1093 = vmatprep.subr.bf16.mxu0 %v1092_v62  ;;  %v505_v62 = vrot.slane %v504_v57, 1 }
 0x1c9   :  { %1095 = vmatpush1.bf16.msra.mxu0 %v1094_v6  ;;  %v488_v6 = vadd.f32 %v487_v61, %v486_v39  ;;  %v905_v39 = vsub.s32 %v902_v45, %v1458_v47  ;;  %v1235_v45 = vld [vmem:[#allocation2 + $0x40] sm:$0xff] }
 0x1ca   :  { %1097 = vmatprep.subr.bf16.mxu0 %v1096_v16  ;;  %v506_v16 = vadd.f32 %v505_v62, %v504_v57 }
 0x1cb   :  { %v517_v15 = vmul.f32 0.03125, %v488_v6  ;;  %v1223_v6 = vld [vmem:[#allocation2 + $0x10] sm:$0xff] }
 0x1cc   :  { %v519_v22 = vmul.f32 0.03125, %v506_v16 }
 0x1cd   :  { %1099 = vmatpush1.bf16.msra.mxu0 %v1098_v21 }
 0x1ce   :  { %1101 = vmatprep.subr.bf16.mxu0 %v1100_v23  ;;  %v561_v21 = vsel %vm181_vm4, %v519_v22, %v517_v15  ;;  %v1226_v15 = vld [vmem:[#allocation2 + $0x8] sm:$0xff] }
 0x1d1   :  { %1103 = vmatpush1.bf16.msra.mxu0 %v1102_v25 }
 0x1d2   :  { %1105 = vmatprep.subr.bf16.mxu0 %v1104_v26 }
 0x1d5   :  { %1107 = vmatpush1.bf16.msra.mxu0 %v1106_v29 }
 0x1d6   :  { %1109 = vmatprep.subr.bf16.mxu0 %v1108_v32 }
 0x1d9   :  { %1111 = vmatpush1.bf16.msra.mxu0 %v1110_v20 }
 0x1da   :  { %1113 = vmatprep.subr.bf16.mxu0 %v1112_v38 }
 0x1dd   :  { %1115 = vmatpush1.bf16.msra.mxu0 %v1114_v44  ;;  %v858_v44 = vsub.s32 0, %v1458_v47 }
 0x1de   :  { %1117 = vmatprep.subr.bf16.mxu0 %v1116_v48 }
 0x1e1   :  { %1119 = vmatpush1.bf16.msra.mxu0 %v1118_v56 }
 0x1e2   :  { %1121 = vmatprep.subr.bf16.mxu0 %v1120_v58 }
 0x1e5   :  { %1123 = vmatpush1.bf16.msra.mxu0 %v1122_v60 }
 0x1e6   :  { %1125 = vmatprep.subr.bf16.mxu0 %v1124_v63 }
 0x1e9   :  { %1127 = vmatpush1.bf16.msra.mxu0 %v1126_v1 }
 0x1ea   :  { %1129 = vmatprep.subr.bf16.mxu0 %v1128_v4  ;;  %v1224_v4 = vld [vmem:[#allocation2 + $0x18] sm:$0xff] }
 0x1eb   :  { %v838_v23 = vpop.f32.mrb[2].mxu1 }
 0x1ec   :  { %v840_v12 = vpop.f32.mrb[3].mxu1 }
 0x1ed   :  { %1131 = vmatpush1.bf16.msra.mxu0 %v1130_v17 }
 0x1f0   :  { %766 = vmatmul.mubr.f32.vlgmr.msra.gmra.mrb[4].mxu0 %v561_v21 }
 0x283   :  { %v452_v0 = vpop.f32.mrb[2].mxu0 }
 0x284   :  { %v1012_v5 = vmul.f32 -1.442695, %v452_v0  ;;  %v1055_v19 = vpop.f32.mrb[3].mxu0 }
 0x286   :  { %1207 = vpow2.f32 %v1012_v5 }
 0x290   :  { %v1208_v2 = vpop.eup %1207 }
 0x291   :  { %v459_v8 = vadd.f32 1.0, %v1208_v2 }
 0x293   :  { %1209 = vrcp.f32 %v459_v8  ;;  %v1227_v8 = vld [vmem:[#allocation2 + $0x50] sm:$0xff] }
 0x29d   :  { %v1210_v25 = vpop.eup %1209 }
 0x29e   :  { %v469_v26 = vmul.f32 %v1210_v25, %v1013_v24 }
 0x2a0   :  { %v471_v27 = vsel %vm470_vm8, %v469_v26, 0.0 }
 0x2a1   :  { %472 = vadd.xlane.f32.xlu0 %v471_v27  ;;  %v1229_v27 = vld [vmem:[#allocation2 + $0x20] sm:$0xff] }
 0x2c3   :  { %v767_v28 = vpop.f32.mrb[4].mxu0 }
 0x2c4   :  { %v839_v14 = vadd.f32 %v838_v23, %v767_v28  ;;  %v769_v29 = vpop.f32.mrb[5].mxu0  ;;  %v1230_v28 = vld [vmem:[#allocation2 + $0x28] sm:$0xff] }
 0x2c5   :  { %v841_v30 = vadd.f32 %v840_v12, %v769_v29 }
 0x2c6   :  { %v1015_v31 = vmul.f32 -1.442695, %v839_v14 }
 0x2c7   :  { %v1016_v32 = vmul.f32 -1.442695, %v841_v30 }
 0x2c8   :  { %1211 = vpow2.f32 %v1015_v31 }
 0x2c9   :  { %1213 = vpow2.f32 %v1016_v32 }
 0x2d2   :  { %v1212_v35 = vpop.eup %1211 }
 0x2d3   :  { %v1214_v18 = vpop.eup %1213  ;;  %v849_v20 = vadd.f32 1.0, %v1212_v35  ;;  %v1231_v35 = vld [vmem:[#allocation2 + $0x70] sm:$0xff] }
 0x2d4   :  { %v850_v36 = vadd.f32 1.0, %v1214_v18 }
 0x32e   :  { %v473_v33 = vpop.xlane.xlu0 %472 }
 0x32f   :  { %v1014_v34 = vmul.f32 -1.442695, %v473_v33 }
 0x331   :  { %1215 = vpow2.f32 %v1014_v34 }
 0x332   :  { %1217 = vrcp.f32 %v849_v20  ;;  %v1232_v20 = vld [vmem:[#allocation2 + $0x78] sm:$0xff] }
 0x333   :  { %1219 = vrcp.f32 %v850_v36 }
 0x33b   :  { %v1216_v37 = vpop.eup %1215 }
 0x33c   :  { %v477_v38 = vadd.f32 1.0, %v1216_v37  ;;  %v1218_v42 = vpop.eup %1217  ;;  %v1233_v37 = vld [vmem:[#allocation2 + $0x30] sm:$0xff] }
 0x33d   :  { %v1220_v43 = vpop.eup %1219 }
 0x33e   :  { %1221 = vrcp.f32 %v477_v38 }
 0x348   :  { %v1222_v46 = vpop.eup %1221 }
 0x349   :  { %v894_v48 = vsub.f32 1.0, %v1222_v46  ;;  %v855_v50 = vmul.f32 %v1222_v46, %v1210_v25  ;;  %v1228_v25 = vld [vmem:[#allocation2 + $0x58] sm:$0xff] }
 0x34b   :  { %v895_v52 = vmul.f32 %v1218_v42, %v894_v48  ;;  %v896_v54 = vmul.f32 %v1220_v43, %v894_v48  ;;  %v859_v56 = vrot.slane %v855_v50, %v858_v44  ;;  %v878_v58 = vrot.slane %v855_v50, %v877_v51  ;;  %v1236_v48 = vld [vmem:[#allocation2 + $0x48] sm:$0xff] }
 0x34d   :  { %865 = vbcast.lane.b32.xlu0 %v859_v56, 264  ;;  %861 = vbcast.lane.b32.xlu1 %v859_v56, 256  ;;  %v899_v57 = vcombine.low %v895_v52, %v896_v54 }
 0x34f   :  { %v906_v49 = vrot.slane %v899_v57, %v905_v39  ;;  %v1238_v57 = vld [vmem:[#allocation2 + $0x68] sm:$0xff] }
 0x351   :  { %884 = vbcast.lane.b32.xlu0 %v878_v58, 264  ;;  %869 = vbcast.lane.b32.xlu1 %v859_v56, 272  ;;  %v914_v53 = vrot.slane %v906_v49, %v905_v39  ;;  %v907_v55 = vcombine.high %v906_v49, %v906_v49 }
 0x353   :  { %v925_v59 = vrot.slane %v914_v53, %v858_v44  ;;  %v929_v60 = vrot.slane %v914_v53, %v877_v51  ;;  %v921_v61 = vrot.slane %v907_v55, %v905_v39 }
 0x355   :  { %892 = vbcast.lane.b32.xlu0 %v878_v58, 280  ;;  %873 = vbcast.lane.b32.xlu1 %v859_v56, 280  ;;  %v1526_v62 = vrot.slane %v921_v61, %v858_v44  ;;  %v1528_v63 = vrot.slane %v921_v61, %v877_v51  ;;  %v1237_v56 = vld [vmem:[#allocation2 + $0x60] sm:$0xff] }
 0x359   :  { %880 = vbcast.lane.b32.xlu1 %v878_v58, 256 }
 0x35d   :  { %888 = vbcast.lane.b32.xlu1 %v878_v58, 272 }
 0x3bf   :  { %v866_v47 = vpop.permute.xlu0 %865  ;;  %v862_v3 = vpop.permute.xlu1 %861 }
 0x3c0   :  { %v944_v7 = vadd.f32 %v925_v59, %v866_v47  ;;  %v945_v10 = vadd.f32 %v929_v60, %v866_v47  ;;  %v942_v11 = vadd.f32 %v925_v59, %v862_v3  ;;  %v943_v1 = vadd.f32 %v929_v60, %v862_v3 }
 0x3c2   :  { %v960_v16 = vmul.f32 %v1223_v6, %v944_v7  ;;  %v961_v9 = vmul.f32 %v1224_v4, %v945_v10  ;;  %v958_v17 = vmul.f32 %v1225_v13, %v942_v11  ;;  %v959_v22 = vmul.f32 %v1226_v15, %v943_v1 }
 0x3c3   :  { %v885_v21 = vpop.permute.xlu0 %884  ;;  %v870_v23 = vpop.permute.xlu1 %869 }
 0x3c4   :  { %976 = vst [vmem:[#allocation7 + $0x10] sm:$0xff] %v960_v16  ;;  %977 = vst [vmem:[#allocation7 + $0x18] sm:$0xff] %v961_v9  ;;  %v952_v0 = vadd.f32 %v1526_v62, %v885_v21  ;;  %v953_v5 = vadd.f32 %v1528_v63, %v885_v21  ;;  %v946_v19 = vadd.f32 %v925_v59, %v870_v23 }
 0x3c5   :  { %974 = vst [vmem:[#allocation7] sm:$0xff] %v958_v17  ;;  %975 = vst [vmem:[#allocation7 + $0x8] sm:$0xff] %v959_v22  ;;  %v947_v2 = vadd.f32 %v929_v60, %v870_v23 }
 0x3c6   :  { %v968_v24 = vmul.f32 %v1227_v8, %v952_v0  ;;  %v969_v26 = vmul.f32 %v1228_v25, %v953_v5  ;;  %v962_v12 = vmul.f32 %v1229_v27, %v946_v19 }
 0x3c7   :  { %v963_v14 = vmul.f32 %v1230_v28, %v947_v2  ;;  %v893_v29 = vpop.permute.xlu0 %892  ;;  %v874_v30 = vpop.permute.xlu1 %873 }
 0x3c8   :  { %984 = vst [vmem:[#allocation7 + $0x50] sm:$0xff] %v968_v24  ;;  %985 = vst [vmem:[#allocation7 + $0x58] sm:$0xff] %v969_v26  ;;  %v956_v31 = vadd.f32 %v1526_v62, %v893_v29  ;;  %v957_v32 = vadd.f32 %v1528_v63, %v893_v29  ;;  %v948_v33 = vadd.f32 %v925_v59, %v874_v30 }
 0x3c9   :  { %978 = vst [vmem:[#allocation7 + $0x20] sm:$0xff] %v962_v12  ;;  %979 = vst [vmem:[#allocation7 + $0x28] sm:$0xff] %v963_v14  ;;  %v949_v34 = vadd.f32 %v929_v60, %v874_v30 }
 0x3ca   :  { %v972_v18 = vmul.f32 %v1231_v35, %v956_v31  ;;  %v973_v36 = vmul.f32 %v1232_v20, %v957_v32  ;;  %v964_v38 = vmul.f32 %v1233_v37, %v948_v33 }
 0x3cb   :  { %v965_v41 = vmul.f32 %v1234_v40, %v949_v34  ;;  %v881_v42 = vpop.permute.xlu1 %880 }
 0x3cc   :  { %988 = vst [vmem:[#allocation7 + $0x70] sm:$0xff] %v972_v18  ;;  %989 = vst [vmem:[#allocation7 + $0x78] sm:$0xff] %v973_v36  ;;  %v950_v43 = vadd.f32 %v1526_v62, %v881_v42  ;;  %v951_v44 = vadd.f32 %v1528_v63, %v881_v42 }
 0x3cd   :  { %980 = vst [vmem:[#allocation7 + $0x30] sm:$0xff] %v964_v38  ;;  %981 = vst [vmem:[#allocation7 + $0x38] sm:$0xff] %v965_v41 }
 0x3ce   :  { %v966_v46 = vmul.f32 %v1235_v45, %v950_v43  ;;  %v967_v50 = vmul.f32 %v1236_v48, %v951_v44 }
 0x3cf   :  { %v889_v51 = vpop.permute.xlu1 %888 }
 0x3d0   :  { %982 = vst [vmem:[#allocation7 + $0x40] sm:$0xff] %v966_v46  ;;  %983 = vst [vmem:[#allocation7 + $0x48] sm:$0xff] %v967_v50  ;;  %v954_v52 = vadd.f32 %v1526_v62, %v889_v51  ;;  %v955_v54 = vadd.f32 %v1528_v63, %v889_v51 }
 0x3d2   :  { %v970_v39 = vmul.f32 %v1237_v56, %v954_v52  ;;  %v971_v58 = vmul.f32 %v1238_v57, %v955_v54 }
 0x3d4   :  { %986 = vst [vmem:[#allocation7 + $0x60] sm:$0xff] %v970_v39  ;;  %987 = vst [vmem:[#allocation7 + $0x68] sm:$0xff] %v971_v58 }
 0x3d5   :  { %1294 = shalt.err (!%p1291_p6)
}
 0x3d6   :  { %s1295_s8 = scalar_lea.hbm %s1558_s5, 2048 }
 0x3d7   :  { %p1296_p7 = scmp.ne.s32.totalorder %s1558_s5, %s1295_s8  ;;  %p1299_p8 = scmp.lt.u32.totalorder %s1295_s8, %s1558_s5 }
 0x3d9   :  { %p1301_p9 = pnand %p1299_p8, %p1296_p7 }
 0x3db   :  { %1304 = shalt.err (!%p1301_p9)
}
 0x3dc   :  { %1001 = dma.vmem_to_hbm [thread:$0]  %s996_s27, 2048, %s1558_s5, [#allocation4], %s1312_s28, %s1312_s28, %s1313_s29  }
 0x3dd   :  { %1309 = dma.done.wait [#allocation4], 2048  }
 0x3de   :  { %1310 = vsyncadd [#allocation4], 4294965248 }
 0x3df   :  { %1005 = vsyncpa [#allocation3], 1 }
 0x3e0   :  { %1006 = vsyncpa [#allocation6], 1 }
 0x3e1   :  { %1007 = vsyncpa [#allocation4], 1 }

</bundles_post_ra>
